<compile_context>
chip_gen: v6e
topology: v6e:2x2x1
jax: 0.10.0
libtpu: 0.0.40
codegen_flags: <defaults>
</compile_context>

<pallas_src>
import numpy as np
import jax
import jax.numpy as jnp
from jax.experimental import pallas as pl
from jax.experimental.pallas import tpu as pltpu

LANE = 128


# ----------------------- host-side parameter packing ------------------------

def pack_conv1(w, b, C, H, W):
    """conv1 as one im2col matmul: contraction axis ordered (kh, ci, w);
    output columns ordered (pool-phase s, out-channel, pooled-column), each
    phase in its own 128-lane block so the width half of the 2x2 pool is an
    aligned lane-tile max."""
    CO, CI, KH, KW = w.shape
    OW = W - KW + 1
    PW = OW // 2
    K = KH * CI * W
    S = np.zeros((K, 2 * LANE), np.float32)
    brow = np.zeros((1, 2 * LANE), np.float32)
    for co in range(CO):
        for bw in range(PW):
            for s in range(2):
                col = s * LANE + co * PW + bw
                brow[0, col] = b[co]
                j = 2 * bw + s
                for ci in range(CI):
                    for kh in range(KH):
                        for kw in range(KW):
                            S[kh * CI * W + ci * W + j + kw, col] = w[co, ci, kh, kw]
    return S, brow


def pack_conv2(w, b, PW1):
    """conv2 Toeplitz structure per height tap; rows index the pooled-conv1
    lane layout (ci*PW1 + pooled column, padded to 128), columns use the same
    two 128-lane pool-phase blocks as conv1."""
    CO, CI, KH, KW = w.shape
    OW = PW1 - KW + 1
    PW = OW // 2
    S = np.zeros((KH, LANE, 2 * LANE), np.float32)
    brow = np.zeros((1, 2 * LANE), np.float32)
    for co in range(CO):
        for bw in range(PW):
            for s in range(2):
                col = s * LANE + co * PW + bw
                brow[0, col] = b[co]
                j = 2 * bw + s
                for ci in range(CI):
                    for kh in range(KH):
                        for kw in range(KW):
                            S[kh, ci * PW1 + j + kw, col] = w[co, ci, kh, kw]
    return S, brow


def pack_fc1(fw1, CO2, A2, B2):
    """Linear(160,32) repacked so pooled conv2 row a2 (a (·,128) slab with
    lane layout co2*B2 + b2) multiplies its own (128, 32) block (torch flatten
    order is co2*A2*B2 + a2*B2 + b2)."""
    HID = fw1.shape[0]
    G = np.zeros((A2, LANE, HID), np.float32)
    for a2 in range(A2):
        for co2 in range(CO2):
            for b2 in range(B2):
                G[a2, co2 * B2 + b2, :] = fw1[:, co2 * (A2 * B2) + a2 * B2 + b2]
    return G


def pack_grid_consts(C, H, W):
    """Batch-independent affine_grid / grid_sample constants (hoisted out of
    the kernel): normalized target coords, source col/row index planes and the
    channel block-sum matrix."""
    HW = H * W
    m = np.arange(HW)
    xn = 2.0 * (m % W) / (W - 1) - 1.0
    yn = 2.0 * (m // W) / (H - 1) - 1.0
    xy = np.stack([xn, yn]).astype(np.float32)                       # (2, HW)
    qidx = np.broadcast_to(
        np.arange(W, dtype=np.float32)[:, None], (W, HW)).copy()     # (W, HW)
    pidx = np.broadcast_to(
        (np.arange(C * H) % H).astype(np.float32)[:, None],
        (C * H, HW)).copy()                                          # (C*H, HW)
    csum = np.zeros((C, C * H), np.float32)
    for c in range(C):
        csum[c, c * H:(c + 1) * H] = 1.0
    return xy, qidx, pidx, csum


def pack_params(raw, C=3, H=32, W=32):
    w1 = np.asarray(raw['w1']); b1 = np.asarray(raw['b1'])
    w2 = np.asarray(raw['w2']); b2 = np.asarray(raw['b2'])
    fw1 = np.asarray(raw['fw1']); fb1 = np.asarray(raw['fb1'])
    fw2 = np.asarray(raw['fw2']); fb2 = np.asarray(raw['fb2'])

    w1s, b1r = pack_conv1(w1, b1, C, H, W)
    PH1 = (H - w1.shape[2] + 1) // 2                    # 13
    PW1 = (W - w1.shape[3] + 1) // 2                    # 13
    w2s, b2r = pack_conv2(w2, b2, PW1)
    A2 = (PH1 - w2.shape[2] + 1) // 2                   # 4
    B2 = (PW1 - w2.shape[3] + 1) // 2                   # 4
    g = pack_fc1(fw1, CO2=w2.shape[0], A2=A2, B2=B2)
    xy, qidx, pidx, csum = pack_grid_consts(C, H, W)

    return dict(
        w1s=jnp.asarray(w1s), b1r=jnp.asarray(b1r),
        w2s=jnp.asarray(w2s), b2r=jnp.asarray(b2r),
        g=jnp.asarray(g),
        fb1r=jnp.asarray(fb1).reshape(1, -1),
        fw2t=jnp.asarray(np.ascontiguousarray(fw2.T)),
        fb2r=jnp.asarray(fb2).reshape(1, -1),
        xy=jnp.asarray(xy), qidx=jnp.asarray(qidx),
        pidx=jnp.asarray(pidx), csum=jnp.asarray(csum))


# ------------------------------ fused kernel --------------------------------

def _fused_stn_kernel(xcols_ref, ximg_ref, w1_ref, b1_ref, e_ref, w2_ref,
                      b2_ref, g_ref, fb1_ref, fw2t_ref, fb2_ref, xy_ref,
                      qidx_ref, pidx_ref, csum_ref, o_ref):
    f32 = jnp.float32
    B, CH, W = ximg_ref.shape
    C = csum_ref.shape[0]
    H = CH // C
    half1 = w1_ref.shape[1] // 2
    half2 = w2_ref.shape[2] // 2
    KH2 = w2_ref.shape[0]
    A2 = g_ref.shape[0]
    R2 = 2 * A2

    # ---- conv1: ONE im2col matmul (K = KH*C*W), then pool(2) + relu --------
    acc1 = jnp.dot(xcols_ref[...], w1_ref[...],
                   preferred_element_type=f32) + b1_ref[...]
    pj1 = jnp.maximum(acc1[:, :half1], acc1[:, half1:])     # width pool (aligned)
    # height pool + relu + reorder rows to (pooled-row, image) via 0/1 matmuls
    p1 = jnp.maximum(
        jnp.maximum(jnp.dot(e_ref[0], pj1, preferred_element_type=f32),
                    jnp.dot(e_ref[1], pj1, preferred_element_type=f32)),
        0.0)                                                # (PH1*B, 128)

    # ---- conv2: KH2 accumulating matmuls over contiguous row blocks --------
    acc2 = jnp.zeros((R2 * B, 2 * half2), f32) + b2_ref[...]
    for kh in range(KH2):
        acc2 = acc2 + jnp.dot(p1[kh * B:(kh + R2) * B, :], w2_ref[kh],
                              preferred_element_type=f32)
    pj2 = jnp.maximum(acc2[:, :half2], acc2[:, half2:])     # (R2*B, 128)

    # ---- pool2 + relu fused with fc_loc Linear(160,32); then Linear(32,6) --
    h = jnp.zeros((B, fb1_ref.shape[1]), f32) + fb1_ref[...]
    for a2 in range(A2):
        ev = pj2[(2 * a2) * B:(2 * a2 + 1) * B, :]
        od = pj2[(2 * a2 + 1) * B:(2 * a2 + 2) * B, :]
        p2a = jnp.maximum(jnp.maximum(ev, od), 0.0)         # (B, 128)
        h = h + jnp.dot(p2a, g_ref[a2], preferred_element_type=f32)
    h = jnp.maximum(h, 0.0)
    theta = jnp.dot(h, fw2t_ref[...], preferred_element_type=f32) + fb2_ref[...]

    # ---- affine_grid + grid_sample (bilinear, zeros, align_corners=True) ---
    xn = xy_ref[0:1, :]                                     # (1, HW)
    yn = xy_ref[1:2, :]
    for b in range(B):
        t = theta[b:b + 1, :]                               # (1, 6)
        px = (t[:, 0:1] * xn + t[:, 1:2] * yn + t[:, 2:3] + 1.0) * (0.5 * (W - 1))
        py = (t[:, 3:4] * xn + t[:, 4:5] * yn + t[:, 5:6] + 1.0) * (0.5 * (H - 1))
        wxT = jnp.maximum(0.0, 1.0 - jnp.abs(px - qidx_ref[...]))   # (W, HW)
        wy3 = jnp.maximum(0.0, 1.0 - jnp.abs(py - pidx_ref[...]))   # (C*H, HW)
        u = jnp.dot(ximg_ref[b], wxT, preferred_element_type=f32)   # (C*H, HW)
        sampled = jnp.dot(csum_ref[...], u * wy3,
                          preferred_element_type=f32)               # (C, HW)
        # TODO(synk): Model.model_forward is abstract (`pass`) in the
        # reference module; it is treated as identity, so LogSoftmax(dim=1)
        # acts on the channel dimension of the warped image.
        mx = jnp.max(sampled, axis=0, keepdims=True)
        z = sampled - mx
        lse = jnp.log(jnp.sum(jnp.exp(z), axis=0, keepdims=True))
        o_ref[b] = (z - lse).astype(o_ref.dtype)


# ------------------------------- wrapper -------------------------------------

def _choose_block(n):
    # >= 2 "parallel" grid steps so a v7x megacore can use both TensorCores,
    # with up to 8 images stacked along the matmul M axis per step to amortize
    # the fixed per-step cost on v5e/v6e.
    if n <= 1:
        return 1
    return min(8, (n + 1) // 2)


@jax.jit
def model_forward_pallas(x, params):
    N, C, H, W = x.shape
    HW = H * W
    KH1 = params['w1s'].shape[0] // (C * W)
    OH1 = H - KH1 + 1
    ROWS1 = ((OH1 + 7) // 8) * 8          # conv1 output rows per image, padded
    PH1 = OH1 // 2

    B = _choose_block(N)
    T = -(-N // B)
    Npad = T * B
    xp = x if Npad == N else jnp.pad(x, ((0, Npad - N), (0, 0), (0, 0), (0, 0)))

    # image slab for grid_sample: (Npad, C*H, W), row = c*H + h
    ximg = xp.reshape(Npad, C * H, W)

    # conv1 im2col: rows (image, out-row) padded to ROWS1 rows/image,
    # contraction axis ordered (kh, ci, w)  ->  (Npad*ROWS1, KH1*C*W)
    slabs = jnp.stack([xp[:, :, kh:kh + OH1, :] for kh in range(KH1)], axis=2)
    xcols = jnp.transpose(slabs, (0, 3, 2, 1, 4)).reshape(Npad, OH1, KH1 * C * W)
    xcols = jnp.pad(xcols, ((0, 0), (0, ROWS1 - OH1), (0, 0)))
    xcols = xcols.reshape(Npad * ROWS1, KH1 * C * W)

    # block-diagonal even/odd row selectors for the conv1 height pool; output
    # rows ordered (pooled-row, image) so downstream stages slice contiguous
    # row blocks instead of gathering.
    e0 = np.zeros((PH1 * B, ROWS1 * B), np.float32)
    e1 = np.zeros((PH1 * B, ROWS1 * B), np.float32)
    for a1 in range(PH1):
        for b in range(B):
            e0[a1 * B + b, b * ROWS1 + 2 * a1] = 1.0
            e1[a1 * B + b, b * ROWS1 + 2 * a1 + 1] = 1.0
    e = jnp.asarray(np.stack([e0, e1]))

    out = pl.pallas_call(
        _fused_stn_kernel,
        out_shape=jax.ShapeDtypeStruct((Npad, C, HW), jnp.float32),
        grid=(T,),
        in_specs=[
            pl.BlockSpec((B * ROWS1, KH1 * C * W), lambda t: (t, 0)),
            pl.BlockSpec((B, C * H, W), lambda t: (t, 0, 0)),
            pl.BlockSpec(params['w1s'].shape, lambda t: (0, 0)),
            pl.BlockSpec(params['b1r'].shape, lambda t: (0, 0)),
            pl.BlockSpec(e.shape, lambda t: (0, 0, 0)),
            pl.BlockSpec(params['w2s'].shape, lambda t: (0, 0, 0)),
            pl.BlockSpec(params['b2r'].shape, lambda t: (0, 0)),
            pl.BlockSpec(params['g'].shape, lambda t: (0, 0, 0)),
            pl.BlockSpec(params['fb1r'].shape, lambda t: (0, 0)),
            pl.BlockSpec(params['fw2t'].shape, lambda t: (0, 0)),
            pl.BlockSpec(params['fb2r'].shape, lambda t: (0, 0)),
            pl.BlockSpec(params['xy'].shape, lambda t: (0, 0)),
            pl.BlockSpec(params['qidx'].shape, lambda t: (0, 0)),
            pl.BlockSpec(params['pidx'].shape, lambda t: (0, 0)),
            pl.BlockSpec(params['csum'].shape, lambda t: (0, 0)),
        ],
        out_specs=pl.BlockSpec((B, C, HW), lambda t: (t, 0, 0)),
        compiler_params=pltpu.CompilerParams(
            dimension_semantics=("parallel",)),
    )(xcols, ximg, params['w1s'], params['b1r'], e, params['w2s'],
      params['b2r'], params['g'], params['fb1r'], params['fw2t'],
      params['fb2r'], params['xy'], params['qidx'], params['pidx'],
      params['csum'])
    return out[:N].reshape(N, C, H, W)


# ------------------------------ parameters ----------------------------------

def init_raw_params(key, zero_fc2=True):
    """Module-shaped parameters.  fc_loc[2] follows the prescribed init
    (zero weight, identity-affine bias) when zero_fc2=True."""
    ks = jax.random.split(key, 8)
    f32 = jnp.float32
    w1 = 0.05 * jax.random.normal(ks[0], (8, 3, 7, 7), f32)
    b1 = 0.05 * jax.random.normal(ks[1], (8,), f32)
    w2 = 0.05 * jax.random.normal(ks[2], (10, 8, 5, 5), f32)
    b2 = 0.05 * jax.random.normal(ks[3], (10,), f32)
    fw1 = 0.05 * jax.random.normal(ks[4], (32, 160), f32)
    fb1 = 0.05 * jax.random.normal(ks[5], (32,), f32)
    if zero_fc2:
        fw2 = jnp.zeros((6, 32), f32)
    else:
        fw2 = 0.01 * jax.random.normal(ks[6], (6, 32), f32)
    fb2 = jnp.array([1., 0., 0., 0., 1., 0.], f32)
    return dict(w1=w1, b1=b1, w2=w2, b2=b2, fw1=fw1, fb1=fb1, fw2=fw2, fb2=fb2)


# --------------------------- pure-JAX reference ------------------------------

def ref_forward(x, rp):
    f32 = jnp.float32
    N, C, H, W = x.shape
    hi = jax.lax.Precision.HIGHEST

    def conv(z, w, b):
        out = jax.lax.conv_general_dilated(
            z, w, window_strides=(1, 1), padding='VALID',
            dimension_numbers=('NCHW', 'OIHW', 'NCHW'), precision=hi)
        return out + b[None, :, None, None]

    def pool2(z):
        n, c, h, w = z.shape
        ph, pw = h // 2, w // 2
        z = z[:, :, :ph * 2, :pw * 2].reshape(n, c, ph, 2, pw, 2)
        return z.max(axis=(3, 5))

    h1 = jnp.maximum(pool2(conv(x, rp['w1'], rp['b1'])), 0.0)
    h2 = jnp.maximum(pool2(conv(h1, rp['w2'], rp['b2'])), 0.0)
    xs = h2.reshape(N, -1)
    hf = jnp.maximum(jnp.dot(xs, rp['fw1'].T, precision=hi) + rp['fb1'], 0.0)
    theta = jnp.dot(hf, rp['fw2'].T, precision=hi) + rp['fb2']      # (N, 6)

    yl = 2.0 * jnp.arange(H, dtype=f32) / (H - 1) - 1.0
    xl = 2.0 * jnp.arange(W, dtype=f32) / (W - 1) - 1.0
    gx = (theta[:, 0, None, None] * xl[None, None, :]
          + theta[:, 1, None, None] * yl[None, :, None]
          + theta[:, 2, None, None])
    gy = (theta[:, 3, None, None] * xl[None, None, :]
          + theta[:, 4, None, None] * yl[None, :, None]
          + theta[:, 5, None, None])
    px = (gx + 1.0) * 0.5 * (W - 1)
    py = (gy + 1.0) * 0.5 * (H - 1)
    wq = jnp.maximum(0.0, 1.0 - jnp.abs(px[..., None] - jnp.arange(W, dtype=f32)))
    wp = jnp.maximum(0.0, 1.0 - jnp.abs(py[..., None] - jnp.arange(H, dtype=f32)))
    sampled = jnp.einsum('nijp,nijq,ncpq->ncij', wp, wq, x, precision=hi)
    return jax.nn.log_softmax(sampled, axis=1)


# ----------------------------------- main ------------------------------------

if __name__ == "__main__":
    key = jax.random.PRNGKey(0)
    kp, kx = jax.random.split(key)
    # input_size=32 is required by the module (10*4*4 flatten after localization)
    x = jax.random.normal(kx, (2, 3, 32, 32), jnp.float32)

    # Run 1: module's prescribed fc_loc[2] init (zero weight, identity-affine
    # bias) -> the STN is an exact pass-through and the output must equal
    # log_softmax(x, dim=1).
    raw_id = init_raw_params(kp, zero_fc2=True)
    out_id = jax.block_until_ready(model_forward_pallas(x, pack_params(raw_id)))
    ref_id = jax.nn.log_softmax(x, axis=1)
    assert out_id.shape == x.shape
    err_id = float(jnp.max(jnp.abs(out_id - ref_id)))
    assert err_id < 2e-3, err_id

    # Run 2: perturbed fc_loc[2] weight -> exercises the conv/pool/fc/grid-
    # sample path against a pure-JAX reference of the full forward.
    raw_gen = init_raw_params(kp, zero_fc2=False)
    out_gen = jax.block_until_ready(model_forward_pallas(x, pack_params(raw_gen)))
    ref_gen = ref_forward(x, raw_gen)
    err_gen = float(jnp.max(jnp.abs(out_gen - ref_gen)))
    assert err_gen < 2e-2, err_gen

    print("KERNEL_OK")
</pallas_src>

<mosaic_0001>
module attributes {stable_mosaic.version = 11 : i64} {
  func.func @_fused_stn_kernel(%arg0: i32, %arg1: memref<32x672xf32, #tpu.memory_space<vmem>>, %arg2: memref<1x96x32xf32, #tpu.memory_space<vmem>>, %arg3: memref<672x256xf32, #tpu.memory_space<vmem>>, %arg4: memref<1x256xf32, #tpu.memory_space<vmem>>, %arg5: memref<2x13x32xf32, #tpu.memory_space<vmem>>, %arg6: memref<5x128x256xf32, #tpu.memory_space<vmem>>, %arg7: memref<1x256xf32, #tpu.memory_space<vmem>>, %arg8: memref<4x128x32xf32, #tpu.memory_space<vmem>>, %arg9: memref<1x32xf32, #tpu.memory_space<vmem>>, %arg10: memref<32x6xf32, #tpu.memory_space<vmem>>, %arg11: memref<1x6xf32, #tpu.memory_space<vmem>>, %arg12: memref<2x1024xf32, #tpu.memory_space<vmem>>, %arg13: memref<32x1024xf32, #tpu.memory_space<vmem>>, %arg14: memref<96x1024xf32, #tpu.memory_space<vmem>>, %arg15: memref<3x96xf32, #tpu.memory_space<vmem>>, %arg16: memref<1x3x1024xf32, #tpu.memory_space<vmem>>) attributes {dimension_semantics = [#tpu.dimension_semantics<parallel>], iteration_bounds = array<i64: 2>, scalar_prefetch = 0 : i64, scratch_operands = 0 : i64, tpu.core_type = #tpu.core_type<tc>, window_params = [{transform_indices = @transform_0, window_bounds = array<i64: 32, 672>}, {transform_indices = @transform_1, window_bounds = array<i64: 1, 96, 32>}, {pipeline_mode = #tpu.pipeline_mode<synchronous>, transform_indices = @transform_2, window_bounds = array<i64: 672, 256>}, {pipeline_mode = #tpu.pipeline_mode<synchronous>, transform_indices = @transform_3, window_bounds = array<i64: 1, 256>}, {pipeline_mode = #tpu.pipeline_mode<synchronous>, transform_indices = @transform_4, window_bounds = array<i64: 2, 13, 32>}, {pipeline_mode = #tpu.pipeline_mode<synchronous>, transform_indices = @transform_5, window_bounds = array<i64: 5, 128, 256>}, {pipeline_mode = #tpu.pipeline_mode<synchronous>, transform_indices = @transform_6, window_bounds = array<i64: 1, 256>}, {pipeline_mode = #tpu.pipeline_mode<synchronous>, transform_indices = @transform_7, window_bounds = array<i64: 4, 128, 32>}, {pipeline_mode = #tpu.pipeline_mode<synchronous>, transform_indices = @transform_8, window_bounds = array<i64: 1, 32>}, {pipeline_mode = #tpu.pipeline_mode<synchronous>, transform_indices = @transform_9, window_bounds = array<i64: 32, 6>}, {pipeline_mode = #tpu.pipeline_mode<synchronous>, transform_indices = @transform_10, window_bounds = array<i64: 1, 6>}, {pipeline_mode = #tpu.pipeline_mode<synchronous>, transform_indices = @transform_11, window_bounds = array<i64: 2, 1024>}, {pipeline_mode = #tpu.pipeline_mode<synchronous>, transform_indices = @transform_12, window_bounds = array<i64: 32, 1024>}, {pipeline_mode = #tpu.pipeline_mode<synchronous>, transform_indices = @transform_13, window_bounds = array<i64: 96, 1024>}, {pipeline_mode = #tpu.pipeline_mode<synchronous>, transform_indices = @transform_14, window_bounds = array<i64: 3, 96>}, {transform_indices = @transform_15, window_bounds = array<i64: 1, 3, 1024>}]} {
    %c0 = arith.constant 0 : index
    %c0_0 = arith.constant 0 : index
    %0 = vector.load %arg1[%c0, %c0_0] : memref<32x672xf32, #tpu.memory_space<vmem>>, vector<32x672xf32>
    %c0_1 = arith.constant 0 : index
    %c0_2 = arith.constant 0 : index
    %1 = vector.load %arg3[%c0_1, %c0_2] : memref<672x256xf32, #tpu.memory_space<vmem>>, vector<672x256xf32>
    %cst = arith.constant dense<0.000000e+00> : vector<32x256xf32>
    %2 = tpu.matmul %0, %1, %cst {dimension_numbers = #tpu.dot_dimension_numbers<[1], [0], [0], [1], [0, 0, 1, 1], [], []>} : vector<32x672xf32>, vector<672x256xf32>, vector<32x256xf32> -> vector<32x256xf32>
    %c0_3 = arith.constant 0 : index
    %c0_4 = arith.constant 0 : index
    %3 = vector.load %arg4[%c0_3, %c0_4] : memref<1x256xf32, #tpu.memory_space<vmem>>, vector<1x256xf32>
    %4 = vector.broadcast %3 : vector<1x256xf32> to vector<32x256xf32>
    %5 = arith.addf %2, %4 : vector<32x256xf32>
    %6 = vector.extract_strided_slice %5 {offsets = [0, 0], sizes = [32, 128], strides = [1, 1]} : vector<32x256xf32> to vector<32x128xf32>
    %7 = vector.extract_strided_slice %5 {offsets = [0, 128], sizes = [32, 128], strides = [1, 1]} : vector<32x256xf32> to vector<32x128xf32>
    %8 = arith.maximumf %6, %7 : vector<32x128xf32>
    %c0_5 = arith.constant 0 : index
    %c0_6 = arith.constant 0 : index
    %c0_7 = arith.constant 0 : index
    %9 = vector.load %arg5[%c0_5, %c0_6, %c0_7] : memref<2x13x32xf32, #tpu.memory_space<vmem>>, vector<1x13x32xf32>
    %10 = vector.shape_cast %9 : vector<1x13x32xf32> to vector<13x32xf32>
    %cst_8 = arith.constant dense<0.000000e+00> : vector<13x128xf32>
    %11 = tpu.matmul %10, %8, %cst_8 {dimension_numbers = #tpu.dot_dimension_numbers<[1], [0], [0], [1], [0, 0, 1, 1], [], []>} : vector<13x32xf32>, vector<32x128xf32>, vector<13x128xf32> -> vector<13x128xf32>
    %c1 = arith.constant 1 : index
    %c0_9 = arith.constant 0 : index
    %c0_10 = arith.constant 0 : index
    %12 = vector.load %arg5[%c1, %c0_9, %c0_10] : memref<2x13x32xf32, #tpu.memory_space<vmem>>, vector<1x13x32xf32>
    %13 = vector.shape_cast %12 : vector<1x13x32xf32> to vector<13x32xf32>
    %cst_11 = arith.constant dense<0.000000e+00> : vector<13x128xf32>
    %14 = tpu.matmul %13, %8, %cst_11 {dimension_numbers = #tpu.dot_dimension_numbers<[1], [0], [0], [1], [0, 0, 1, 1], [], []>} : vector<13x32xf32>, vector<32x128xf32>, vector<13x128xf32> -> vector<13x128xf32>
    %15 = arith.maximumf %11, %14 : vector<13x128xf32>
    %cst_12 = arith.constant 0.000000e+00 : f32
    %16 = vector.broadcast %cst_12 : f32 to vector<13x128xf32>
    %17 = arith.maximumf %15, %16 : vector<13x128xf32>
    %cst_13 = arith.constant 0.000000e+00 : f32
    %18 = vector.broadcast %cst_13 : f32 to vector<8x256xf32>
    %c0_14 = arith.constant 0 : index
    %c0_15 = arith.constant 0 : index
    %19 = vector.load %arg7[%c0_14, %c0_15] : memref<1x256xf32, #tpu.memory_space<vmem>>, vector<1x256xf32>
    %20 = vector.broadcast %19 : vector<1x256xf32> to vector<8x256xf32>
    %21 = arith.addf %18, %20 : vector<8x256xf32>
    %22 = vector.extract_strided_slice %17 {offsets = [0, 0], sizes = [8, 128], strides = [1, 1]} : vector<13x128xf32> to vector<8x128xf32>
    %c0_16 = arith.constant 0 : index
    %c0_17 = arith.constant 0 : index
    %c0_18 = arith.constant 0 : index
    %23 = vector.load %arg6[%c0_16, %c0_17, %c0_18] : memref<5x128x256xf32, #tpu.memory_space<vmem>>, vector<1x128x256xf32>
    %24 = vector.shape_cast %23 : vector<1x128x256xf32> to vector<128x256xf32>
    %cst_19 = arith.constant dense<0.000000e+00> : vector<8x256xf32>
    %25 = tpu.matmul %22, %24, %cst_19 {dimension_numbers = #tpu.dot_dimension_numbers<[1], [0], [0], [1], [0, 0, 1, 1], [], []>} : vector<8x128xf32>, vector<128x256xf32>, vector<8x256xf32> -> vector<8x256xf32>
    %26 = arith.addf %21, %25 : vector<8x256xf32>
    %27 = vector.extract_strided_slice %17 {offsets = [1, 0], sizes = [8, 128], strides = [1, 1]} : vector<13x128xf32> to vector<8x128xf32>
    %c1_20 = arith.constant 1 : index
    %c0_21 = arith.constant 0 : index
    %c0_22 = arith.constant 0 : index
    %28 = vector.load %arg6[%c1_20, %c0_21, %c0_22] : memref<5x128x256xf32, #tpu.memory_space<vmem>>, vector<1x128x256xf32>
    %29 = vector.shape_cast %28 : vector<1x128x256xf32> to vector<128x256xf32>
    %cst_23 = arith.constant dense<0.000000e+00> : vector<8x256xf32>
    %30 = tpu.matmul %27, %29, %cst_23 {dimension_numbers = #tpu.dot_dimension_numbers<[1], [0], [0], [1], [0, 0, 1, 1], [], []>} : vector<8x128xf32>, vector<128x256xf32>, vector<8x256xf32> -> vector<8x256xf32>
    %31 = arith.addf %26, %30 : vector<8x256xf32>
    %32 = vector.extract_strided_slice %17 {offsets = [2, 0], sizes = [8, 128], strides = [1, 1]} : vector<13x128xf32> to vector<8x128xf32>
    %c2 = arith.constant 2 : index
    %c0_24 = arith.constant 0 : index
    %c0_25 = arith.constant 0 : index
    %33 = vector.load %arg6[%c2, %c0_24, %c0_25] : memref<5x128x256xf32, #tpu.memory_space<vmem>>, vector<1x128x256xf32>
    %34 = vector.shape_cast %33 : vector<1x128x256xf32> to vector<128x256xf32>
    %cst_26 = arith.constant dense<0.000000e+00> : vector<8x256xf32>
    %35 = tpu.matmul %32, %34, %cst_26 {dimension_numbers = #tpu.dot_dimension_numbers<[1], [0], [0], [1], [0, 0, 1, 1], [], []>} : vector<8x128xf32>, vector<128x256xf32>, vector<8x256xf32> -> vector<8x256xf32>
    %36 = arith.addf %31, %35 : vector<8x256xf32>
    %37 = vector.extract_strided_slice %17 {offsets = [3, 0], sizes = [8, 128], strides = [1, 1]} : vector<13x128xf32> to vector<8x128xf32>
    %c3 = arith.constant 3 : index
    %c0_27 = arith.constant 0 : index
    %c0_28 = arith.constant 0 : index
    %38 = vector.load %arg6[%c3, %c0_27, %c0_28] : memref<5x128x256xf32, #tpu.memory_space<vmem>>, vector<1x128x256xf32>
    %39 = vector.shape_cast %38 : vector<1x128x256xf32> to vector<128x256xf32>
    %cst_29 = arith.constant dense<0.000000e+00> : vector<8x256xf32>
    %40 = tpu.matmul %37, %39, %cst_29 {dimension_numbers = #tpu.dot_dimension_numbers<[1], [0], [0], [1], [0, 0, 1, 1], [], []>} : vector<8x128xf32>, vector<128x256xf32>, vector<8x256xf32> -> vector<8x256xf32>
    %41 = arith.addf %36, %40 : vector<8x256xf32>
    %42 = vector.extract_strided_slice %17 {offsets = [4, 0], sizes = [8, 128], strides = [1, 1]} : vector<13x128xf32> to vector<8x128xf32>
    %c4 = arith.constant 4 : index
    %c0_30 = arith.constant 0 : index
    %c0_31 = arith.constant 0 : index
    %43 = vector.load %arg6[%c4, %c0_30, %c0_31] : memref<5x128x256xf32, #tpu.memory_space<vmem>>, vector<1x128x256xf32>
    %44 = vector.shape_cast %43 : vector<1x128x256xf32> to vector<128x256xf32>
    %cst_32 = arith.constant dense<0.000000e+00> : vector<8x256xf32>
    %45 = tpu.matmul %42, %44, %cst_32 {dimension_numbers = #tpu.dot_dimension_numbers<[1], [0], [0], [1], [0, 0, 1, 1], [], []>} : vector<8x128xf32>, vector<128x256xf32>, vector<8x256xf32> -> vector<8x256xf32>
    %46 = arith.addf %41, %45 : vector<8x256xf32>
    %47 = vector.extract_strided_slice %46 {offsets = [0, 0], sizes = [8, 128], strides = [1, 1]} : vector<8x256xf32> to vector<8x128xf32>
    %48 = vector.extract_strided_slice %46 {offsets = [0, 128], sizes = [8, 128], strides = [1, 1]} : vector<8x256xf32> to vector<8x128xf32>
    %49 = arith.maximumf %47, %48 : vector<8x128xf32>
    %cst_33 = arith.constant 0.000000e+00 : f32
    %50 = vector.broadcast %cst_33 : f32 to vector<1x32xf32>
    %c0_34 = arith.constant 0 : index
    %c0_35 = arith.constant 0 : index
    %51 = vector.load %arg9[%c0_34, %c0_35] : memref<1x32xf32, #tpu.memory_space<vmem>>, vector<1x32xf32>
    %52 = arith.addf %50, %51 : vector<1x32xf32>
    %53 = vector.extract_strided_slice %49 {offsets = [0, 0], sizes = [1, 128], strides = [1, 1]} : vector<8x128xf32> to vector<1x128xf32>
    %54 = vector.extract_strided_slice %49 {offsets = [1, 0], sizes = [1, 128], strides = [1, 1]} : vector<8x128xf32> to vector<1x128xf32>
    %55 = arith.maximumf %53, %54 : vector<1x128xf32>
    %cst_36 = arith.constant 0.000000e+00 : f32
    %56 = vector.broadcast %cst_36 : f32 to vector<1x128xf32>
    %57 = arith.maximumf %55, %56 : vector<1x128xf32>
    %c0_37 = arith.constant 0 : index
    %c0_38 = arith.constant 0 : index
    %c0_39 = arith.constant 0 : index
    %58 = vector.load %arg8[%c0_37, %c0_38, %c0_39] : memref<4x128x32xf32, #tpu.memory_space<vmem>>, vector<1x128x32xf32>
    %59 = vector.shape_cast %58 : vector<1x128x32xf32> to vector<128x32xf32>
    %cst_40 = arith.constant dense<0.000000e+00> : vector<1x32xf32>
    %60 = tpu.matmul %57, %59, %cst_40 {dimension_numbers = #tpu.dot_dimension_numbers<[1], [0], [0], [1], [0, 0, 1, 1], [], []>} : vector<1x128xf32>, vector<128x32xf32>, vector<1x32xf32> -> vector<1x32xf32>
    %61 = arith.addf %52, %60 : vector<1x32xf32>
    %62 = vector.extract_strided_slice %49 {offsets = [2, 0], sizes = [1, 128], strides = [1, 1]} : vector<8x128xf32> to vector<1x128xf32>
    %63 = vector.extract_strided_slice %49 {offsets = [3, 0], sizes = [1, 128], strides = [1, 1]} : vector<8x128xf32> to vector<1x128xf32>
    %64 = arith.maximumf %62, %63 : vector<1x128xf32>
    %cst_41 = arith.constant 0.000000e+00 : f32
    %65 = vector.broadcast %cst_41 : f32 to vector<1x128xf32>
    %66 = arith.maximumf %64, %65 : vector<1x128xf32>
    %c1_42 = arith.constant 1 : index
    %c0_43 = arith.constant 0 : index
    %c0_44 = arith.constant 0 : index
    %67 = vector.load %arg8[%c1_42, %c0_43, %c0_44] : memref<4x128x32xf32, #tpu.memory_space<vmem>>, vector<1x128x32xf32>
    %68 = vector.shape_cast %67 : vector<1x128x32xf32> to vector<128x32xf32>
    %cst_45 = arith.constant dense<0.000000e+00> : vector<1x32xf32>
    %69 = tpu.matmul %66, %68, %cst_45 {dimension_numbers = #tpu.dot_dimension_numbers<[1], [0], [0], [1], [0, 0, 1, 1], [], []>} : vector<1x128xf32>, vector<128x32xf32>, vector<1x32xf32> -> vector<1x32xf32>
    %70 = arith.addf %61, %69 : vector<1x32xf32>
    %71 = vector.extract_strided_slice %49 {offsets = [4, 0], sizes = [1, 128], strides = [1, 1]} : vector<8x128xf32> to vector<1x128xf32>
    %72 = vector.extract_strided_slice %49 {offsets = [5, 0], sizes = [1, 128], strides = [1, 1]} : vector<8x128xf32> to vector<1x128xf32>
    %73 = arith.maximumf %71, %72 : vector<1x128xf32>
    %cst_46 = arith.constant 0.000000e+00 : f32
    %74 = vector.broadcast %cst_46 : f32 to vector<1x128xf32>
    %75 = arith.maximumf %73, %74 : vector<1x128xf32>
    %c2_47 = arith.constant 2 : index
    %c0_48 = arith.constant 0 : index
    %c0_49 = arith.constant 0 : index
    %76 = vector.load %arg8[%c2_47, %c0_48, %c0_49] : memref<4x128x32xf32, #tpu.memory_space<vmem>>, vector<1x128x32xf32>
    %77 = vector.shape_cast %76 : vector<1x128x32xf32> to vector<128x32xf32>
    %cst_50 = arith.constant dense<0.000000e+00> : vector<1x32xf32>
    %78 = tpu.matmul %75, %77, %cst_50 {dimension_numbers = #tpu.dot_dimension_numbers<[1], [0], [0], [1], [0, 0, 1, 1], [], []>} : vector<1x128xf32>, vector<128x32xf32>, vector<1x32xf32> -> vector<1x32xf32>
    %79 = arith.addf %70, %78 : vector<1x32xf32>
    %80 = vector.extract_strided_slice %49 {offsets = [6, 0], sizes = [1, 128], strides = [1, 1]} : vector<8x128xf32> to vector<1x128xf32>
    %81 = vector.extract_strided_slice %49 {offsets = [7, 0], sizes = [1, 128], strides = [1, 1]} : vector<8x128xf32> to vector<1x128xf32>
    %82 = arith.maximumf %80, %81 : vector<1x128xf32>
    %cst_51 = arith.constant 0.000000e+00 : f32
    %83 = vector.broadcast %cst_51 : f32 to vector<1x128xf32>
    %84 = arith.maximumf %82, %83 : vector<1x128xf32>
    %c3_52 = arith.constant 3 : index
    %c0_53 = arith.constant 0 : index
    %c0_54 = arith.constant 0 : index
    %85 = vector.load %arg8[%c3_52, %c0_53, %c0_54] : memref<4x128x32xf32, #tpu.memory_space<vmem>>, vector<1x128x32xf32>
    %86 = vector.shape_cast %85 : vector<1x128x32xf32> to vector<128x32xf32>
    %cst_55 = arith.constant dense<0.000000e+00> : vector<1x32xf32>
    %87 = tpu.matmul %84, %86, %cst_55 {dimension_numbers = #tpu.dot_dimension_numbers<[1], [0], [0], [1], [0, 0, 1, 1], [], []>} : vector<1x128xf32>, vector<128x32xf32>, vector<1x32xf32> -> vector<1x32xf32>
    %88 = arith.addf %79, %87 : vector<1x32xf32>
    %cst_56 = arith.constant 0.000000e+00 : f32
    %89 = vector.broadcast %cst_56 : f32 to vector<1x32xf32>
    %90 = arith.maximumf %88, %89 : vector<1x32xf32>
    %c0_57 = arith.constant 0 : index
    %c0_58 = arith.constant 0 : index
    %91 = vector.load %arg10[%c0_57, %c0_58] : memref<32x6xf32, #tpu.memory_space<vmem>>, vector<32x6xf32>
    %cst_59 = arith.constant dense<0.000000e+00> : vector<1x6xf32>
    %92 = tpu.matmul %90, %91, %cst_59 {dimension_numbers = #tpu.dot_dimension_numbers<[1], [0], [0], [1], [0, 0, 1, 1], [], []>} : vector<1x32xf32>, vector<32x6xf32>, vector<1x6xf32> -> vector<1x6xf32>
    %c0_60 = arith.constant 0 : index
    %c0_61 = arith.constant 0 : index
    %93 = vector.load %arg11[%c0_60, %c0_61] : memref<1x6xf32, #tpu.memory_space<vmem>>, vector<1x6xf32>
    %94 = arith.addf %92, %93 : vector<1x6xf32>
    %c0_62 = arith.constant 0 : index
    %c0_63 = arith.constant 0 : index
    %95 = vector.load %arg12[%c0_62, %c0_63] : memref<2x1024xf32, #tpu.memory_space<vmem>>, vector<1x1024xf32>
    %c1_64 = arith.constant 1 : index
    %c0_65 = arith.constant 0 : index
    %96 = vector.load %arg12[%c1_64, %c0_65] : memref<2x1024xf32, #tpu.memory_space<vmem>>, vector<1x1024xf32>
    %97 = vector.extract_strided_slice %94 {offsets = [0, 0], sizes = [1, 1], strides = [1, 1]} : vector<1x6xf32> to vector<1x1xf32>
    %98 = vector.broadcast %97 : vector<1x1xf32> to vector<1x1024xf32>
    %99 = arith.mulf %98, %95 : vector<1x1024xf32>
    %100 = vector.extract_strided_slice %94 {offsets = [0, 1], sizes = [1, 1], strides = [1, 1]} : vector<1x6xf32> to vector<1x1xf32>
    %101 = vector.broadcast %100 : vector<1x1xf32> to vector<1x1024xf32>
    %102 = arith.mulf %101, %96 : vector<1x1024xf32>
    %103 = arith.addf %99, %102 : vector<1x1024xf32>
    %104 = vector.extract_strided_slice %94 {offsets = [0, 2], sizes = [1, 1], strides = [1, 1]} : vector<1x6xf32> to vector<1x1xf32>
    %105 = vector.broadcast %104 : vector<1x1xf32> to vector<1x1024xf32>
    %106 = arith.addf %103, %105 : vector<1x1024xf32>
    %cst_66 = arith.constant 1.000000e+00 : f32
    %107 = vector.broadcast %cst_66 : f32 to vector<1x1024xf32>
    %108 = arith.addf %106, %107 : vector<1x1024xf32>
    %cst_67 = arith.constant 1.550000e+01 : f32
    %109 = vector.broadcast %cst_67 : f32 to vector<1x1024xf32>
    %110 = arith.mulf %108, %109 : vector<1x1024xf32>
    %111 = vector.extract_strided_slice %94 {offsets = [0, 3], sizes = [1, 1], strides = [1, 1]} : vector<1x6xf32> to vector<1x1xf32>
    %112 = vector.broadcast %111 : vector<1x1xf32> to vector<1x1024xf32>
    %113 = arith.mulf %112, %95 : vector<1x1024xf32>
    %114 = vector.extract_strided_slice %94 {offsets = [0, 4], sizes = [1, 1], strides = [1, 1]} : vector<1x6xf32> to vector<1x1xf32>
    %115 = vector.broadcast %114 : vector<1x1xf32> to vector<1x1024xf32>
    %116 = arith.mulf %115, %96 : vector<1x1024xf32>
    %117 = arith.addf %113, %116 : vector<1x1024xf32>
    %118 = vector.extract_strided_slice %94 {offsets = [0, 5], sizes = [1, 1], strides = [1, 1]} : vector<1x6xf32> to vector<1x1xf32>
    %119 = vector.broadcast %118 : vector<1x1xf32> to vector<1x1024xf32>
    %120 = arith.addf %117, %119 : vector<1x1024xf32>
    %cst_68 = arith.constant 1.000000e+00 : f32
    %121 = vector.broadcast %cst_68 : f32 to vector<1x1024xf32>
    %122 = arith.addf %120, %121 : vector<1x1024xf32>
    %cst_69 = arith.constant 1.550000e+01 : f32
    %123 = vector.broadcast %cst_69 : f32 to vector<1x1024xf32>
    %124 = arith.mulf %122, %123 : vector<1x1024xf32>
    %c0_70 = arith.constant 0 : index
    %c0_71 = arith.constant 0 : index
    %125 = vector.load %arg13[%c0_70, %c0_71] : memref<32x1024xf32, #tpu.memory_space<vmem>>, vector<32x1024xf32>
    %126 = vector.broadcast %110 : vector<1x1024xf32> to vector<32x1024xf32>
    %127 = arith.subf %126, %125 : vector<32x1024xf32>
    %128 = math.absf %127 : vector<32x1024xf32>
    %cst_72 = arith.constant 1.000000e+00 : f32
    %129 = vector.broadcast %cst_72 : f32 to vector<32x1024xf32>
    %130 = arith.subf %129, %128 : vector<32x1024xf32>
    %cst_73 = arith.constant 0.000000e+00 : f32
    %131 = vector.broadcast %cst_73 : f32 to vector<32x1024xf32>
    %132 = arith.maximumf %131, %130 : vector<32x1024xf32>
    %c0_74 = arith.constant 0 : index
    %c0_75 = arith.constant 0 : index
    %133 = vector.load %arg14[%c0_74, %c0_75] : memref<96x1024xf32, #tpu.memory_space<vmem>>, vector<96x1024xf32>
    %134 = vector.broadcast %124 : vector<1x1024xf32> to vector<96x1024xf32>
    %135 = arith.subf %134, %133 : vector<96x1024xf32>
    %136 = math.absf %135 : vector<96x1024xf32>
    %cst_76 = arith.constant 1.000000e+00 : f32
    %137 = vector.broadcast %cst_76 : f32 to vector<96x1024xf32>
    %138 = arith.subf %137, %136 : vector<96x1024xf32>
    %cst_77 = arith.constant 0.000000e+00 : f32
    %139 = vector.broadcast %cst_77 : f32 to vector<96x1024xf32>
    %140 = arith.maximumf %139, %138 : vector<96x1024xf32>
    %c0_78 = arith.constant 0 : index
    %c0_79 = arith.constant 0 : index
    %c0_80 = arith.constant 0 : index
    %141 = vector.load %arg2[%c0_78, %c0_79, %c0_80] : memref<1x96x32xf32, #tpu.memory_space<vmem>>, vector<1x96x32xf32>
    %142 = vector.shape_cast %141 : vector<1x96x32xf32> to vector<96x32xf32>
    %cst_81 = arith.constant dense<0.000000e+00> : vector<96x1024xf32>
    %143 = tpu.matmul %142, %132, %cst_81 {dimension_numbers = #tpu.dot_dimension_numbers<[1], [0], [0], [1], [0, 0, 1, 1], [], []>} : vector<96x32xf32>, vector<32x1024xf32>, vector<96x1024xf32> -> vector<96x1024xf32>
    %c0_82 = arith.constant 0 : index
    %c0_83 = arith.constant 0 : index
    %144 = vector.load %arg15[%c0_82, %c0_83] : memref<3x96xf32, #tpu.memory_space<vmem>>, vector<3x96xf32>
    %145 = arith.mulf %143, %140 : vector<96x1024xf32>
    %cst_84 = arith.constant dense<0.000000e+00> : vector<3x1024xf32>
    %146 = tpu.matmul %144, %145, %cst_84 {dimension_numbers = #tpu.dot_dimension_numbers<[1], [0], [0], [1], [0, 0, 1, 1], [], []>} : vector<3x96xf32>, vector<96x1024xf32>, vector<3x1024xf32> -> vector<3x1024xf32>
    %cst_85 = arith.constant dense<0xFF800000> : vector<1024xf32>
    %147 = vector.multi_reduction <maximumf>, %146, %cst_85 [0] : vector<3x1024xf32> to vector<1024xf32>
    %148 = vector.shape_cast %147 : vector<1024xf32> to vector<1x1024xf32>
    %149 = vector.broadcast %148 : vector<1x1024xf32> to vector<3x1024xf32>
    %150 = arith.subf %146, %149 : vector<3x1024xf32>
    %151 = math.exp %150 : vector<3x1024xf32>
    %cst_86 = arith.constant dense<0.000000e+00> : vector<1024xf32>
    %152 = vector.multi_reduction <add>, %151, %cst_86 [0] : vector<3x1024xf32> to vector<1024xf32>
    %153 = vector.shape_cast %152 : vector<1024xf32> to vector<1x1024xf32>
    %154 = math.log %153 : vector<1x1024xf32>
    %155 = vector.broadcast %154 : vector<1x1024xf32> to vector<3x1024xf32>
    %156 = arith.subf %150, %155 : vector<3x1024xf32>
    %c0_87 = arith.constant 0 : index
    %c0_88 = arith.constant 0 : index
    %c0_89 = arith.constant 0 : index
    %157 = vector.load %arg16[%c0_87, %c0_88, %c0_89] : memref<1x3x1024xf32, #tpu.memory_space<vmem>>, vector<1x3x1024xf32>
    %158 = vector.shape_cast %157 : vector<1x3x1024xf32> to vector<3x1024xf32>
    %159 = vector.shape_cast %156 : vector<3x1024xf32> to vector<1x3x1024xf32>
    tpu.vector_store %arg16[%c0_87, %c0_88, %c0_89], %159 {strides = array<i32>} : memref<1x3x1024xf32, #tpu.memory_space<vmem>>, vector<1x3x1024xf32>,
    return
  }
  func.func @transform_0(%arg0: i32) -> (i32, i32) {
    %c0_i32 = arith.constant 0 : i32
    %c0_i32_0 = arith.constant 0 : i32
    return %arg0, %c0_i32 : i32, i32
  }
  func.func @transform_1(%arg0: i32) -> (i32, i32, i32) {
    %c0_i32 = arith.constant 0 : i32
    %c0_i32_0 = arith.constant 0 : i32
    %c0_i32_1 = arith.constant 0 : i32
    return %arg0, %c0_i32, %c0_i32_0 : i32, i32, i32
  }
  func.func @transform_2(%arg0: i32) -> (i32, i32) {
    %c0_i32 = arith.constant 0 : i32
    %c0_i32_0 = arith.constant 0 : i32
    %c0_i32_1 = arith.constant 0 : i32
    return %c0_i32, %c0_i32_0 : i32, i32
  }
  func.func @transform_3(%arg0: i32) -> (i32, i32) {
    %c0_i32 = arith.constant 0 : i32
    %c0_i32_0 = arith.constant 0 : i32
    %c0_i32_1 = arith.constant 0 : i32
    return %c0_i32, %c0_i32_0 : i32, i32
  }
  func.func @transform_4(%arg0: i32) -> (i32, i32, i32) {
    %c0_i32 = arith.constant 0 : i32
    %c0_i32_0 = arith.constant 0 : i32
    %c0_i32_1 = arith.constant 0 : i32
    %c0_i32_2 = arith.constant 0 : i32
    return %c0_i32, %c0_i32_0, %c0_i32_1 : i32, i32, i32
  }
  func.func @transform_5(%arg0: i32) -> (i32, i32, i32) {
    %c0_i32 = arith.constant 0 : i32
    %c0_i32_0 = arith.constant 0 : i32
    %c0_i32_1 = arith.constant 0 : i32
    %c0_i32_2 = arith.constant 0 : i32
    return %c0_i32, %c0_i32_0, %c0_i32_1 : i32, i32, i32
  }
  func.func @transform_6(%arg0: i32) -> (i32, i32) {
    %c0_i32 = arith.constant 0 : i32
    %c0_i32_0 = arith.constant 0 : i32
    %c0_i32_1 = arith.constant 0 : i32
    return %c0_i32, %c0_i32_0 : i32, i32
  }
  func.func @transform_7(%arg0: i32) -> (i32, i32, i32) {
    %c0_i32 = arith.constant 0 : i32
    %c0_i32_0 = arith.constant 0 : i32
    %c0_i32_1 = arith.constant 0 : i32
    %c0_i32_2 = arith.constant 0 : i32
    return %c0_i32, %c0_i32_0, %c0_i32_1 : i32, i32, i32
  }
  func.func @transform_8(%arg0: i32) -> (i32, i32) {
    %c0_i32 = arith.constant 0 : i32
    %c0_i32_0 = arith.constant 0 : i32
    %c0_i32_1 = arith.constant 0 : i32
    return %c0_i32, %c0_i32_0 : i32, i32
  }
  func.func @transform_9(%arg0: i32) -> (i32, i32) {
    %c0_i32 = arith.constant 0 : i32
    %c0_i32_0 = arith.constant 0 : i32
    %c0_i32_1 = arith.constant 0 : i32
    return %c0_i32, %c0_i32_0 : i32, i32
  }
  func.func @transform_10(%arg0: i32) -> (i32, i32) {
    %c0_i32 = arith.constant 0 : i32
    %c0_i32_0 = arith.constant 0 : i32
    %c0_i32_1 = arith.constant 0 : i32
    return %c0_i32, %c0_i32_0 : i32, i32
  }
  func.func @transform_11(%arg0: i32) -> (i32, i32) {
    %c0_i32 = arith.constant 0 : i32
    %c0_i32_0 = arith.constant 0 : i32
    %c0_i32_1 = arith.constant 0 : i32
    return %c0_i32, %c0_i32_0 : i32, i32
  }
  func.func @transform_12(%arg0: i32) -> (i32, i32) {
    %c0_i32 = arith.constant 0 : i32
    %c0_i32_0 = arith.constant 0 : i32
    %c0_i32_1 = arith.constant 0 : i32
    return %c0_i32, %c0_i32_0 : i32, i32
  }
  func.func @transform_13(%arg0: i32) -> (i32, i32) {
    %c0_i32 = arith.constant 0 : i32
    %c0_i32_0 = arith.constant 0 : i32
    %c0_i32_1 = arith.constant 0 : i32
    return %c0_i32, %c0_i32_0 : i32, i32
  }
  func.func @transform_14(%arg0: i32) -> (i32, i32) {
    %c0_i32 = arith.constant 0 : i32
    %c0_i32_0 = arith.constant 0 : i32
    %c0_i32_1 = arith.constant 0 : i32
    return %c0_i32, %c0_i32_0 : i32, i32
  }
  func.func @transform_15(%arg0: i32) -> (i32, i32, i32) {
    %c0_i32 = arith.constant 0 : i32
    %c0_i32_0 = arith.constant 0 : i32
    %c0_i32_1 = arith.constant 0 : i32
    return %arg0, %c0_i32, %c0_i32_0 : i32, i32, i32
  }
}

</mosaic_0001>

<bundles_post_ra>
// kernel: model_forward_pallas.1
= control target key start
LH: loop header
LB: loop body
LE: loop exit
PB: predicated region body
PF: predicated region fallthrough
CT: control target
= control target key end

     0   :  { %s4991_s18 = smov 0   ;;  %s7711_s0 = inlined_call_operand.vmem [shape: f32[64,672], index: 0, kind: input, shape index: {}]   ;;  %s7712_s1 = inlined_call_operand.vmem [shape: f32[2,96,32], index: 1, kind: input, shape index: {}]   ;;  %s7713_s2 = inlined_call_operand.vmem [shape: f32[672,256], index: 2, kind: input, shape index: {}]   ;;  %s7714_s3 = inlined_call_operand.vmem [shape: f32[1,256], index: 3, kind: input, shape index: {}]   ;;  %s7715_s4 = inlined_call_operand.vmem [shape: f32[2,13,32], index: 4, kind: input, shape index: {}]   ;;  %s7716_s5 = inlined_call_operand.vmem [shape: f32[5,128,256], index: 5, kind: input, shape index: {}]   ;;  %s7717_s6 = inlined_call_operand.vmem [shape: f32[1,256], index: 6, kind: input, shape index: {}]   ;;  %s7718_s7 = inlined_call_operand.vmem [shape: f32[4,128,32], index: 7, kind: input, shape index: {}]   ;;  %s7719_s8 = inlined_call_operand.vmem [shape: f32[1,32], index: 8, kind: input, shape index: {}]   ;;  %s7720_s9 = inlined_call_operand.vmem [shape: f32[32,6], index: 9, kind: input, shape index: {}]   ;;  %s7721_s10 = inlined_call_operand.vmem [shape: f32[1,6], index: 10, kind: input, shape index: {}]   ;;  %s7722_s11 = inlined_call_operand.vmem [shape: f32[2,1024], index: 11, kind: input, shape index: {}]   ;;  %s7723_s12 = inlined_call_operand.vmem [shape: f32[32,1024], index: 12, kind: input, shape index: {}]   ;;  %s7724_s13 = inlined_call_operand.vmem [shape: f32[96,1024], index: 13, kind: input, shape index: {}]   ;;  %s7725_s14 = inlined_call_operand.vmem [shape: f32[3,96], index: 14, kind: input, shape index: {}]   ;;  %s7726_s15 = inlined_call_operand.vmem [shape: f32[2,3,1024], index: 15, kind: output, shape index: {}]  }
   0x1 LB: > { %s4997_s19 = sadd.s32 4294967295, %s4901_s18   ;;  %p4332_p0 = scmp.ge.s32.totalorder %s4901_s18, 1  ;;  %s4901_s18 = sphi %s4991_s18, %s25_s18  }
   0x2   : > { %p449_p1 = scmp.lt.s32.totalorder %s4901_s18, 3 }
   0x4   : > { %p450_p2 = pnand %p4332_p0, %p449_p1 }
   0x6   : > { %453 = sbr.rel (%p450_p2) target bundleno = 1993 (0x7c9), region = 80 }
   0xb   : > { %v575_v0 = vld [vmem:[%s7713_s2 + $0xf8] sm:$0xff]  ;;  %v574_v1 = vld [vmem:[%s7713_s2 + $0xf0] sm:$0xff]  ;;  %v573_v2 = vld [vmem:[%s7713_s2 + $0xe8] sm:$0xff]  ;;  %s4333_s29 = sshll.u32 %s4997_s19, 2  ;;  %vm724_vm0 = vcmask 261120   ;;  %vm1333_vm1 = vcmask 1046528  }
   0xc   : > { %737 = vmatprep.subr.mxu0 %v575_v0  ;;  %v639_v3 = vld [vmem:[%s7713_s2 + $0x2f8] sm:$0xff]  ;;  %v572_v4 = vld [vmem:[%s7713_s2 + $0xe0] sm:$0xff]  ;;  %v638_v5 = vld [vmem:[%s7713_s2 + $0x2f0] sm:$0xff]  ;;  %p5289_p3 = scmp.lt.s32.totalorder %s4333_s29, 7  ;;  %vm1444_vm2 = vcmask 1045504   ;;  %vm1555_vm3 = vcmask 1044480  }
   0xd   : > { %738 = vmatpush1.msra.mxu0 %v574_v1  ;;  %826 = vmatprep.subr.mxu1 %v639_v3  ;;  %v571_v6 = vld [vmem:[%s7713_s2 + $0xd8] sm:$0xff]  ;;  %v637_v7 = vld [vmem:[%s7713_s2 + $0x2e8] sm:$0xff]  ;;  %v570_v8 = vld [vmem:[%s7713_s2 + $0xd0] sm:$0xff]  ;;  %vm1666_vm4 = vcmask 1043456   ;;  %vm4904_vm5 = vmmov 0   ;;  %p510_p4 = scmp.lt.s32.totalorder %s4997_s19, 1 }
   0xe   : > { %739 = vmatprep.subr.mxu0 %v573_v2  ;;  %827 = vmatpush1.msra.mxu1 %v638_v5  ;;  %v636_v9 = vld [vmem:[%s7713_s2 + $0x2e0] sm:$0xff]  ;;  %v635_v10 = vld [vmem:[%s7713_s2 + $0x2d8] sm:$0xff]  ;;  %v569_v11 = vld [vmem:[%s7713_s2 + $0xc8] sm:$0xff]  ;;  %s7988_s29 = smov (!%p5289_p3, %s4333_s29), 7  ;;  %vm3792_vm6 = vcmask 785408   ;;  %vm4080_vm7 = vcmask 1042432  }
   0xf   : > { %740 = vmatpush1.msra.mxu0 %v572_v4  ;;  %828 = vmatprep.subr.mxu1 %v637_v7  ;;  %v634_v12 = vld [vmem:[%s7713_s2 + $0x2d0] sm:$0xff]  ;;  %v568_v13 = vld [vmem:[%s7713_s2 + $0xc0] sm:$0xff]  ;;  %v633_v14 = vld [vmem:[%s7713_s2 + $0x2c8] sm:$0xff]  ;;  %s4839_s27 = smul.u32 48, %s7988_s29  ;;  %s7990_s19 = smov (!%p510_p4, %s4997_s19), 1 }
  0x10   : > { %741 = vmatprep.subr.mxu0 %v571_v6  ;;  %829 = vmatpush1.msra.mxu1 %v636_v9  ;;  %v567_v15 = vld [vmem:[%s7713_s2 + $0xb8] sm:$0xff]  ;;  %v632_v16 = vld [vmem:[%s7713_s2 + $0x2c0] sm:$0xff]  ;;  %v566_v17 = vld [vmem:[%s7713_s2 + $0xb0] sm:$0xff]  ;;  %s4840_s25 = smul.u32 96, %s7990_s19  ;;  %s4580_s29 = sshll.u32 %s7990_s19, 5 }
  0x11   : > { %742 = vmatpush1.msra.mxu0 %v570_v8  ;;  %830 = vmatprep.subr.mxu1 %v635_v10  ;;  %v631_v18 = vld [vmem:[%s7713_s2 + $0x2b8] sm:$0xff]  ;;  %v565_v19 = vld [vmem:[%s7713_s2 + $0xa8] sm:$0xff]  ;;  %v630_v20 = vld [vmem:[%s7713_s2 + $0x2b0] sm:$0xff]  ;;  %s5375_s22 = scalar_lea.vmem %s7711_s0, %s4839_s27 }
  0x12   : > { %743 = vmatprep.subr.mxu0 %v569_v11  ;;  %831 = vmatpush1.msra.mxu1 %v634_v12  ;;  %v564_v21 = vld [vmem:[%s7713_s2 + $0xa0] sm:$0xff]  ;;  %v629_v22 = vld [vmem:[%s7713_s2 + $0x2a8] sm:$0xff]  ;;  %v563_v23 = vld [vmem:[%s7713_s2 + $0x98] sm:$0xff] }
  0x13   : > { %744 = vmatpush1.msra.mxu0 %v568_v13  ;;  %832 = vmatprep.subr.mxu1 %v633_v14  ;;  %v628_v24 = vld [vmem:[%s7713_s2 + $0x2a0] sm:$0xff]  ;;  %v562_v25 = vld [vmem:[%s7713_s2 + $0x90] sm:$0xff]  ;;  %v627_v26 = vld [vmem:[%s7713_s2 + $0x298] sm:$0xff] }
  0x14   : > { %745 = vmatprep.subr.mxu0 %v567_v15  ;;  %833 = vmatpush1.msra.mxu1 %v632_v16  ;;  %v561_v27 = vld [vmem:[%s7713_s2 + $0x88] sm:$0xff]  ;;  %v626_v28 = vld [vmem:[%s7713_s2 + $0x290] sm:$0xff]  ;;  %v560_v29 = vld [vmem:[%s7713_s2 + $0x80] sm:$0xff] }
  0x15   : > { %746 = vmatpush1.msra.mxu0 %v566_v17  ;;  %834 = vmatprep.subr.mxu1 %v631_v18  ;;  %v625_v30 = vld [vmem:[%s7713_s2 + $0x288] sm:$0xff]  ;;  %v559_v31 = vld [vmem:[%s7713_s2 + $0x78] sm:$0xff]  ;;  %v624_v32 = vld [vmem:[%s7713_s2 + $0x280] sm:$0xff] }
  0x16   : > { %747 = vmatprep.subr.mxu0 %v565_v19  ;;  %835 = vmatpush1.msra.mxu1 %v630_v20  ;;  %v558_v33 = vld [vmem:[%s7713_s2 + $0x70] sm:$0xff]  ;;  %v623_v34 = vld [vmem:[%s7713_s2 + $0x278] sm:$0xff]  ;;  %v557_v35 = vld [vmem:[%s7713_s2 + $0x68] sm:$0xff] }
  0x17   : > { %748 = vmatpush1.msra.mxu0 %v564_v21  ;;  %836 = vmatprep.subr.mxu1 %v629_v22  ;;  %v622_v36 = vld [vmem:[%s7713_s2 + $0x270] sm:$0xff]  ;;  %v556_v37 = vld [vmem:[%s7713_s2 + $0x60] sm:$0xff]  ;;  %v621_v38 = vld [vmem:[%s7713_s2 + $0x268] sm:$0xff] }
  0x18   : > { %749 = vmatprep.subr.mxu0 %v563_v23  ;;  %837 = vmatpush1.msra.mxu1 %v628_v24  ;;  %v555_v39 = vld [vmem:[%s7713_s2 + $0x58] sm:$0xff]  ;;  %v620_v40 = vld [vmem:[%s7713_s2 + $0x260] sm:$0xff]  ;;  %v554_v41 = vld [vmem:[%s7713_s2 + $0x50] sm:$0xff] }
  0x19   : > { %750 = vmatpush1.msra.mxu0 %v562_v25  ;;  %838 = vmatprep.subr.mxu1 %v627_v26  ;;  %v619_v42 = vld [vmem:[%s7713_s2 + $0x258] sm:$0xff]  ;;  %v553_v43 = vld [vmem:[%s7713_s2 + $0x48] sm:$0xff]  ;;  %v618_v44 = vld [vmem:[%s7713_s2 + $0x250] sm:$0xff] }
  0x1a   : > { %751 = vmatprep.subr.mxu0 %v561_v27  ;;  %839 = vmatpush1.msra.mxu1 %v626_v28  ;;  %v552_v45 = vld [vmem:[%s7713_s2 + $0x40] sm:$0xff]  ;;  %v617_v46 = vld [vmem:[%s7713_s2 + $0x248] sm:$0xff]  ;;  %v551_v47 = vld [vmem:[%s7713_s2 + $0x38] sm:$0xff] }
  0x1b   : > { %752 = vmatpush1.msra.mxu0 %v560_v29  ;;  %840 = vmatprep.subr.mxu1 %v625_v30  ;;  %v616_v48 = vld [vmem:[%s7713_s2 + $0x240] sm:$0xff]  ;;  %v550_v49 = vld [vmem:[%s7713_s2 + $0x30] sm:$0xff]  ;;  %v615_v50 = vld [vmem:[%s7713_s2 + $0x238] sm:$0xff] }
  0x1c   : > { %753 = vmatprep.subr.mxu0 %v559_v31  ;;  %841 = vmatpush1.msra.mxu1 %v624_v32  ;;  %v549_v51 = vld [vmem:[%s7713_s2 + $0x28] sm:$0xff]  ;;  %v614_v52 = vld [vmem:[%s7713_s2 + $0x230] sm:$0xff]  ;;  %v548_v53 = vld [vmem:[%s7713_s2 + $0x20] sm:$0xff] }
  0x1d   : > { %754 = vmatpush1.msra.mxu0 %v558_v33  ;;  %842 = vmatprep.subr.mxu1 %v623_v34  ;;  %v613_v54 = vld [vmem:[%s7713_s2 + $0x228] sm:$0xff]  ;;  %v547_v55 = vld [vmem:[%s7713_s2 + $0x18] sm:$0xff]  ;;  %v612_v56 = vld [vmem:[%s7713_s2 + $0x220] sm:$0xff] }
  0x1e   : > { %755 = vmatprep.subr.mxu0 %v557_v35  ;;  %843 = vmatpush1.msra.mxu1 %v622_v36  ;;  %v546_v57 = vld [vmem:[%s7713_s2 + $0x10] sm:$0xff]  ;;  %v611_v58 = vld [vmem:[%s7713_s2 + $0x218] sm:$0xff]  ;;  %v545_v59 = vld [vmem:[%s7713_s2 + $0x8] sm:$0xff] }
  0x1f   : > { %756 = vmatpush1.msra.mxu0 %v556_v37  ;;  %844 = vmatprep.subr.mxu1 %v621_v38  ;;  %v610_v60 = vld [vmem:[%s7713_s2 + $0x210] sm:$0xff]  ;;  %v544_v61 = vld [vmem:[%s7713_s2] sm:$0xff]  ;;  %v609_v62 = vld [vmem:[%s7713_s2 + $0x208] sm:$0xff] }
  0x20   : > { %757 = vmatprep.subr.mxu0 %v555_v39  ;;  %845 = vmatpush1.msra.mxu1 %v620_v40  ;;  %v607_v63 = vld [vmem:[%s7713_s2 + $0x1f8] sm:$0xff]  ;;  %v608_v0 = vld [vmem:[%s7713_s2 + $0x200] sm:$0xff]  ;;  %v606_v1 = vld [vmem:[%s7713_s2 + $0x1f0] sm:$0xff] }
  0x21   : > { %758 = vmatpush1.msra.mxu0 %v554_v41  ;;  %846 = vmatprep.subr.mxu1 %v619_v42  ;;  %v671_v2 = vld [vmem:[%s7713_s2 + $0x3f8] sm:$0xff]  ;;  %v605_v3 = vld [vmem:[%s7713_s2 + $0x1e8] sm:$0xff]  ;;  %v670_v4 = vld [vmem:[%s7713_s2 + $0x3f0] sm:$0xff] }
  0x22   : > { %759 = vmatprep.subr.mxu0 %v553_v43  ;;  %847 = vmatpush1.msra.mxu1 %v618_v44  ;;  %v604_v5 = vld [vmem:[%s7713_s2 + $0x1e0] sm:$0xff]  ;;  %v669_v6 = vld [vmem:[%s7713_s2 + $0x3e8] sm:$0xff]  ;;  %v603_v7 = vld [vmem:[%s7713_s2 + $0x1d8] sm:$0xff] }
  0x23   : > { %760 = vmatpush1.msra.mxu0 %v552_v45  ;;  %848 = vmatprep.subr.mxu1 %v617_v46  ;;  %v668_v8 = vld [vmem:[%s7713_s2 + $0x3e0] sm:$0xff]  ;;  %v602_v9 = vld [vmem:[%s7713_s2 + $0x1d0] sm:$0xff]  ;;  %v667_v10 = vld [vmem:[%s7713_s2 + $0x3d8] sm:$0xff] }
  0x24   : > { %761 = vmatprep.subr.mxu0 %v551_v47  ;;  %849 = vmatpush1.msra.mxu1 %v616_v48  ;;  %v601_v11 = vld [vmem:[%s7713_s2 + $0x1c8] sm:$0xff]  ;;  %v666_v12 = vld [vmem:[%s7713_s2 + $0x3d0] sm:$0xff]  ;;  %v600_v13 = vld [vmem:[%s7713_s2 + $0x1c0] sm:$0xff] }
  0x25   : > { %762 = vmatpush1.msra.mxu0 %v550_v49  ;;  %850 = vmatprep.subr.mxu1 %v615_v50  ;;  %v665_v14 = vld [vmem:[%s7713_s2 + $0x3c8] sm:$0xff]  ;;  %v599_v15 = vld [vmem:[%s7713_s2 + $0x1b8] sm:$0xff]  ;;  %v664_v16 = vld [vmem:[%s7713_s2 + $0x3c0] sm:$0xff] }
  0x26   : > { %763 = vmatprep.subr.mxu0 %v549_v51  ;;  %851 = vmatpush1.msra.mxu1 %v614_v52  ;;  %v598_v17 = vld [vmem:[%s7713_s2 + $0x1b0] sm:$0xff]  ;;  %v663_v18 = vld [vmem:[%s7713_s2 + $0x3b8] sm:$0xff]  ;;  %v597_v19 = vld [vmem:[%s7713_s2 + $0x1a8] sm:$0xff] }
  0x27   : > { %764 = vmatpush1.msra.mxu0 %v548_v53  ;;  %852 = vmatprep.subr.mxu1 %v613_v54  ;;  %v662_v20 = vld [vmem:[%s7713_s2 + $0x3b0] sm:$0xff]  ;;  %v596_v21 = vld [vmem:[%s7713_s2 + $0x1a0] sm:$0xff]  ;;  %v661_v22 = vld [vmem:[%s7713_s2 + $0x3a8] sm:$0xff] }
  0x28   : > { %765 = vmatprep.subr.mxu0 %v547_v55  ;;  %853 = vmatpush1.msra.mxu1 %v612_v56  ;;  %v595_v23 = vld [vmem:[%s7713_s2 + $0x198] sm:$0xff]  ;;  %v660_v24 = vld [vmem:[%s7713_s2 + $0x3a0] sm:$0xff]  ;;  %v594_v25 = vld [vmem:[%s7713_s2 + $0x190] sm:$0xff] }
  0x29   : > { %766 = vmatpush1.msra.mxu0 %v546_v57  ;;  %854 = vmatprep.subr.mxu1 %v611_v58  ;;  %v659_v26 = vld [vmem:[%s7713_s2 + $0x398] sm:$0xff]  ;;  %v593_v27 = vld [vmem:[%s7713_s2 + $0x188] sm:$0xff]  ;;  %v658_v28 = vld [vmem:[%s7713_s2 + $0x390] sm:$0xff] }
  0x2a   : > { %767 = vmatprep.subr.mxu0 %v545_v59  ;;  %855 = vmatpush1.msra.mxu1 %v610_v60  ;;  %v592_v29 = vld [vmem:[%s7713_s2 + $0x180] sm:$0xff]  ;;  %v657_v30 = vld [vmem:[%s7713_s2 + $0x388] sm:$0xff]  ;;  %v591_v31 = vld [vmem:[%s7713_s2 + $0x178] sm:$0xff] }
  0x2b   : > { %768 = vmatpush1.msra.mxu0 %v544_v61  ;;  %856 = vmatprep.subr.mxu1 %v609_v62  ;;  %v656_v32 = vld [vmem:[%s7713_s2 + $0x380] sm:$0xff]  ;;  %v590_v33 = vld [vmem:[%s7713_s2 + $0x170] sm:$0xff]  ;;  %v655_v34 = vld [vmem:[%s7713_s2 + $0x378] sm:$0xff] }
  0x2c   : > { %769 = vmatprep.subr.mxu0 %v607_v63  ;;  %857 = vmatpush1.msra.mxu1 %v608_v0  ;;  %v589_v35 = vld [vmem:[%s7713_s2 + $0x168] sm:$0xff]  ;;  %v654_v36 = vld [vmem:[%s7713_s2 + $0x370] sm:$0xff]  ;;  %v588_v37 = vld [vmem:[%s7713_s2 + $0x160] sm:$0xff] }
  0x2d   : > { %770 = vmatpush2.msra.mxu0 %v606_v1  ;;  %858 = vmatprep.subr.mxu1 %v671_v2  ;;  %v653_v38 = vld [vmem:[%s7713_s2 + $0x368] sm:$0xff]  ;;  %v587_v39 = vld [vmem:[%s7713_s2 + $0x158] sm:$0xff]  ;;  %v652_v40 = vld [vmem:[%s7713_s2 + $0x360] sm:$0xff] }
  0x2e   : > { %771 = vmatprep.subr.mxu0 %v605_v3  ;;  %859 = vmatpush2.msra.mxu1 %v670_v4  ;;  %v586_v41 = vld [vmem:[%s7713_s2 + $0x150] sm:$0xff]  ;;  %v651_v42 = vld [vmem:[%s7713_s2 + $0x358] sm:$0xff]  ;;  %v585_v43 = vld [vmem:[%s7713_s2 + $0x148] sm:$0xff] }
  0x2f   : > { %772 = vmatpush2.msra.mxu0 %v604_v5  ;;  %860 = vmatprep.subr.mxu1 %v669_v6  ;;  %v650_v44 = vld [vmem:[%s7713_s2 + $0x350] sm:$0xff]  ;;  %v584_v45 = vld [vmem:[%s7713_s2 + $0x140] sm:$0xff]  ;;  %v649_v46 = vld [vmem:[%s7713_s2 + $0x348] sm:$0xff] }
  0x30   : > { %773 = vmatprep.subr.mxu0 %v603_v7  ;;  %861 = vmatpush2.msra.mxu1 %v668_v8  ;;  %v583_v47 = vld [vmem:[%s7713_s2 + $0x138] sm:$0xff]  ;;  %v648_v48 = vld [vmem:[%s7713_s2 + $0x340] sm:$0xff]  ;;  %v582_v49 = vld [vmem:[%s7713_s2 + $0x130] sm:$0xff] }
  0x31   : > { %774 = vmatpush2.msra.mxu0 %v602_v9  ;;  %862 = vmatprep.subr.mxu1 %v667_v10  ;;  %v647_v50 = vld [vmem:[%s7713_s2 + $0x338] sm:$0xff]  ;;  %v581_v51 = vld [vmem:[%s7713_s2 + $0x128] sm:$0xff]  ;;  %v646_v52 = vld [vmem:[%s7713_s2 + $0x330] sm:$0xff] }
  0x32   : > { %775 = vmatprep.subr.mxu0 %v601_v11  ;;  %863 = vmatpush2.msra.mxu1 %v666_v12  ;;  %v580_v53 = vld [vmem:[%s7713_s2 + $0x120] sm:$0xff]  ;;  %v645_v54 = vld [vmem:[%s7713_s2 + $0x328] sm:$0xff]  ;;  %v579_v55 = vld [vmem:[%s7713_s2 + $0x118] sm:$0xff] }
  0x33   : > { %776 = vmatpush2.msra.mxu0 %v600_v13  ;;  %864 = vmatprep.subr.mxu1 %v665_v14  ;;  %v644_v56 = vld [vmem:[%s7713_s2 + $0x320] sm:$0xff]  ;;  %v578_v57 = vld [vmem:[%s7713_s2 + $0x110] sm:$0xff]  ;;  %v643_v58 = vld [vmem:[%s7713_s2 + $0x318] sm:$0xff] }
  0x34   : > { %777 = vmatprep.subr.mxu0 %v599_v15  ;;  %865 = vmatpush2.msra.mxu1 %v664_v16  ;;  %v577_v59 = vld [vmem:[%s7713_s2 + $0x108] sm:$0xff]  ;;  %v576_v61 = vld [vmem:[%s7713_s2 + $0x100] sm:$0xff]  ;;  %v642_v62 = vld [vmem:[%s7713_s2 + $0x310] sm:$0xff] }
  0x35   : > { %778 = vmatpush2.msra.mxu0 %v598_v17  ;;  %866 = vmatprep.subr.mxu1 %v663_v18  ;;  %v521_v60 = vld [vmem:[%s5375_s22 + $0x8] sm:$0xff]  ;;  %v520_v63 = vld [vmem:[%s5375_s22] sm:$0xff]  ;;  %v703_v1 = vld [vmem:[%s7713_s2 + $0x4f8] sm:$0xff] }
  0x36   : > { %779 = vmatprep.subr.mxu0 %v597_v19  ;;  %867 = vmatpush2.msra.mxu1 %v662_v20  ;;  %v641_v0 = vld [vmem:[%s7713_s2 + $0x308] sm:$0xff]  ;;  %v640_v2 = vld [vmem:[%s7713_s2 + $0x300] sm:$0xff]  ;;  %v523_v3 = vld [vmem:[%s5375_s22 + $0x18] sm:$0xff] }
  0x37   : > { %780 = vmatpush2.msra.mxu0 %v596_v21  ;;  %868 = vmatprep.subr.mxu1 %v661_v22  ;;  %v702_v4 = vld [vmem:[%s7713_s2 + $0x4f0] sm:$0xff]  ;;  %v701_v6 = vld [vmem:[%s7713_s2 + $0x4e8] sm:$0xff]  ;;  %v700_v7 = vld [vmem:[%s7713_s2 + $0x4e0] sm:$0xff] }
  0x38   : > { %781 = vmatprep.subr.mxu0 %v595_v23  ;;  %869 = vmatpush2.msra.mxu1 %v660_v24  ;;  %v522_v5 = vld [vmem:[%s5375_s22 + $0x10] sm:$0xff]  ;;  %v527_v8 = vld [vmem:[%s5375_s22 + $0x38] sm:$0xff]  ;;  %v529_v12 = vld [vmem:[%s5375_s22 + $0x48] sm:$0xff] }
  0x39   : > { %782 = vmatpush2.msra.mxu0 %v594_v25  ;;  %870 = vmatprep.subr.mxu1 %v659_v26  ;;  %v699_v9 = vld [vmem:[%s7713_s2 + $0x4d8] sm:$0xff]  ;;  %v526_v10 = vld [vmem:[%s5375_s22 + $0x30] sm:$0xff]  ;;  %v697_v13 = vld [vmem:[%s7713_s2 + $0x4c8] sm:$0xff] }
  0x3a   : > { %783 = vmatprep.subr.mxu0 %v593_v27  ;;  %871 = vmatpush2.msra.mxu1 %v658_v28  ;;  %v698_v11 = vld [vmem:[%s7713_s2 + $0x4d0] sm:$0xff]  ;;  %v528_v14 = vld [vmem:[%s5375_s22 + $0x40] sm:$0xff]  ;;  %v533_v16 = vld [vmem:[%s5375_s22 + $0x68] sm:$0xff] }
  0x3b   : > { %784 = vmatpush2.msra.mxu0 %v592_v29  ;;  %872 = vmatprep.subr.mxu1 %v657_v30  ;;  %v696_v15 = vld [vmem:[%s7713_s2 + $0x4c0] sm:$0xff]  ;;  %v695_v17 = vld [vmem:[%s7713_s2 + $0x4b8] sm:$0xff]  ;;  %v694_v19 = vld [vmem:[%s7713_s2 + $0x4b0] sm:$0xff] }
  0x3c   : > { %785 = vmatprep.subr.mxu0 %v591_v31  ;;  %873 = vmatpush2.msra.mxu1 %v656_v32  ;;  %v532_v18 = vld [vmem:[%s5375_s22 + $0x60] sm:$0xff]  ;;  %v535_v20 = vld [vmem:[%s5375_s22 + $0x78] sm:$0xff]  ;;  %v693_v21 = vld [vmem:[%s7713_s2 + $0x4a8] sm:$0xff] }
  0x3d   : > { %786 = vmatpush2.msra.mxu0 %v590_v33  ;;  %874 = vmatprep.subr.mxu1 %v655_v34  ;;  %v534_v22 = vld [vmem:[%s5375_s22 + $0x70] sm:$0xff]  ;;  %v692_v23 = vld [vmem:[%s7713_s2 + $0x4a0] sm:$0xff]  ;;  %v539_v24 = vld [vmem:[%s5375_s22 + $0x98] sm:$0xff] }
  0x3e   : > { %787 = vmatprep.subr.mxu0 %v589_v35  ;;  %875 = vmatpush2.msra.mxu1 %v654_v36  ;;  %v691_v25 = vld [vmem:[%s7713_s2 + $0x498] sm:$0xff]  ;;  %v538_v26 = vld [vmem:[%s5375_s22 + $0x90] sm:$0xff]  ;;  %v541_v28 = vld [vmem:[%s5375_s22 + $0xa8] sm:$0xff] }
  0x3f   : > { %788 = vmatpush2.msra.mxu0 %v588_v37  ;;  %876 = vmatprep.subr.mxu1 %v653_v38  ;;  %v690_v27 = vld [vmem:[%s7713_s2 + $0x490] sm:$0xff]  ;;  %v689_v29 = vld [vmem:[%s7713_s2 + $0x488] sm:$0xff]  ;;  %v540_v30 = vld [vmem:[%s5375_s22 + $0xa0] sm:$0xff] }
  0x40   : > { %789 = vmatprep.subr.mxu0 %v587_v39  ;;  %877 = vmatpush2.msra.mxu1 %v652_v40  ;;  %v688_v31 = vld [vmem:[%s7713_s2 + $0x480] sm:$0xff]  ;;  %v525_v32 = vld [vmem:[%s5375_s22 + $0x28] sm:$0xff]  ;;  %v687_v33 = vld [vmem:[%s7713_s2 + $0x478] sm:$0xff] }
  0x41   : > { %790 = vmatpush2.msra.mxu0 %v586_v41  ;;  %878 = vmatprep.subr.mxu1 %v651_v42  ;;  %v686_v34 = vld [vmem:[%s7713_s2 + $0x470] sm:$0xff]  ;;  %v685_v35 = vld [vmem:[%s7713_s2 + $0x468] sm:$0xff]  ;;  %v684_v36 = vld [vmem:[%s7713_s2 + $0x460] sm:$0xff] }
  0x42   : > { %791 = vmatprep.subr.mxu0 %v585_v43  ;;  %879 = vmatpush2.msra.mxu1 %v650_v44  ;;  %v683_v37 = vld [vmem:[%s7713_s2 + $0x458] sm:$0xff]  ;;  %v682_v38 = vld [vmem:[%s7713_s2 + $0x450] sm:$0xff]  ;;  %v681_v39 = vld [vmem:[%s7713_s2 + $0x448] sm:$0xff] }
  0x43   : > { %792 = vmatpush2.msra.mxu0 %v584_v45  ;;  %880 = vmatprep.subr.mxu1 %v649_v46  ;;  %v680_v40 = vld [vmem:[%s7713_s2 + $0x440] sm:$0xff]  ;;  %v679_v41 = vld [vmem:[%s7713_s2 + $0x438] sm:$0xff]  ;;  %v678_v42 = vld [vmem:[%s7713_s2 + $0x430] sm:$0xff] }
  0x44   : > { %793 = vmatprep.subr.mxu0 %v583_v47  ;;  %881 = vmatpush2.msra.mxu1 %v648_v48  ;;  %v677_v43 = vld [vmem:[%s7713_s2 + $0x428] sm:$0xff]  ;;  %v676_v44 = vld [vmem:[%s7713_s2 + $0x420] sm:$0xff]  ;;  %v675_v45 = vld [vmem:[%s7713_s2 + $0x418] sm:$0xff] }
  0x45   : > { %794 = vmatpush2.msra.mxu0 %v582_v49  ;;  %882 = vmatprep.subr.mxu1 %v647_v50  ;;  %v674_v46 = vld [vmem:[%s7713_s2 + $0x410] sm:$0xff]  ;;  %v673_v47 = vld [vmem:[%s7713_s2 + $0x408] sm:$0xff]  ;;  %v672_v48 = vld [vmem:[%s7713_s2 + $0x400] sm:$0xff] }
  0x46   : > { %795 = vmatprep.subr.mxu0 %v581_v51  ;;  %883 = vmatpush2.msra.mxu1 %v646_v52  ;;  %v711_v49 = vld [vmem:[%s7713_s2 + $0x538] sm:$0xff]  ;;  %v710_v50 = vld [vmem:[%s7713_s2 + $0x530] sm:$0xff]  ;;  %v709_v51 = vld [vmem:[%s7713_s2 + $0x528] sm:$0xff] }
  0x47   : > { %796 = vmatpush2.msra.mxu0 %v580_v53  ;;  %884 = vmatprep.subr.mxu1 %v645_v54  ;;  %v708_v52 = vld [vmem:[%s7713_s2 + $0x520] sm:$0xff]  ;;  %v707_v53 = vld [vmem:[%s7713_s2 + $0x518] sm:$0xff]  ;;  %v706_v54 = vld [vmem:[%s7713_s2 + $0x510] sm:$0xff] }
  0x48   : > { %797 = vmatprep.subr.mxu0 %v579_v55  ;;  %885 = vmatpush2.msra.mxu1 %v644_v56  ;;  %v705_v55 = vld [vmem:[%s7713_s2 + $0x508] sm:$0xff]  ;;  %v704_v56 = vld [vmem:[%s7713_s2 + $0x500] sm:$0xff] }
  0x49   : > { %798 = vmatpush2.msra.mxu0 %v578_v57  ;;  %886 = vmatprep.subr.mxu1 %v643_v58  ;;  %v524_v57 = vld [vmem:[%s5375_s22 + $0x20] sm:$0xff]  ;;  %v531_v58 = vld [vmem:[%s5375_s22 + $0x58] sm:$0xff] }
  0x4a   : > { %799 = vmatprep.subr.mxu0 %v577_v59  ;;  %801 = vmatprep.mubr.f32.mxu0 %v521_v60  ;;  %v530_v59 = vld [vmem:[%s5375_s22 + $0x50] sm:$0xff]  ;;  %v537_v60 = vld [vmem:[%s5375_s22 + $0x88] sm:$0xff] }
  0x4b   : > { %800 = vmatpush2.msra.mxu0 %v576_v61  ;;  %887 = vmatpush2.msra.mxu1 %v642_v62  ;;  %v536_v61 = vld [vmem:[%s5375_s22 + $0x80] sm:$0xff]  ;;  %v543_v62 = vld [vmem:[%s5375_s22 + $0xb8] sm:$0xff] }
  0x4c   : > { %802 = vmatmul.mubr.f32.vlgmr.msra.gmra.mxu0 %v520_v63  ;;  %888 = vmatprep.subr.mxu1 %v641_v0  ;;  %v542_v63 = vld [vmem:[%s5375_s22 + $0xb0] sm:$0xff]  ;;  %v1008_v0 = vld [vmem:[%s7715_s4] sm:$0xff]  ;;  %s6525_s22 = scalar_lea.vmem %s7712_s1, %s4840_s25  ;;  %s7693_s25 = scalar_lea.vmem %s7726_s15, %s4580_s29 }
  0x4d   : > { %915 = vmatprep.subr.mxu0 %v703_v1  ;;  %889 = vmatpush2.msra.mxu1 %v640_v2  ;;  %v4379_v1 = vld [vmem:[%s7716_s5 + $0x1f8] sm:$0xff]  ;;  %v4378_v2 = vld [vmem:[%s7716_s5 + $0x1f0] sm:$0xff] }
  0x4e   : > { %890 = vmatprep.mubr.f32.mxu1 %v523_v3  ;;  %916 = vmatpush1.msra.mxu0 %v702_v4  ;;  %v4377_v3 = vld [vmem:[%s7716_s5 + $0x1e8] sm:$0xff]  ;;  %v4376_v4 = vld [vmem:[%s7716_s5 + $0x1e0] sm:$0xff] }
  0x4f   : > { %891 = vmatmul.mubr.f32.vlgmr.msra.gmra.mxu1 %v522_v5  ;;  %917 = vmatprep.subr.mxu0 %v701_v6  ;;  %v4375_v5 = vld [vmem:[%s7716_s5 + $0x1d8] sm:$0xff]  ;;  %v4374_v6 = vld [vmem:[%s7716_s5 + $0x1d0] sm:$0xff] }
  0x50   : > { %918 = vmatpush1.msra.mxu0 %v700_v7  ;;  %807 = vmatprep.mubr.f32.mxu0 %v527_v8  ;;  %v4373_v7 = vld [vmem:[%s7716_s5 + $0x1c8] sm:$0xff]  ;;  %v4372_v8 = vld [vmem:[%s7716_s5 + $0x1c0] sm:$0xff] }
  0x51   : > { %919 = vmatprep.subr.mxu0 %v699_v9  ;;  %808 = vmatmul.mubr.f32.gmra.mxu0 %v526_v10  ;;  %v4371_v9 = vld [vmem:[%s7716_s5 + $0x1b8] sm:$0xff]  ;;  %v4370_v10 = vld [vmem:[%s7716_s5 + $0x1b0] sm:$0xff] }
  0x52   : > { %920 = vmatpush1.msra.mxu0 %v698_v11  ;;  %896 = vmatprep.mubr.f32.mxu1 %v529_v12  ;;  %v4369_v11 = vld [vmem:[%s7716_s5 + $0x1a8] sm:$0xff]  ;;  %v4368_v12 = vld [vmem:[%s7716_s5 + $0x1a0] sm:$0xff] }
  0x53   : > { %921 = vmatprep.subr.mxu0 %v697_v13  ;;  %897 = vmatmul.mubr.f32.gmra.mxu1 %v528_v14  ;;  %v4367_v13 = vld [vmem:[%s7716_s5 + $0x198] sm:$0xff]  ;;  %v4366_v14 = vld [vmem:[%s7716_s5 + $0x190] sm:$0xff] }
  0x54   : > { %922 = vmatpush1.msra.mxu0 %v696_v15  ;;  %813 = vmatprep.mubr.f32.mxu0 %v533_v16  ;;  %v4365_v15 = vld [vmem:[%s7716_s5 + $0x188] sm:$0xff]  ;;  %v4364_v16 = vld [vmem:[%s7716_s5 + $0x180] sm:$0xff] }
  0x55   : > { %923 = vmatprep.subr.mxu0 %v695_v17  ;;  %814 = vmatmul.mubr.f32.gmra.mxu0 %v532_v18  ;;  %v4363_v17 = vld [vmem:[%s7716_s5 + $0x178] sm:$0xff]  ;;  %v4362_v18 = vld [vmem:[%s7716_s5 + $0x170] sm:$0xff] }
  0x56   : > { %924 = vmatpush1.msra.mxu0 %v694_v19  ;;  %902 = vmatprep.mubr.f32.mxu1 %v535_v20  ;;  %v4361_v19 = vld [vmem:[%s7716_s5 + $0x168] sm:$0xff] }
  0x57   : > { %925 = vmatprep.subr.mxu0 %v693_v21  ;;  %903 = vmatmul.mubr.f32.gmra.mxu1 %v534_v22 }
  0x58   : > { %926 = vmatpush1.msra.mxu0 %v692_v23  ;;  %819 = vmatprep.mubr.f32.mxu0 %v539_v24 }
  0x59   : > { %927 = vmatprep.subr.mxu0 %v691_v25  ;;  %820 = vmatmul.mubr.f32.gmra.mxu0 %v538_v26 }
  0x5a   : > { %928 = vmatpush1.msra.mxu0 %v690_v27  ;;  %908 = vmatprep.mubr.f32.mxu1 %v541_v28 }
  0x5b   : > { %929 = vmatprep.subr.mxu0 %v689_v29  ;;  %909 = vmatmul.mubr.f32.gmra.mxu1 %v540_v30 }
  0x5c   : > { %930 = vmatpush1.msra.mxu0 %v688_v31  ;;  %4338 = vmatprep.mubr.msk.f32.mxu0 %vm724_vm0, %v525_v32  ;;  %v714_v31 = vlaneseq }
  0x5d   : > { %931 = vmatprep.subr.mxu0 %v687_v33  ;;  %4674 = vmatprep.mubr.msk.f32.mxu1 %vm724_vm0, %v1008_v0 }
  0x5e   : > { %932 = vmatpush1.msra.mxu0 %v686_v34  ;;  %v5613_v34 = vshrl.u32 %v714_v31, 7  ;;  %v1211_v31 = vld [vmem:[%s7716_s5 + $0x90] sm:$0xff] }
  0x5f   : > { %933 = vmatprep.subr.mxu0 %v685_v35 }
  0x60   : > { %934 = vmatpush1.msra.mxu0 %v684_v36 }
  0x61   : > { %935 = vmatprep.subr.mxu0 %v683_v37 }
  0x62   : > { %936 = vmatpush1.msra.mxu0 %v682_v38  ;;  %v5616_v38 = vsub.s32 0, %v5613_v34 }
  0x63   : > { %937 = vmatprep.subr.mxu0 %v681_v39  ;;  %v5619_v39 = vsub.s32 1, %v5613_v34 }
  0x64   : > { %938 = vmatpush1.msra.mxu0 %v680_v40  ;;  %v712_v40 = vld [vmem:[%s7714_s3] sm:$0x3] }
  0x65   : > { %939 = vmatprep.subr.mxu0 %v679_v41 }
  0x66   : > { %940 = vmatpush1.msra.mxu0 %v678_v42 }
  0x67   : > { %941 = vmatprep.subr.mxu0 %v677_v43 }
  0x68   : > { %942 = vmatpush1.msra.mxu0 %v676_v44  ;;  %v717_v44 = vrot.slane %v712_v40, %v5616_v38 }
  0x69   : > { %943 = vmatprep.subr.mxu0 %v675_v45  ;;  %v721_v45 = vrot.slane %v712_v40, %v5619_v39  ;;  %v1205_v40 = vld [vmem:[%s7716_s5 + $0x60] sm:$0xff] }
  0x6a   : > { %944 = vmatpush1.msra.mxu0 %v674_v46 }
  0x6b   : > { %945 = vmatprep.subr.mxu0 %v673_v47 }
  0x6c   : > { %946 = vmatpush1.msra.mxu0 %v672_v48 }
  0x6d   : > { %971 = vmatprep.subr.mxu0 %v711_v49 }
  0x6e   : > { %972 = vmatpush2.msra.mxu0 %v710_v50 }
  0x6f   : > { %973 = vmatprep.subr.mxu0 %v709_v51 }
  0x70   : > { %974 = vmatpush2.msra.mxu0 %v708_v52 }
  0x71   : > { %975 = vmatprep.subr.mxu0 %v707_v53 }
  0x72   : > { %976 = vmatpush2.msra.mxu0 %v706_v54 }
  0x73   : > { %977 = vmatprep.subr.mxu0 %v705_v55 }
  0x74   : > { %978 = vmatpush2.msra.mxu0 %v704_v56 }
  0x75   : > { %980 = vmatmul.mubr.f32.vlgmr.msra.gmra.mxu0 %v524_v57  ;;  %1338 = vmatprep.subr.mxu0 %v4379_v1 }
  0x76   : > { %4339 = vmatprep.mubr.msk.f32.mxu0 %vm724_vm0, %v531_v58  ;;  %1339 = vmatpush1.msra.mxu0 %v4378_v2 }
  0x77   : > { %1340 = vmatprep.subr.mxu0 %v4377_v3 }
  0x78   : > { %1341 = vmatpush1.msra.mxu0 %v4376_v4 }
  0x79   : > { %986 = vmatmul.mubr.f32.gmra.mxu0 %v530_v59  ;;  %1342 = vmatprep.subr.mxu0 %v4375_v5 }
  0x7a   : > { %4340 = vmatprep.mubr.msk.f32.mxu0 %vm724_vm0, %v537_v60  ;;  %1343 = vmatpush1.msra.mxu0 %v4374_v6 }
  0x7b   : > { %1344 = vmatprep.subr.mxu0 %v4373_v7 }
  0x7c   : > { %1345 = vmatpush1.msra.mxu0 %v4372_v8 }
  0x7d   : > { %992 = vmatmul.mubr.f32.gmra.mxu0 %v536_v61  ;;  %1346 = vmatprep.subr.mxu0 %v4371_v9 }
  0x7e   : > { %4341 = vmatprep.mubr.msk.f32.mxu0 %vm724_vm0, %v543_v62  ;;  %1347 = vmatpush1.msra.mxu0 %v4370_v10 }
  0x7f   : > { %1348 = vmatprep.subr.mxu0 %v4369_v11 }
  0x80   : > { %1349 = vmatpush1.msra.mxu0 %v4368_v12 }
  0x81   : > { %998 = vmatmul.mubr.f32.gmra.mxu0 %v542_v63  ;;  %1350 = vmatprep.subr.mxu0 %v4367_v13 }
  0x82   : > { %1351 = vmatpush1.msra.mxu0 %v4366_v14 }
  0x83   : > { %1352 = vmatprep.subr.mxu0 %v4365_v15  ;;  %v1009_v15 = vld [vmem:[%s7715_s4 + $0x8] sm:$0x1f] }
  0x84   : > { %1353 = vmatpush1.msra.mxu0 %v4364_v16  ;;  %v4344_v16 = vld [vmem:[%s7715_s4 + $0x10] sm:$0xff] }
  0x85   : > { %1354 = vmatprep.subr.mxu0 %v4363_v17  ;;  %v4345_v17 = vld [vmem:[%s7715_s4 + $0x18] sm:$0x1f] }
  0x86   : > { %1355 = vmatpush1.msra.mxu0 %v4362_v18  ;;  %v1224_v18 = vld [vmem:[%s7716_s5 + $0xf8] sm:$0xff] }
  0x87   : > { %1356 = vmatprep.subr.mxu0 %v4361_v19  ;;  %v1223_v19 = vld [vmem:[%s7716_s5 + $0xf0] sm:$0xff] }
 0x10c   : > { %v803_v20 = vpop.f32.mrf.mxu0 }
 0x10d   : > { %v804_v60 = vadd.f32 %v803_v20, %v717_v44  ;;  %v1222_v20 = vld [vmem:[%s7716_s5 + $0xe8] sm:$0xff] }
 0x10e   : > { %v805_v21 = vpop.f32.mrf.mxu0 }
 0x10f   : > { %v892_v24 = vpop.f32.mrf.mxu1  ;;  %v806_v54 = vadd.f32 %v805_v21, %v721_v45  ;;  %v1221_v21 = vld [vmem:[%s7716_s5 + $0xe0] sm:$0xff] }
 0x110   : > { %v893_v8 = vadd.f32 %v892_v24, %v804_v60  ;;  %v1218_v24 = vld [vmem:[%s7716_s5 + $0xc8] sm:$0xff]  ;;  %v4352_v60 = vld [vmem:[%s7716_s5 + $0x120] sm:$0xff] }
 0x111   : > { %v809_v22 = vpop.f32.mrf.mxu0  ;;  %v894_v26 = vpop.f32.mrf.mxu1 }
 0x112   : > { %v810_v56 = vadd.f32 %v809_v22, %v717_v44  ;;  %v895_v3 = vadd.f32 %v894_v26, %v806_v54  ;;  %v1220_v22 = vld [vmem:[%s7716_s5 + $0xd8] sm:$0xff] }
 0x113   : > { %v811_v23 = vpop.f32.mrf.mxu0  ;;  %v898_v27 = vpop.f32.mrf.mxu1  ;;  %v1216_v26 = vld [vmem:[%s7716_s5 + $0xb8] sm:$0xff] }
 0x114   : > { %v812_v50 = vadd.f32 %v811_v23, %v721_v45  ;;  %v899_v4 = vadd.f32 %v898_v27, %v810_v56  ;;  %v1219_v23 = vld [vmem:[%s7716_s5 + $0xd0] sm:$0xff]  ;;  %v4355_v54 = vld [vmem:[%s7716_s5 + $0x138] sm:$0xff] }
 0x115   : > { %v815_v25 = vpop.f32.mrf.mxu0  ;;  %v900_v29 = vpop.f32.mrf.mxu1  ;;  %v1215_v27 = vld [vmem:[%s7716_s5 + $0xb0] sm:$0xff] }
 0x116   : > { %v816_v53 = vadd.f32 %v815_v25, %v717_v44  ;;  %v901_v61 = vadd.f32 %v900_v29, %v812_v50  ;;  %v1217_v25 = vld [vmem:[%s7716_s5 + $0xc0] sm:$0xff]  ;;  %v4357_v50 = vld [vmem:[%s7716_s5 + $0x148] sm:$0xff]  ;;  %v4354_v56 = vld [vmem:[%s7716_s5 + $0x130] sm:$0xff] }
 0x117   : > { %v817_v28 = vpop.f32.mrf.mxu0  ;;  %v904_v32 = vpop.f32.mrf.mxu1  ;;  %v1213_v29 = vld [vmem:[%s7716_s5 + $0xa0] sm:$0xff] }
 0x118   : > { %v818_v47 = vadd.f32 %v817_v28, %v721_v45  ;;  %v905_v63 = vadd.f32 %v904_v32, %v816_v53  ;;  %v1214_v28 = vld [vmem:[%s7716_s5 + $0xa8] sm:$0xff]  ;;  %v1197_v53 = vld [vmem:[%s7716_s5 + $0x20] sm:$0xff] }
 0x119   : > { %v821_v30 = vpop.f32.mrf.mxu0  ;;  %v906_v36 = vpop.f32.mrf.mxu1  ;;  %v1210_v32 = vld [vmem:[%s7716_s5 + $0x88] sm:$0xff] }
 0x11a   : > { %v822_v48 = vadd.f32 %v821_v30, %v717_v44  ;;  %v907_v57 = vadd.f32 %v906_v36, %v818_v47  ;;  %v1212_v30 = vld [vmem:[%s7716_s5 + $0x98] sm:$0xff]  ;;  %v1207_v36 = vld [vmem:[%s7716_s5 + $0x70] sm:$0xff]  ;;  %v4360_v44 = vld [vmem:[%s7716_s5 + $0x160] sm:$0xff] }
 0x11b   : > { %v823_v33 = vpop.f32.mrf.mxu0  ;;  %v910_v42 = vpop.f32.mrf.mxu1  ;;  %1357 = vmatpush1.msra.mxu0 %v4360_v44  ;;  %v1200_v47 = vld [vmem:[%s7716_s5 + $0x38] sm:$0xff]  ;;  %v4396_v44 = vld [vmem:[%s7716_s5 + $0x280] sm:$0xff] }
 0x11c   : > { %v824_v49 = vadd.f32 %v823_v33, %v721_v45  ;;  %v911_v58 = vadd.f32 %v910_v42, %v822_v48  ;;  %v1209_v33 = vld [vmem:[%s7716_s5 + $0x80] sm:$0xff]  ;;  %v1203_v42 = vld [vmem:[%s7716_s5 + $0x50] sm:$0xff] }
 0x11d   : > { %v912_v51 = vpop.f32.mrf.mxu1  ;;  %v1201_v45 = vld [vmem:[%s7716_s5 + $0x40] sm:$0xff]  ;;  %v4358_v48 = vld [vmem:[%s7716_s5 + $0x150] sm:$0xff] }
 0x11e   : > { %v913_v59 = vadd.f32 %v912_v51, %v824_v49  ;;  %v1199_v49 = vld [vmem:[%s7716_s5 + $0x30] sm:$0xff]  ;;  %v1198_v51 = vld [vmem:[%s7716_s5 + $0x28] sm:$0xff] }
 0x135   : > { %v981_v35 = vpop.f32.mrf.mxu0 }
 0x136   : > { %v982_v12 = vadd.f32 %v981_v35, %v893_v8  ;;  %v1208_v35 = vld [vmem:[%s7716_s5 + $0x78] sm:$0xff] }
 0x137   : > { %v983_v37 = vpop.f32.mrf.mxu0 }
 0x138   : > { %v984_v9 = vadd.f32 %v983_v37, %v895_v3  ;;  %v1206_v37 = vld [vmem:[%s7716_s5 + $0x68] sm:$0xff]  ;;  %v4348_v3 = vld [vmem:[%s7716_s5 + $0x100] sm:$0xff] }
 0x139   : > { %v987_v41 = vpop.f32.mrf.mxu0 }
 0x13a   : > { %v988_v10 = vadd.f32 %v987_v41, %v899_v4  ;;  %v1004_v14 = vmax.f32 %v982_v12, %v984_v9  ;;  %v1204_v41 = vld [vmem:[%s7716_s5 + $0x58] sm:$0xff] }
 0x13b   : > { %v989_v43 = vpop.f32.mrf.mxu0  ;;  %v4443_v4 = vld [vmem:[%s7716_s5 + $0x3f8] sm:$0xff] }
 0x13c   : > { %v990_v5 = vadd.f32 %v989_v43, %v901_v61  ;;  %v1202_v43 = vld [vmem:[%s7716_s5 + $0x48] sm:$0xff]  ;;  %v1193_v61 = vld [vmem:[%s7716_s5] sm:$0xff] }
 0x13d   : > { %v993_v46 = vpop.f32.mrf.mxu0 }
 0x13e   : > { %v994_v6 = vadd.f32 %v993_v46, %v905_v63  ;;  %v1005_v13 = vmax.f32 %v988_v10, %v990_v5  ;;  %v4359_v46 = vld [vmem:[%s7716_s5 + $0x158] sm:$0xff]  ;;  %v4350_v63 = vld [vmem:[%s7716_s5 + $0x110] sm:$0xff] }
 0x13f   : > { %v995_v52 = vpop.f32.mrf.mxu0  ;;  %1358 = vmatprep.subr.mxu0 %v4359_v46  ;;  %v4395_v46 = vld [vmem:[%s7716_s5 + $0x278] sm:$0xff] }
 0x140   : > { %v996_v0 = vadd.f32 %v995_v52, %v907_v57  ;;  %1359 = vmatpush1.msra.mxu0 %v4358_v48  ;;  %v4356_v52 = vld [vmem:[%s7716_s5 + $0x140] sm:$0xff]  ;;  %v1195_v57 = vld [vmem:[%s7716_s5 + $0x10] sm:$0xff] }
 0x141   : > { %v999_v55 = vpop.f32.mrf.mxu0  ;;  %1360 = vmatprep.subr.mxu0 %v4357_v50  ;;  %v4394_v48 = vld [vmem:[%s7716_s5 + $0x270] sm:$0xff]  ;;  %v4393_v50 = vld [vmem:[%s7716_s5 + $0x268] sm:$0xff] }
 0x142   : > { %v1000_v1 = vadd.f32 %v999_v55, %v911_v58  ;;  %v1006_v11 = vmax.f32 %v994_v6, %v996_v0  ;;  %1361 = vmatpush1.msra.mxu0 %v4356_v52  ;;  %v1196_v55 = vld [vmem:[%s7716_s5 + $0x18] sm:$0xff]  ;;  %v4353_v58 = vld [vmem:[%s7716_s5 + $0x128] sm:$0xff]  ;;  %v4392_v52 = vld [vmem:[%s7716_s5 + $0x260] sm:$0xff] }
 0x143   : > { %v1001_v62 = vpop.f32.mrf.mxu0  ;;  %1362 = vmatprep.subr.mxu0 %v4355_v54  ;;  %v4411_v0 = vld [vmem:[%s7716_s5 + $0x2f8] sm:$0xff] }
 0x144   : > { %v1002_v2 = vadd.f32 %v1001_v62, %v913_v59  ;;  %1363 = vmatpush1.msra.mxu0 %v4354_v56  ;;  %v1194_v59 = vld [vmem:[%s7716_s5 + $0x8] sm:$0xff]  ;;  %v4351_v62 = vld [vmem:[%s7716_s5 + $0x118] sm:$0xff]  ;;  %v4390_v56 = vld [vmem:[%s7716_s5 + $0x250] sm:$0xff] }
 0x145   : > { %1364 = vmatprep.subr.mxu0 %v4353_v58  ;;  %v4391_v54 = vld [vmem:[%s7716_s5 + $0x258] sm:$0xff]  ;;  %v4389_v58 = vld [vmem:[%s7716_s5 + $0x248] sm:$0xff] }
 0x146   : > { %v1007_v7 = vmax.f32 %v1000_v1, %v1002_v2  ;;  %1365 = vmatpush1.msra.mxu0 %v4352_v60  ;;  %v7727_v1 = vmov 0.0   ;;  %v4349_v2 = vld [vmem:[%s7716_s5 + $0x108] sm:$0xff]  ;;  %v4388_v60 = vld [vmem:[%s7716_s5 + $0x240] sm:$0xff] }
 0x147   : > { %1366 = vmatprep.subr.mxu0 %v4351_v62  ;;  %1402 = vmatprep.mubr.f32.mxu0 %v7727_v1  ;;  %v4387_v62 = vld [vmem:[%s7716_s5 + $0x238] sm:$0xff] }
 0x148   : > { %4666 = vmatprep.subr.mxu1 %v1007_v7  ;;  %1367 = vmatpush1.msra.mxu0 %v4350_v63  ;;  %v4422_v63 = vld [vmem:[%s7716_s5 + $0x350] sm:$0xff] }
 0x149   : > { %4667 = vmatpush3.msra.mxu1 %v1007_v7  ;;  %1368 = vmatprep.subr.mxu0 %v4349_v2  ;;  %v4421_v2 = vld [vmem:[%s7716_s5 + $0x348] sm:$0xff] }
 0x14a   : > { %4668 = vmatprep.subr.mxu1 %v1006_v11  ;;  %1369 = vmatpush1.msra.mxu0 %v4348_v3  ;;  %v4385_v3 = vld [vmem:[%s7716_s5 + $0x228] sm:$0xff] }
 0x14b   : > { %4669 = vmatpush3.msra.mxu1 %v1006_v11  ;;  %1560 = vmatprep.subr.mxu0 %v4443_v4  ;;  %v4420_v4 = vld [vmem:[%s7716_s5 + $0x340] sm:$0xff] }
 0x14c   : > { %4670 = vmatprep.subr.mxu1 %v1005_v13 }
 0x14d   : > { %4671 = vmatpush3.msra.mxu1 %v1005_v13 }
 0x14e   : > { %4672 = vmatprep.subr.mxu1 %v1004_v14 }
 0x14f   : > { %4673 = vmatpush3.msra.mxu1 %v1004_v14 }
 0x150   : > { %4677 = vmatprep.subr.mxu1 %v1007_v7  ;;  %4675 = vmatmul.mubr.msk.f32.vlgmr.msra.gmra.mxu1 %vm724_vm0, %v1009_v15 }
 0x151   : > { %4678 = vmatpush3.msra.mxu1 %v1007_v7  ;;  %4685 = vmatprep.mubr.msk.f32.mxu1 %vm724_vm0, %v4344_v16  ;;  %v4408_v16 = vld [vmem:[%s7716_s5 + $0x2e0] sm:$0xff] }
 0x152   : > { %4679 = vmatprep.subr.mxu1 %v1006_v11 }
 0x153   : > { %4680 = vmatpush3.msra.mxu1 %v1006_v11 }
 0x154   : > { %4681 = vmatprep.subr.mxu1 %v1005_v13 }
 0x155   : > { %4682 = vmatpush3.msra.mxu1 %v1005_v13  ;;  %v4410_v13 = vld [vmem:[%s7716_s5 + $0x2f0] sm:$0xff] }
 0x156   : > { %4683 = vmatprep.subr.mxu1 %v1004_v14 }
 0x157   : > { %4684 = vmatpush3.msra.mxu1 %v1004_v14  ;;  %v4409_v14 = vld [vmem:[%s7716_s5 + $0x2e8] sm:$0xff] }
 0x158   : > { %4686 = vmatmul.mubr.msk.f32.vlgmr.msra.gmra.mxu1 %vm724_vm0, %v4345_v17  ;;  %1225 = vmatprep.subr.mxu1 %v1224_v18  ;;  %v4407_v18 = vld [vmem:[%s7716_s5 + $0x2d8] sm:$0xff] }
 0x159   : > { %1226 = vmatpush1.msra.mxu1 %v1223_v19  ;;  %1289 = vmatprep.mubr.f32.mxu1 %v7727_v1  ;;  %v4442_v19 = vld [vmem:[%s7716_s5 + $0x3f0] sm:$0xff] }
 0x15a   : > { %1227 = vmatprep.subr.mxu1 %v1222_v20 }
 0x15b   : > { %1228 = vmatpush1.msra.mxu1 %v1221_v21  ;;  %v4406_v21 = vld [vmem:[%s7716_s5 + $0x2d0] sm:$0xff] }
 0x15c   : > { %1229 = vmatprep.subr.mxu1 %v1220_v22  ;;  %v4441_v22 = vld [vmem:[%s7716_s5 + $0x3e8] sm:$0xff] }
 0x15d   : > { %1230 = vmatpush1.msra.mxu1 %v1219_v23  ;;  %v4405_v23 = vld [vmem:[%s7716_s5 + $0x2c8] sm:$0xff] }
 0x15e   : > { %1231 = vmatprep.subr.mxu1 %v1218_v24  ;;  %v4440_v24 = vld [vmem:[%s7716_s5 + $0x3e0] sm:$0xff] }
 0x15f   : > { %1232 = vmatpush1.msra.mxu1 %v1217_v25  ;;  %v4404_v25 = vld [vmem:[%s7716_s5 + $0x2c0] sm:$0xff] }
 0x160   : > { %1233 = vmatprep.subr.mxu1 %v1216_v26  ;;  %v4439_v26 = vld [vmem:[%s7716_s5 + $0x3d8] sm:$0xff] }
 0x161   : > { %1234 = vmatpush1.msra.mxu1 %v1215_v27  ;;  %v4403_v27 = vld [vmem:[%s7716_s5 + $0x2b8] sm:$0xff] }
 0x162   : > { %1235 = vmatprep.subr.mxu1 %v1214_v28  ;;  %v4438_v28 = vld [vmem:[%s7716_s5 + $0x3d0] sm:$0xff] }
 0x163   : > { %1236 = vmatpush1.msra.mxu1 %v1213_v29  ;;  %v4402_v29 = vld [vmem:[%s7716_s5 + $0x2b0] sm:$0xff] }
 0x164   : > { %1237 = vmatprep.subr.mxu1 %v1212_v30  ;;  %v4437_v30 = vld [vmem:[%s7716_s5 + $0x3c8] sm:$0xff] }
 0x165   : > { %1238 = vmatpush1.msra.mxu1 %v1211_v31  ;;  %v4401_v31 = vld [vmem:[%s7716_s5 + $0x2a8] sm:$0xff] }
 0x166   : > { %1239 = vmatprep.subr.mxu1 %v1210_v32  ;;  %v4436_v32 = vld [vmem:[%s7716_s5 + $0x3c0] sm:$0xff] }
 0x167   : > { %1240 = vmatpush1.msra.mxu1 %v1209_v33  ;;  %v4400_v33 = vld [vmem:[%s7716_s5 + $0x2a0] sm:$0xff] }
 0x168   : > { %1241 = vmatprep.subr.mxu1 %v1208_v35  ;;  %v4435_v35 = vld [vmem:[%s7716_s5 + $0x3b8] sm:$0xff] }
 0x169   : > { %1242 = vmatpush1.msra.mxu1 %v1207_v36  ;;  %v4399_v36 = vld [vmem:[%s7716_s5 + $0x298] sm:$0xff] }
 0x16a   : > { %1243 = vmatprep.subr.mxu1 %v1206_v37  ;;  %v4434_v37 = vld [vmem:[%s7716_s5 + $0x3b0] sm:$0xff] }
 0x16b   : > { %1244 = vmatpush1.msra.mxu1 %v1205_v40  ;;  %v4398_v40 = vld [vmem:[%s7716_s5 + $0x290] sm:$0xff] }
 0x16c   : > { %1245 = vmatprep.subr.mxu1 %v1204_v41  ;;  %v4433_v41 = vld [vmem:[%s7716_s5 + $0x3a8] sm:$0xff] }
 0x16d   : > { %1246 = vmatpush1.msra.mxu1 %v1203_v42  ;;  %v4397_v42 = vld [vmem:[%s7716_s5 + $0x288] sm:$0xff] }
 0x16e   : > { %1247 = vmatprep.subr.mxu1 %v1202_v43  ;;  %v4432_v43 = vld [vmem:[%s7716_s5 + $0x3a0] sm:$0xff] }
 0x16f   : > { %1248 = vmatpush1.msra.mxu1 %v1201_v45  ;;  %v4431_v45 = vld [vmem:[%s7716_s5 + $0x398] sm:$0xff] }
 0x170   : > { %1249 = vmatprep.subr.mxu1 %v1200_v47  ;;  %v4430_v47 = vld [vmem:[%s7716_s5 + $0x390] sm:$0xff] }
 0x171   : > { %1250 = vmatpush1.msra.mxu1 %v1199_v49  ;;  %v4429_v49 = vld [vmem:[%s7716_s5 + $0x388] sm:$0xff] }
 0x172   : > { %1251 = vmatprep.subr.mxu1 %v1198_v51  ;;  %v4428_v51 = vld [vmem:[%s7716_s5 + $0x380] sm:$0xff] }
 0x173   : > { %1252 = vmatpush1.msra.mxu1 %v1197_v53  ;;  %v4427_v53 = vld [vmem:[%s7716_s5 + $0x378] sm:$0xff] }
 0x174   : > { %1253 = vmatprep.subr.mxu1 %v1196_v55  ;;  %v4426_v55 = vld [vmem:[%s7716_s5 + $0x370] sm:$0xff] }
 0x175   : > { %1254 = vmatpush1.msra.mxu1 %v1195_v57  ;;  %v4425_v57 = vld [vmem:[%s7716_s5 + $0x368] sm:$0xff] }
 0x176   : > { %1255 = vmatprep.subr.mxu1 %v1194_v59  ;;  %v4424_v59 = vld [vmem:[%s7716_s5 + $0x360] sm:$0xff] }
 0x177   : > { %1256 = vmatpush1.msra.mxu1 %v1193_v61  ;;  %v4423_v61 = vld [vmem:[%s7716_s5 + $0x358] sm:$0xff] }
 0x178   : > { %1449 = vmatprep.subr.mxu1 %v4411_v0  ;;  %v4386_v0 = vld [vmem:[%s7716_s5 + $0x230] sm:$0xff] }
 0x210   : > { %v4676_v5 = vpop.f32.mrf.mxu1 }
 0x212   : > { %v1082_v6 = vpop.f32.mrf.mxu1 }
 0x218   : > { %v4687_v7 = vpop.f32.mrf.mxu1 }
 0x219   : > { %v1176_v8 = vmax.f32 %v4676_v5, %v4687_v7  ;;  %v4384_v5 = vld [vmem:[%s7716_s5 + $0x220] sm:$0xff]  ;;  %v4383_v7 = vld [vmem:[%s7716_s5 + $0x218] sm:$0xff] }
 0x21a   : > { %v1166_v9 = vpop.f32.mrf.mxu1 }
 0x21b   : > { %v5781_v10 = vmax.f32 %v1176_v8, 0.0  ;;  %v1175_v11 = vmax.f32 %v1082_v6, %v1166_v9  ;;  %v4419_v6 = vld [vmem:[%s7716_s5 + $0x338] sm:$0xff]  ;;  %v4418_v8 = vld [vmem:[%s7716_s5 + $0x330] sm:$0xff] }
 0x21c   : > { %v4382_v9 = vld [vmem:[%s7716_s5 + $0x210] sm:$0xff] }
 0x21d   : > { %v5783_v12 = vmax.f32 %v1175_v11, 0.0  ;;  %v1335_v15 = vrot.slane %v5781_v10, 1  ;;  %v4417_v11 = vld [vmem:[%s7716_s5 + $0x328] sm:$0xff] }
 0x21f   : > { %1290 = vmatmul.mubr.f32.vlgmr.msra.gmra.mxu1 %v5783_v12  ;;  %v1334_v17 = vrot.slane %v5783_v12, 1 }
 0x220   : > { %1450 = vmatpush1.msra.mxu1 %v4410_v13  ;;  %1513 = vmatprep.mubr.f32.mxu1 %v7727_v1  ;;  %v4381_v13 = vld [vmem:[%s7716_s5 + $0x208] sm:$0xff] }
 0x221   : > { %1451 = vmatprep.subr.mxu1 %v4409_v14  ;;  %v1336_v20 = vsel %vm1333_vm1, %v1334_v17, %v1335_v15  ;;  %v4416_v14 = vld [vmem:[%s7716_s5 + $0x320] sm:$0xff]  ;;  %v1445_v15 = vrot.slane %v5783_v12, 2  ;;  %v4415_v17 = vld [vmem:[%s7716_s5 + $0x318] sm:$0xff] }
 0x222   : > { %1452 = vmatpush1.msra.mxu1 %v4408_v16  ;;  %1403 = vmatmul.mubr.f32.vlgmr.msra.gmra.mxu0 %v1336_v20  ;;  %v4380_v16 = vld [vmem:[%s7716_s5 + $0x200] sm:$0xff]  ;;  %v4475_v20 = vld [vmem:[%s7716_s5 + $0x4f8] sm:$0xff] }
 0x223   : > { %1453 = vmatprep.subr.mxu1 %v4407_v18  ;;  %1561 = vmatpush1.msra.mxu0 %v4442_v19  ;;  %v1446_v18 = vrot.slane %v5781_v10, 2  ;;  %v4414_v19 = vld [vmem:[%s7716_s5 + $0x310] sm:$0xff] }
 0x224   : > { %1454 = vmatpush1.msra.mxu1 %v4406_v21  ;;  %1562 = vmatprep.subr.mxu0 %v4441_v22  ;;  %v4413_v21 = vld [vmem:[%s7716_s5 + $0x308] sm:$0xff] }
 0x225   : > { %1455 = vmatprep.subr.mxu1 %v4405_v23  ;;  %1563 = vmatpush1.msra.mxu0 %v4440_v24  ;;  %v1447_v22 = vsel %vm1444_vm2, %v1445_v15, %v1446_v18  ;;  %v4474_v23 = vld [vmem:[%s7716_s5 + $0x4f0] sm:$0xff]  ;;  %v4412_v24 = vld [vmem:[%s7716_s5 + $0x300] sm:$0xff]  ;;  %v4483_v18 = vld [vmem:[%s7718_s7 + $0xb8] sm:$0xff] }
 0x226   : > { %1456 = vmatpush1.msra.mxu1 %v4404_v25  ;;  %1564 = vmatprep.subr.mxu0 %v4439_v26  ;;  %v1556_v25 = vrot.slane %v5783_v12, 3  ;;  %v4473_v26 = vld [vmem:[%s7716_s5 + $0x4e8] sm:$0xff]  ;;  %v1760_v15 = vld [vmem:[%s7718_s7 + $0x40] sm:$0xff] }
 0x227   : > { %1457 = vmatprep.subr.mxu1 %v4403_v27  ;;  %1565 = vmatpush1.msra.mxu0 %v4438_v28  ;;  %v1557_v27 = vrot.slane %v5781_v10, 3  ;;  %v4472_v28 = vld [vmem:[%s7716_s5 + $0x4e0] sm:$0xff] }
 0x228   : > { %1458 = vmatpush1.msra.mxu1 %v4402_v29  ;;  %1566 = vmatprep.subr.mxu0 %v4437_v30  ;;  %v4471_v29 = vld [vmem:[%s7716_s5 + $0x4d8] sm:$0xff] }
 0x229   : > { %1459 = vmatprep.subr.mxu1 %v4401_v31  ;;  %1567 = vmatpush1.msra.mxu0 %v4436_v32  ;;  %v1558_v30 = vsel %vm1555_vm3, %v1556_v25, %v1557_v27  ;;  %v4470_v31 = vld [vmem:[%s7716_s5 + $0x4d0] sm:$0xff]  ;;  %v4469_v32 = vld [vmem:[%s7716_s5 + $0x4c8] sm:$0xff]  ;;  %v4480_v25 = vld [vmem:[%s7718_s7 + $0xa0] sm:$0xff] }
 0x22a   : > { %1460 = vmatpush1.msra.mxu1 %v4400_v33  ;;  %1568 = vmatprep.subr.mxu0 %v4435_v35  ;;  %v4468_v33 = vld [vmem:[%s7716_s5 + $0x4c0] sm:$0xff]  ;;  %v4467_v35 = vld [vmem:[%s7716_s5 + $0x4b8] sm:$0xff] }
 0x22b   : > { %1461 = vmatprep.subr.mxu1 %v4399_v36  ;;  %1569 = vmatpush1.msra.mxu0 %v4434_v37  ;;  %v4466_v36 = vld [vmem:[%s7716_s5 + $0x4b0] sm:$0xff]  ;;  %v4465_v37 = vld [vmem:[%s7716_s5 + $0x4a8] sm:$0xff]  ;;  %v4479_v27 = vld [vmem:[%s7718_s7 + $0x98] sm:$0xff] }
 0x22c   : > { %1462 = vmatpush1.msra.mxu1 %v4398_v40  ;;  %1570 = vmatprep.subr.mxu0 %v4433_v41  ;;  %v4464_v40 = vld [vmem:[%s7716_s5 + $0x4a0] sm:$0xff]  ;;  %v4463_v41 = vld [vmem:[%s7716_s5 + $0x498] sm:$0xff] }
 0x22d   : > { %1463 = vmatprep.subr.mxu1 %v4397_v42  ;;  %1571 = vmatpush1.msra.mxu0 %v4432_v43  ;;  %v4462_v42 = vld [vmem:[%s7716_s5 + $0x490] sm:$0xff]  ;;  %v4461_v43 = vld [vmem:[%s7716_s5 + $0x488] sm:$0xff] }
 0x22e   : > { %1464 = vmatpush1.msra.mxu1 %v4396_v44  ;;  %1572 = vmatprep.subr.mxu0 %v4431_v45  ;;  %v4460_v44 = vld [vmem:[%s7716_s5 + $0x480] sm:$0xff]  ;;  %v4459_v45 = vld [vmem:[%s7716_s5 + $0x478] sm:$0xff] }
 0x22f   : > { %1465 = vmatprep.subr.mxu1 %v4395_v46  ;;  %1573 = vmatpush1.msra.mxu0 %v4430_v47  ;;  %v4458_v46 = vld [vmem:[%s7716_s5 + $0x470] sm:$0xff]  ;;  %v4457_v47 = vld [vmem:[%s7716_s5 + $0x468] sm:$0xff] }
 0x230   : > { %1466 = vmatpush1.msra.mxu1 %v4394_v48  ;;  %1574 = vmatprep.subr.mxu0 %v4429_v49  ;;  %v4456_v48 = vld [vmem:[%s7716_s5 + $0x460] sm:$0xff]  ;;  %v4455_v49 = vld [vmem:[%s7716_s5 + $0x458] sm:$0xff] }
 0x231   : > { %1467 = vmatprep.subr.mxu1 %v4393_v50  ;;  %1575 = vmatpush1.msra.mxu0 %v4428_v51  ;;  %v4454_v50 = vld [vmem:[%s7716_s5 + $0x450] sm:$0xff]  ;;  %v4453_v51 = vld [vmem:[%s7716_s5 + $0x448] sm:$0xff] }
 0x232   : > { %1468 = vmatpush1.msra.mxu1 %v4392_v52  ;;  %1576 = vmatprep.subr.mxu0 %v4427_v53  ;;  %v4452_v52 = vld [vmem:[%s7716_s5 + $0x440] sm:$0xff]  ;;  %v4451_v53 = vld [vmem:[%s7716_s5 + $0x438] sm:$0xff] }
 0x233   : > { %1469 = vmatprep.subr.mxu1 %v4391_v54  ;;  %1577 = vmatpush1.msra.mxu0 %v4426_v55  ;;  %v4450_v54 = vld [vmem:[%s7716_s5 + $0x430] sm:$0xff]  ;;  %v4449_v55 = vld [vmem:[%s7716_s5 + $0x428] sm:$0xff] }
 0x234   : > { %1470 = vmatpush1.msra.mxu1 %v4390_v56  ;;  %1578 = vmatprep.subr.mxu0 %v4425_v57  ;;  %v4448_v56 = vld [vmem:[%s7716_s5 + $0x420] sm:$0xff]  ;;  %v4447_v57 = vld [vmem:[%s7716_s5 + $0x418] sm:$0xff] }
 0x235   : > { %1471 = vmatprep.subr.mxu1 %v4389_v58  ;;  %1579 = vmatpush1.msra.mxu0 %v4424_v59  ;;  %v4446_v58 = vld [vmem:[%s7716_s5 + $0x410] sm:$0xff]  ;;  %v4445_v59 = vld [vmem:[%s7716_s5 + $0x408] sm:$0xff] }
 0x236   : > { %1472 = vmatpush1.msra.mxu1 %v4388_v60  ;;  %1580 = vmatprep.subr.mxu0 %v4423_v61  ;;  %v1667_v60 = vrot.slane %v5783_v12, 4  ;;  %v4444_v61 = vld [vmem:[%s7716_s5 + $0x400] sm:$0xff]  ;;  %v1766_v12 = vld [vmem:[%s7718_s7 + $0x70] sm:$0xff] }
 0x237   : > { %1473 = vmatprep.subr.mxu1 %v4387_v62  ;;  %1581 = vmatpush1.msra.mxu0 %v4422_v63  ;;  %v1668_v62 = vrot.slane %v5781_v10, 4  ;;  %v4490_v10 = vld [vmem:[%s7718_s7 + $0xf0] sm:$0xff] }
 0x238   : > { %1474 = vmatpush1.msra.mxu1 %v4386_v0  ;;  %1582 = vmatprep.subr.mxu0 %v4421_v2  ;;  %v1767_v0 = vld [vmem:[%s7718_s7 + $0x78] sm:$0xff] }
 0x239   : > { %1475 = vmatprep.subr.mxu1 %v4385_v3  ;;  %1583 = vmatpush1.msra.mxu0 %v4420_v4  ;;  %v1669_v63 = vsel %vm1666_vm4, %v1667_v60, %v1668_v62  ;;  %v4491_v2 = vld [vmem:[%s7718_s7 + $0xf8] sm:$0xff]  ;;  %v1765_v3 = vld [vmem:[%s7718_s7 + $0x68] sm:$0xff] }
 0x23a   : > { %1476 = vmatpush1.msra.mxu1 %v4384_v5  ;;  %1584 = vmatprep.subr.mxu0 %v4419_v6  ;;  %v4489_v4 = vld [vmem:[%s7718_s7 + $0xe8] sm:$0xff]  ;;  %v1764_v5 = vld [vmem:[%s7718_s7 + $0x60] sm:$0xff] }
 0x23b   : > { %1477 = vmatprep.subr.mxu1 %v4383_v7  ;;  %1585 = vmatpush1.msra.mxu0 %v4418_v8  ;;  %v4488_v6 = vld [vmem:[%s7718_s7 + $0xe0] sm:$0xff]  ;;  %v1763_v7 = vld [vmem:[%s7718_s7 + $0x58] sm:$0xff] }
 0x23c   : > { %1478 = vmatpush1.msra.mxu1 %v4382_v9  ;;  %1586 = vmatprep.subr.mxu0 %v4417_v11  ;;  %v4487_v8 = vld [vmem:[%s7718_s7 + $0xd8] sm:$0xff]  ;;  %v1762_v9 = vld [vmem:[%s7718_s7 + $0x50] sm:$0xff] }
 0x23d   : > { %1479 = vmatprep.subr.mxu1 %v4381_v13  ;;  %1587 = vmatpush1.msra.mxu0 %v4416_v14  ;;  %v4486_v11 = vld [vmem:[%s7718_s7 + $0xd0] sm:$0xff]  ;;  %v1761_v13 = vld [vmem:[%s7718_s7 + $0x48] sm:$0xff] }
 0x23e   : > { %1480 = vmatpush1.msra.mxu1 %v4380_v16  ;;  %1588 = vmatprep.subr.mxu0 %v4415_v17  ;;  %v4485_v14 = vld [vmem:[%s7718_s7 + $0xc8] sm:$0xff]  ;;  %v4484_v16 = vld [vmem:[%s7718_s7 + $0xc0] sm:$0xff]  ;;  %v1759_v17 = vld [vmem:[%s7718_s7 + $0x38] sm:$0xff] }
 0x23f   : > { %1514 = vmatmul.mubr.f32.vlgmr.msra.gmra.mxu1 %v1447_v22  ;;  %1589 = vmatpush1.msra.mxu0 %v4414_v19  ;;  %v1758_v19 = vld [vmem:[%s7718_s7 + $0x30] sm:$0xff]  ;;  %v1756_v22 = vld [vmem:[%s7718_s7 + $0x20] sm:$0xff] }
 0x240   : > { %1671 = vmatprep.subr.mxu1 %v4475_v20  ;;  %1590 = vmatprep.subr.mxu0 %v4413_v21  ;;  %v1757_v20 = vld [vmem:[%s7718_s7 + $0x28] sm:$0xff]  ;;  %v4482_v21 = vld [vmem:[%s7718_s7 + $0xb0] sm:$0xff] }
 0x241   : > { %1672 = vmatpush1.msra.mxu1 %v4474_v23  ;;  %1591 = vmatpush1.msra.mxu0 %v4412_v24  ;;  %v4481_v23 = vld [vmem:[%s7718_s7 + $0xa8] sm:$0xff]  ;;  %v1755_v24 = vld [vmem:[%s7718_s7 + $0x18] sm:$0xff] }
 0x242   : > { %1624 = vmatprep.mubr.f32.mxu0 %v7727_v1  ;;  %1673 = vmatprep.subr.mxu1 %v4473_v26  ;;  %v1754_v26 = vld [vmem:[%s7718_s7 + $0x10] sm:$0xff] }
 0x243   : > { %1625 = vmatmul.mubr.f32.vlgmr.msra.gmra.mxu0 %v1558_v30  ;;  %1674 = vmatpush1.msra.mxu1 %v4472_v28  ;;  %v1753_v28 = vld [vmem:[%s7718_s7 + $0x8] sm:$0xff]  ;;  %v1752_v30 = vld [vmem:[%s7718_s7] sm:$0xff] }
 0x244   : > { %1675 = vmatprep.subr.mxu1 %v4471_v29  ;;  %1735 = vmatprep.mubr.f32.mxu1 %v7727_v1  ;;  %v4478_v29 = vld [vmem:[%s7718_s7 + $0x90] sm:$0xff] }
 0x245   : > { %1676 = vmatpush1.msra.mxu1 %v4470_v31  ;;  %4688 = vmatprep.subr.mxu0 %v7727_v1  ;;  %v4477_v31 = vld [vmem:[%s7718_s7 + $0x88] sm:$0xff] }
 0x246   : > { %1677 = vmatprep.subr.mxu1 %v4469_v32  ;;  %4689 = vmatpush3.msra.mxu0 %v1767_v0  ;;  %v4476_v32 = vld [vmem:[%s7718_s7 + $0x80] sm:$0xff] }
 0x247   : > { %1678 = vmatpush1.msra.mxu1 %v4468_v33  ;;  %4690 = vmatprep.subr.mxu0 %v7727_v1  ;;  %v1179_v33 = vld [vmem:[%s7717_s6] sm:$0x3] }
 0x248   : > { %1679 = vmatprep.subr.mxu1 %v4467_v35  ;;  %4691 = vmatpush3.msra.mxu0 %v1766_v12  ;;  %v4506_v12 = vld [vmem:[%s7718_s7 + $0x170] sm:$0xff] }
 0x249   : > { %1680 = vmatpush1.msra.mxu1 %v4466_v36  ;;  %4692 = vmatprep.subr.mxu0 %v7727_v1  ;;  %v1184_v36 = vrot.slane %v1179_v33, %v5616_v38 }
 0x24a   : > { %1681 = vmatprep.subr.mxu1 %v4465_v37  ;;  %4693 = vmatpush3.msra.mxu0 %v1765_v3  ;;  %v1188_v37 = vrot.slane %v1179_v33, %v5619_v39  ;;  %v4522_v3 = vld [vmem:[%s7718_s7 + $0x1f0] sm:$0xff]  ;;  %v4508_v33 = vld [vmem:[%s7718_s7 + $0x180] sm:$0xff] }
 0x24b   : > { %1682 = vmatpush1.msra.mxu1 %v4464_v40  ;;  %4694 = vmatprep.subr.mxu0 %v7727_v1 }
 0x24c   : > { %1683 = vmatprep.subr.mxu1 %v4463_v41  ;;  %4695 = vmatpush3.msra.mxu0 %v1764_v5  ;;  %v4521_v5 = vld [vmem:[%s7718_s7 + $0x1e8] sm:$0xff] }
 0x24d   : > { %1684 = vmatpush1.msra.mxu1 %v4462_v42  ;;  %4696 = vmatprep.subr.mxu0 %v7727_v1 }
 0x24e   : > { %1685 = vmatprep.subr.mxu1 %v4461_v43  ;;  %4697 = vmatpush3.msra.mxu0 %v1763_v7  ;;  %v4520_v7 = vld [vmem:[%s7718_s7 + $0x1e0] sm:$0xff] }
 0x24f   : > { %1686 = vmatpush1.msra.mxu1 %v4460_v44  ;;  %4698 = vmatprep.subr.mxu0 %v7727_v1 }
 0x250   : > { %1687 = vmatprep.subr.mxu1 %v4459_v45  ;;  %4699 = vmatpush3.msra.mxu0 %v1762_v9  ;;  %v4519_v9 = vld [vmem:[%s7718_s7 + $0x1d8] sm:$0xff] }
 0x251   : > { %1688 = vmatpush1.msra.mxu1 %v4458_v46  ;;  %4700 = vmatprep.subr.mxu0 %v7727_v1 }
 0x252   : > { %1689 = vmatprep.subr.mxu1 %v4457_v47  ;;  %4701 = vmatpush3.msra.mxu0 %v1761_v13  ;;  %v4518_v13 = vld [vmem:[%s7718_s7 + $0x1d0] sm:$0xff] }
 0x253   : > { %1690 = vmatpush1.msra.mxu1 %v4456_v48  ;;  %4702 = vmatprep.subr.mxu0 %v7727_v1 }
 0x254   : > { %1691 = vmatprep.subr.mxu1 %v4455_v49  ;;  %4703 = vmatpush3.msra.mxu0 %v1760_v15  ;;  %v4517_v15 = vld [vmem:[%s7718_s7 + $0x1c8] sm:$0xff] }
 0x255   : > { %1692 = vmatpush1.msra.mxu1 %v4454_v50  ;;  %4704 = vmatprep.subr.mxu0 %v7727_v1 }
 0x256   : > { %1693 = vmatprep.subr.mxu1 %v4453_v51  ;;  %4705 = vmatpush3.msra.mxu0 %v1759_v17  ;;  %v4516_v17 = vld [vmem:[%s7718_s7 + $0x1c0] sm:$0xff] }
 0x257   : > { %1694 = vmatpush1.msra.mxu1 %v4452_v52  ;;  %4706 = vmatprep.subr.mxu0 %v7727_v1 }
 0x258   : > { %1695 = vmatprep.subr.mxu1 %v4451_v53  ;;  %4707 = vmatpush3.msra.mxu0 %v1758_v19  ;;  %v4515_v19 = vld [vmem:[%s7718_s7 + $0x1b8] sm:$0xff] }
 0x259   : > { %1696 = vmatpush1.msra.mxu1 %v4450_v54  ;;  %4708 = vmatprep.subr.mxu0 %v7727_v1 }
 0x25a   : > { %1697 = vmatprep.subr.mxu1 %v4449_v55  ;;  %4709 = vmatpush3.msra.mxu0 %v1757_v20  ;;  %v4497_v20 = vld [vmem:[%s7718_s7 + $0x128] sm:$0xff] }
 0x25b   : > { %1698 = vmatpush1.msra.mxu1 %v4448_v56  ;;  %4710 = vmatprep.subr.mxu0 %v7727_v1 }
 0x25c   : > { %1699 = vmatprep.subr.mxu1 %v4447_v57  ;;  %4711 = vmatpush3.msra.mxu0 %v1756_v22  ;;  %v4496_v22 = vld [vmem:[%s7718_s7 + $0x120] sm:$0xff] }
 0x25d   : > { %1700 = vmatpush1.msra.mxu1 %v4446_v58  ;;  %4712 = vmatprep.subr.mxu0 %v7727_v1 }
 0x25e   : > { %1701 = vmatprep.subr.mxu1 %v4445_v59  ;;  %4713 = vmatpush3.msra.mxu0 %v1755_v24  ;;  %v4495_v24 = vld [vmem:[%s7718_s7 + $0x118] sm:$0xff] }
 0x25f   : > { %1702 = vmatpush1.msra.mxu1 %v4444_v61  ;;  %4714 = vmatprep.subr.mxu0 %v7727_v1 }
 0x260   : > { %1736 = vmatmul.mubr.f32.vlgmr.msra.gmra.mxu1 %v1669_v63  ;;  %4723 = vmatprep.subr.mxu1 %v7727_v1  ;;  %v4507_v63 = vld [vmem:[%s7718_s7 + $0x178] sm:$0xff] }
 0x261   : > { %4724 = vmatpush3.msra.mxu1 %v4491_v2  ;;  %4715 = vmatpush3.msra.mxu0 %v1754_v26  ;;  %v4523_v2 = vld [vmem:[%s7718_s7 + $0x1f8] sm:$0xff]  ;;  %v4494_v26 = vld [vmem:[%s7718_s7 + $0x110] sm:$0xff] }
 0x262   : > { %4725 = vmatprep.subr.mxu1 %v7727_v1  ;;  %4716 = vmatprep.subr.mxu0 %v7727_v1 }
 0x263   : > { %4726 = vmatpush3.msra.mxu1 %v4490_v10  ;;  %4717 = vmatpush3.msra.mxu0 %v1753_v28  ;;  %v4505_v10 = vld [vmem:[%s7718_s7 + $0x168] sm:$0xff] }
 0x264   : > { %4727 = vmatprep.subr.mxu1 %v7727_v1  ;;  %4718 = vmatprep.subr.mxu0 %v7727_v1  ;;  %v4493_v28 = vld [vmem:[%s7718_s7 + $0x108] sm:$0xff] }
 0x265   : > { %4728 = vmatpush3.msra.mxu1 %v4489_v4  ;;  %4719 = vmatpush3.msra.mxu0 %v1752_v30  ;;  %v4504_v4 = vld [vmem:[%s7718_s7 + $0x160] sm:$0xff] }
 0x266   : > { %4729 = vmatprep.subr.mxu1 %v7727_v1  ;;  %4720 = vmatprep.mubr.msk.f32.mxu0 %vm4904_vm5, %v7727_v1  ;;  %v4492_v30 = vld [vmem:[%s7718_s7 + $0x100] sm:$0xff] }
 0x267   : > { %4730 = vmatpush3.msra.mxu1 %v4488_v6  ;;  %4758 = vmatprep.subr.mxu0 %v7727_v1  ;;  %v4503_v6 = vld [vmem:[%s7718_s7 + $0x158] sm:$0xff] }
 0x268   : > { %4731 = vmatprep.subr.mxu1 %v7727_v1  ;;  %4755 = vmatprep.mubr.msk.f32.mxu1 %vm4904_vm5, %v7727_v1 }
 0x269   : > { %4732 = vmatpush3.msra.mxu1 %v4487_v8  ;;  %v4502_v8 = vld [vmem:[%s7718_s7 + $0x150] sm:$0xff] }
 0x26a   : > { %4733 = vmatprep.subr.mxu1 %v7727_v1 }
 0x26b   : > { %4734 = vmatpush3.msra.mxu1 %v4486_v11  ;;  %v4501_v11 = vld [vmem:[%s7718_s7 + $0x148] sm:$0xff] }
 0x26c   : > { %4735 = vmatprep.subr.mxu1 %v7727_v1 }
 0x26d   : > { %4736 = vmatpush3.msra.mxu1 %v4485_v14  ;;  %v4500_v14 = vld [vmem:[%s7718_s7 + $0x140] sm:$0xff] }
 0x26e   : > { %4737 = vmatprep.subr.mxu1 %v7727_v1 }
 0x26f   : > { %4738 = vmatpush3.msra.mxu1 %v4484_v16  ;;  %v4499_v16 = vld [vmem:[%s7718_s7 + $0x138] sm:$0xff] }
 0x270   : > { %4739 = vmatprep.subr.mxu1 %v7727_v1 }
 0x271   : > { %4740 = vmatpush3.msra.mxu1 %v4483_v18  ;;  %v4498_v18 = vld [vmem:[%s7718_s7 + $0x130] sm:$0xff] }
 0x272   : > { %4741 = vmatprep.subr.mxu1 %v7727_v1 }
 0x273   : > { %4742 = vmatpush3.msra.mxu1 %v4482_v21  ;;  %v4514_v21 = vld [vmem:[%s7718_s7 + $0x1b0] sm:$0xff] }
 0x274   : > { %4743 = vmatprep.subr.mxu1 %v7727_v1 }
 0x275   : > { %4744 = vmatpush3.msra.mxu1 %v4481_v23  ;;  %v4513_v23 = vld [vmem:[%s7718_s7 + $0x1a8] sm:$0xff] }
 0x276   : > { %4745 = vmatprep.subr.mxu1 %v7727_v1 }
 0x277   : > { %4746 = vmatpush3.msra.mxu1 %v4480_v25  ;;  %v4512_v25 = vld [vmem:[%s7718_s7 + $0x1a0] sm:$0xff] }
 0x278   : > { %4747 = vmatprep.subr.mxu1 %v7727_v1 }
 0x279   : > { %4748 = vmatpush3.msra.mxu1 %v4479_v27  ;;  %v4511_v27 = vld [vmem:[%s7718_s7 + $0x198] sm:$0xff] }
 0x27a   : > { %4749 = vmatprep.subr.mxu1 %v7727_v1 }
 0x27b   : > { %4750 = vmatpush3.msra.mxu1 %v4478_v29  ;;  %v4510_v29 = vld [vmem:[%s7718_s7 + $0x190] sm:$0xff] }
 0x27c   : > { %4751 = vmatprep.subr.mxu1 %v7727_v1 }
 0x27d   : > { %4752 = vmatpush3.msra.mxu1 %v4477_v31  ;;  %v4509_v31 = vld [vmem:[%s7718_s7 + $0x188] sm:$0xff] }
 0x27e   : > { %4753 = vmatprep.subr.mxu1 %v7727_v1 }
 0x27f   : > { %4754 = vmatpush3.msra.mxu1 %v4476_v32 }
 0x280   : > { %4793 = vmatprep.subr.mxu1 %v7727_v1 }
 0x2df   : > { %v1291_v35 = vpop.f32.mrf.mxu1 }
 0x2e0   : > { %v1296_v43 = vadd.f32 %v1291_v35, %v1184_v36  ;;  %v2114_v36 = vld [vmem:[%s7720_s9 + $0x18] sm:$0xff] }
 0x2e1   : > { %v1293_v40 = vpop.f32.mrf.mxu1 }
 0x2e2   : > { %v1404_v41 = vpop.f32.mrf.mxu0  ;;  %v1297_v44 = vadd.f32 %v1293_v40, %v1188_v37  ;;  %v2113_v37 = vld [vmem:[%s7720_s9 + $0x10] sm:$0xff]  ;;  %v2112_v40 = vld [vmem:[%s7720_s9 + $0x8] sm:$0xff] }
 0x2e3   : > { %v1409_v48 = vadd.f32 %v1404_v41, %v1296_v43  ;;  %v2111_v41 = vld [vmem:[%s7720_s9] sm:$0xff] }
 0x2e4   : > { %v1406_v45 = vpop.f32.mrf.mxu0 }
 0x2e5   : > { %v1410_v49 = vadd.f32 %v1406_v45, %v1297_v44 }
 0x2ff   : > { %v1515_v42 = vpop.f32.mrf.mxu1 }
 0x300   : > { %v1520_v50 = vadd.f32 %v1515_v42, %v1409_v48 }
 0x301   : > { %v1517_v46 = vpop.f32.mrf.mxu1 }
 0x302   : > { %v1521_v51 = vadd.f32 %v1517_v46, %v1410_v49  ;;  %v1745_v46 = vld [vmem:[%s7719_s8] sm:$0x1] }
 0x303   : > { %v1626_v47 = vpop.f32.mrf.mxu0 }
 0x304   : > { %v1631_v54 = vadd.f32 %v1626_v47, %v1520_v50 }
 0x305   : > { %v1628_v52 = vpop.f32.mrf.mxu0 }
 0x306   : > { %v1632_v55 = vadd.f32 %v1628_v52, %v1521_v51 }
 0x320   : > { %v1737_v53 = vpop.f32.mrf.mxu1 }
 0x321   : > { %v1742_v57 = vadd.f32 %v1737_v53, %v1631_v54 }
 0x322   : > { %v1739_v56 = vpop.f32.mrf.mxu1 }
 0x323   : > { %v1743_v58 = vadd.f32 %v1739_v56, %v1632_v55  ;;  %v4905_v56 = vmov 2  }
 0x324   : > { %4859 = vset.pattern.permute.xlu1 %v4905_v56 }
 0x325   : > { %v1744_v59 = vmax.f32 %v1742_v57, %v1743_v58  ;;  %v4906_v57 = vmov 0   ;;  %v2115_v58 = vld [vmem:[%s7721_s10] sm:$0x1] }
 0x326   : > { %4857 = vset.pattern.permute.xlu0 %v4906_v57 }
 0x327   : > { %v1748_v60 = vrot.slane %v1744_v59, 1 }
 0x329   : > { %v1750_v61 = vmax.f32 %v1744_v59, %v1748_v60 }
 0x32b   : > { %v6218_v62 = vmax.f32 %v1750_v61, 0.0 }
 0x32d   : > { %4721 = vmatmul.mubr.f32.vlgmr.msra.gmra.mxu0 %v6218_v62  ;;  %v1857_v0 = vrot.slane %v6218_v62, 2  ;;  %v1947_v32 = vrot.slane %v6218_v62, 4  ;;  %v2037_v35 = vrot.slane %v6218_v62, 6  ;;  %v4907_v62 = vmov 3  }
 0x32e   : > { %4759 = vmatpush3.msra.mxu0 %v4507_v63  ;;  %4790 = vmatprep.mubr.msk.f32.mxu0 %vm4904_vm5, %v7727_v1  ;;  %v4908_v63 = vmov 1  }
 0x32f   : > { %4760 = vmatprep.subr.mxu0 %v7727_v1  ;;  %4756 = vmatmul.mubr.f32.vlgmr.msra.gmra.mxu1 %v1857_v0  ;;  %v4909_v0 = vmov 4  }
 0x330   : > { %4761 = vmatpush3.msra.mxu0 %v4506_v12  ;;  %4794 = vmatpush3.msra.mxu1 %v4523_v2  ;;  %v4910_v12 = vmov 5  }
 0x331   : > { %4762 = vmatprep.subr.mxu0 %v7727_v1  ;;  %4795 = vmatprep.subr.mxu1 %v7727_v1 }
 0x332   : > { %4763 = vmatpush3.msra.mxu0 %v4505_v10  ;;  %4796 = vmatpush3.msra.mxu1 %v4522_v3  ;;  %v2208_v10 = vsub.s32 2, %v5613_v34  ;;  %v2216_v3 = vsub.s32 4, %v5613_v34 }
 0x333   : > { %4764 = vmatprep.subr.mxu0 %v7727_v1  ;;  %4797 = vmatprep.subr.mxu1 %v7727_v1 }
 0x334   : > { %4765 = vmatpush3.msra.mxu0 %v4504_v4  ;;  %4798 = vmatpush3.msra.mxu1 %v4521_v5  ;;  %v2189_v4 = vld [vmem:[%s7722_s11] ss:$2 sm:$0xff]  ;;  %v2212_v5 = vsub.s32 3, %v5613_v34 }
 0x335   : > { %4766 = vmatprep.subr.mxu0 %v7727_v1  ;;  %4799 = vmatprep.subr.mxu1 %v7727_v1 }
 0x336   : > { %4767 = vmatpush3.msra.mxu0 %v4503_v6  ;;  %4800 = vmatpush3.msra.mxu1 %v4520_v7  ;;  %v2220_v6 = vsub.s32 5, %v5613_v34  ;;  %v2224_v7 = vsub.s32 6, %v5613_v34 }
 0x337   : > { %4768 = vmatprep.subr.mxu0 %v7727_v1  ;;  %4801 = vmatprep.subr.mxu1 %v7727_v1 }
 0x338   : > { %4769 = vmatpush3.msra.mxu0 %v4502_v8  ;;  %4802 = vmatpush3.msra.mxu1 %v4519_v9  ;;  %v2228_v8 = vsub.s32 7, %v5613_v34  ;;  %v4525_v9 = vld [vmem:[%s7722_s11 + $0x1] ss:$2 sm:$0xff] }
 0x339   : > { %4770 = vmatprep.subr.mxu0 %v7727_v1  ;;  %4803 = vmatprep.subr.mxu1 %v7727_v1  ;;  %v2258_v34 = vrot.slane %v4525_v9, %v5619_v39 }
 0x33a   : > { %4771 = vmatpush3.msra.mxu0 %v4501_v11  ;;  %4804 = vmatpush3.msra.mxu1 %v4518_v13  ;;  %v2201_v11 = vrot.slane %v2189_v4, %v5616_v38  ;;  %v2205_v13 = vrot.slane %v2189_v4, %v5619_v39 }
 0x33b   : > { %4772 = vmatprep.subr.mxu0 %v7727_v1  ;;  %4805 = vmatprep.subr.mxu1 %v7727_v1 }
 0x33c   : > { %4773 = vmatpush3.msra.mxu0 %v4500_v14  ;;  %4806 = vmatpush3.msra.mxu1 %v4517_v15  ;;  %v2209_v15 = vrot.slane %v2189_v4, %v2208_v10 }
 0x33d   : > { %4774 = vmatprep.subr.mxu0 %v7727_v1  ;;  %4807 = vmatprep.subr.mxu1 %v7727_v1 }
 0x33e   : > { %4775 = vmatpush3.msra.mxu0 %v4499_v16  ;;  %4808 = vmatpush3.msra.mxu1 %v4516_v17  ;;  %v2217_v16 = vrot.slane %v2189_v4, %v2216_v3 }
 0x33f   : > { %4776 = vmatprep.subr.mxu0 %v7727_v1  ;;  %4809 = vmatprep.subr.mxu1 %v7727_v1 }
 0x340   : > { %4777 = vmatpush3.msra.mxu0 %v4498_v18  ;;  %4810 = vmatpush3.msra.mxu1 %v4515_v19  ;;  %v2225_v18 = vrot.slane %v2189_v4, %v2224_v7  ;;  %v2213_v19 = vrot.slane %v2189_v4, %v2212_v5 }
 0x341   : > { %4778 = vmatprep.subr.mxu0 %v7727_v1  ;;  %4811 = vmatprep.subr.mxu1 %v7727_v1 }
 0x342   : > { %4779 = vmatpush3.msra.mxu0 %v4497_v20  ;;  %4812 = vmatpush3.msra.mxu1 %v4514_v21  ;;  %v2221_v20 = vrot.slane %v2189_v4, %v2220_v6  ;;  %v2229_v21 = vrot.slane %v2189_v4, %v2228_v8 }
 0x343   : > { %4780 = vmatprep.subr.mxu0 %v7727_v1  ;;  %4813 = vmatprep.subr.mxu1 %v7727_v1 }
 0x344   : > { %4781 = vmatpush3.msra.mxu0 %v4496_v22  ;;  %4814 = vmatpush3.msra.mxu1 %v4513_v23  ;;  %v2254_v22 = vrot.slane %v4525_v9, %v5616_v38  ;;  %v2262_v23 = vrot.slane %v4525_v9, %v2208_v10 }
 0x345   : > { %4782 = vmatprep.subr.mxu0 %v7727_v1  ;;  %4815 = vmatprep.subr.mxu1 %v7727_v1 }
 0x346   : > { %4783 = vmatpush3.msra.mxu0 %v4495_v24  ;;  %4816 = vmatpush3.msra.mxu1 %v4512_v25  ;;  %v2266_v24 = vrot.slane %v4525_v9, %v2212_v5  ;;  %v2270_v25 = vrot.slane %v4525_v9, %v2216_v3 }
 0x347   : > { %4784 = vmatprep.subr.mxu0 %v7727_v1  ;;  %4817 = vmatprep.subr.mxu1 %v7727_v1 }
 0x348   : > { %4785 = vmatpush3.msra.mxu0 %v4494_v26  ;;  %4818 = vmatpush3.msra.mxu1 %v4511_v27  ;;  %v2274_v26 = vrot.slane %v4525_v9, %v2220_v6  ;;  %v2278_v27 = vrot.slane %v4525_v9, %v2224_v7 }
 0x349   : > { %4786 = vmatprep.subr.mxu0 %v7727_v1  ;;  %4819 = vmatprep.subr.mxu1 %v7727_v1 }
 0x34a   : > { %4787 = vmatpush3.msra.mxu0 %v4493_v28  ;;  %4820 = vmatpush3.msra.mxu1 %v4510_v29  ;;  %v2282_v28 = vrot.slane %v4525_v9, %v2228_v8 }
 0x34b   : > { %4788 = vmatprep.subr.mxu0 %v7727_v1  ;;  %4821 = vmatprep.subr.mxu1 %v7727_v1 }
 0x34c   : > { %4789 = vmatpush3.msra.mxu0 %v4492_v30  ;;  %4822 = vmatpush3.msra.mxu1 %v4509_v31 }
 0x34d   : > { %4791 = vmatmul.mubr.f32.vlgmr.msra.gmra.mxu0 %v1947_v32  ;;  %4823 = vmatprep.subr.mxu1 %v7727_v1 }
 0x34e   : > { %4824 = vmatpush3.msra.mxu1 %v4508_v33  ;;  %4825 = vmatprep.mubr.msk.f32.mxu1 %vm4904_vm5, %v7727_v1 }
 0x34f   : > { %4826 = vmatmul.mubr.f32.vlgmr.msra.gmra.mxu1 %v2037_v35  ;;  %4828 = vmatprep.subr.mxu0 %v7727_v1 }
 0x350   : > { %4836 = vmatprep.mubr.msk.f32.mxu0 %vm4904_vm5, %v7727_v1  ;;  %3348 = vmatprep.mubr.f32.mxu1 %v7727_v1 }
 0x351   : > { %4829 = vmatpush3.msra.mxu0 %v2114_v36 }
 0x352   : > { %4830 = vmatprep.subr.mxu0 %v7727_v1 }
 0x353   : > { %4831 = vmatpush3.msra.mxu0 %v2113_v37 }
 0x354   : > { %4832 = vmatprep.subr.mxu0 %v7727_v1 }
 0x355   : > { %4833 = vmatpush3.msra.mxu0 %v2112_v40 }
 0x356   : > { %4834 = vmatprep.subr.mxu0 %v7727_v1 }
 0x357   : > { %4835 = vmatpush3.msra.mxu0 %v2111_v41 }
 0x3ed   : > { %v1834_v42 = vpop.f32.mrf.mxu0 }
 0x3ee   : > { %v1838_v47 = vadd.f32 %v1834_v42, %v1745_v46 }
 0x3ef   : > { %v4722_v43 = vpop.f32.mrf.mxu0  ;;  %v1925_v44 = vpop.f32.mrf.mxu1 }
 0x3f0   : > { %v1929_v48 = vadd.f32 %v1925_v44, %v1838_v47 }
 0x3f1   : > { %v4757_v45 = vpop.f32.mrf.mxu1 }
 0x40d   : > { %v2015_v49 = vpop.f32.mrf.mxu0 }
 0x40e   : > { %v2019_v50 = vadd.f32 %v2015_v49, %v1929_v48 }
 0x40f   : > { %v4792_v51 = vpop.f32.mrf.mxu0  ;;  %v2105_v52 = vpop.f32.mrf.mxu1 }
 0x410   : > { %v2109_v53 = vadd.f32 %v2105_v52, %v2019_v50 }
 0x411   : > { %v4827_v54 = vpop.f32.mrf.mxu1 }
 0x412   : > { %v2110_v55 = vmax.f32 %v2109_v53, 0.0 }
 0x414   : > { %4837 = vmatmul.mubr.msk.f32.vlgmr.msra.gmra.mxu0 %vm724_vm0, %v2110_v55 }
 0x415   : > { %3211 = vmatprep.mubr.f32.mxu0 %v7727_v1 }
 0x4d4   : > { %v2185_v59 = vpop.f32.mrf.mxu0 }
 0x4d5   : > { %v2186_v60 = vadd.f32 %v2185_v59, %v2115_v58 }
 0x4d6   : > { %v4838_v61 = vpop.f32.mrf.mxu0 }
 0x4d7   : > { %2308 = vperm.xlu1 %4859, %v2186_v60   ;;  %2194 = vperm.xlu0 %4857, %v2186_v60  }
 0x4db   : > { %4860 = vset.pattern.permute.xlu1 %v4907_v62  ;;  %4858 = vset.pattern.permute.xlu0 %v4908_v63 }
 0x4dc   : > { %2336 = vperm.xlu1 %4860, %v2186_v60   ;;  %2247 = vperm.xlu0 %4858, %v2186_v60  }
 0x4e0   : > { %4861 = vset.pattern.permute.xlu1 %v4909_v0  ;;  %4862 = vset.pattern.permute.xlu0 %v4910_v12 }
 0x4e1   : > { %2348 = vperm.xlu1 %4861, %v2186_v60   ;;  %2368 = vperm.xlu0 %4862, %v2186_v60  }
 0x552   : > { %v6381_v2 = vpop.permute.xlu1 %2308  ;;  %v2195_v17 = vpop.permute.xlu0 %2194 }
 0x553   : > { %v2238_v61 = vmul.f32 %v2201_v11, %v2195_v17  ;;  %v2240_v62 = vmul.f32 %v2209_v15, %v2195_v17  ;;  %v2242_v63 = vmul.f32 %v2217_v16, %v2195_v17  ;;  %v2244_v0 = vmul.f32 %v2225_v18, %v2195_v17 }
 0x554   : > { %v2239_v9 = vmul.f32 %v2205_v13, %v2195_v17 }
 0x557   : > { %v2337_v14 = vpop.permute.xlu1 %2336  ;;  %v2248_v39 = vpop.permute.xlu0 %2247 }
 0x558   : > { %v2339_v29 = vmul.f32 %v2337_v14, %v2201_v11  ;;  %v2340_v30 = vmul.f32 %v2337_v14, %v2205_v13  ;;  %v2341_v31 = vmul.f32 %v2337_v14, %v2209_v15  ;;  %v2342_v32 = vmul.f32 %v2337_v14, %v2213_v19 }
 0x559   : > { %v2343_v35 = vmul.f32 %v2337_v14, %v2217_v16  ;;  %v2344_v36 = vmul.f32 %v2337_v14, %v2221_v20  ;;  %v2345_v37 = vmul.f32 %v2337_v14, %v2225_v18  ;;  %v2346_v40 = vmul.f32 %v2337_v14, %v2229_v21 }
 0x55a   : > { %v2291_v57 = vmul.f32 %v2254_v22, %v2248_v39  ;;  %v2293_v58 = vmul.f32 %v2262_v23, %v2248_v39  ;;  %v2295_v59 = vmul.f32 %v2270_v25, %v2248_v39  ;;  %v2297_v60 = vmul.f32 %v2278_v27, %v2248_v39 }
 0x55b   : > { %v2292_v12 = vmul.f32 %v2258_v34, %v2248_v39  ;;  %v2294_v10 = vmul.f32 %v2266_v24, %v2248_v39  ;;  %v2296_v5 = vmul.f32 %v2274_v26, %v2248_v39  ;;  %v2298_v6 = vmul.f32 %v2282_v28, %v2248_v39 }
 0x55c   : > { %v2349_v33 = vpop.permute.xlu1 %2348  ;;  %v2299_v3 = vadd.f32 %v2291_v57, %v2238_v61  ;;  %v2301_v4 = vadd.f32 %v2293_v58, %v2240_v62  ;;  %v2303_v7 = vadd.f32 %v2295_v59, %v2242_v63  ;;  %v2305_v8 = vadd.f32 %v2297_v60, %v2244_v0  ;;  %v2420_v57 = vld [vmem:[%s7723_s12 + $0xc8] sm:$0xff]  ;;  %v2422_v58 = vld [vmem:[%s7723_s12 + $0xd8] sm:$0xff] }
 0x55d   : > { %v2351_v41 = vmul.f32 %v2349_v33, %v2254_v22  ;;  %v2352_v42 = vmul.f32 %v2349_v33, %v2258_v34  ;;  %v2353_v43 = vmul.f32 %v2349_v33, %v2262_v23  ;;  %v2354_v44 = vmul.f32 %v2349_v33, %v2266_v24 }
 0x55e   : > { %v2355_v45 = vmul.f32 %v2349_v33, %v2270_v25  ;;  %v2356_v46 = vmul.f32 %v2349_v33, %v2274_v26  ;;  %v2357_v47 = vmul.f32 %v2349_v33, %v2278_v27  ;;  %v2358_v48 = vmul.f32 %v2349_v33, %v2282_v28  ;;  %v2419_v33 = vld [vmem:[%s7723_s12 + $0xc0] sm:$0xff] }
 0x55f   : > { %v6399_v49 = vadd.f32 %v2351_v41, %v2339_v29  ;;  %v6401_v50 = vadd.f32 %v2352_v42, %v2340_v30  ;;  %v6403_v51 = vadd.f32 %v2353_v43, %v2341_v31  ;;  %v6405_v52 = vadd.f32 %v2354_v44, %v2342_v32 }
 0x560   : > { %v6407_v53 = vadd.f32 %v2355_v45, %v2343_v35  ;;  %v6409_v54 = vadd.f32 %v2356_v46, %v2344_v36  ;;  %v6411_v55 = vadd.f32 %v2357_v47, %v2345_v37  ;;  %v6413_v56 = vadd.f32 %v2358_v48, %v2346_v40  ;;  %v2421_v36 = vld [vmem:[%s7723_s12 + $0xd0] sm:$0xff]  ;;  %v2411_v37 = vld [vmem:[%s7723_s12 + $0x80] sm:$0xff] }
 0x561   : > { %v2241_v14 = vmul.f32 %v2213_v19, %v2195_v17  ;;  %v2243_v29 = vmul.f32 %v2221_v20, %v2195_v17  ;;  %v2245_v30 = vmul.f32 %v2229_v21, %v2195_v17  ;;  %v2300_v22 = vadd.f32 %v2292_v12, %v2239_v9  ;;  %v2413_v46 = vld [vmem:[%s7723_s12 + $0x90] sm:$0xff]  ;;  %v2403_v47 = vld [vmem:[%s7723_s12 + $0x40] sm:$0xff] }
 0x562   : > { %v2311_v25 = vadd.f32 %v6381_v2, %v2299_v3  ;;  %v2313_v11 = vadd.f32 %v6381_v2, %v2301_v4  ;;  %v2315_v18 = vadd.f32 %v6381_v2, %v2303_v7  ;;  %v2317_v34 = vadd.f32 %v6381_v2, %v2305_v8  ;;  %v2405_v48 = vld [vmem:[%s7723_s12 + $0x50] sm:$0xff]  ;;  %v2412_v3 = vld [vmem:[%s7723_s12 + $0x88] sm:$0xff]  ;;  %v2414_v4 = vld [vmem:[%s7723_s12 + $0x98] sm:$0xff] }
 0x563   : > { %v2302_v23 = vadd.f32 %v2294_v10, %v2241_v14  ;;  %v2304_v15 = vadd.f32 %v2296_v5, %v2243_v29  ;;  %v2306_v16 = vadd.f32 %v2298_v6, %v2245_v30  ;;  %v2312_v24 = vadd.f32 %v6381_v2, %v2300_v22 }
 0x564   : > { %v2319_v13 = vadd.f32 1.0, %v2311_v25  ;;  %v2321_v19 = vadd.f32 1.0, %v2313_v11  ;;  %v2323_v21 = vadd.f32 1.0, %v2315_v18  ;;  %v2325_v27 = vadd.f32 1.0, %v2317_v34 }
 0x565   : > { %v2314_v26 = vadd.f32 %v6381_v2, %v2302_v23  ;;  %v2316_v17 = vadd.f32 %v6381_v2, %v2304_v15  ;;  %v2318_v20 = vadd.f32 %v6381_v2, %v2306_v16  ;;  %v2320_v28 = vadd.f32 1.0, %v2312_v24  ;;  %v2404_v15 = vld [vmem:[%s7723_s12 + $0x48] sm:$0xff]  ;;  %v2406_v16 = vld [vmem:[%s7723_s12 + $0x58] sm:$0xff] }
 0x566   : > { %v2327_v32 = vmul.f32 15.5, %v2319_v13  ;;  %v2329_v35 = vmul.f32 15.5, %v2321_v19  ;;  %v2331_v41 = vmul.f32 15.5, %v2323_v21  ;;  %v2333_v42 = vmul.f32 15.5, %v2325_v27 }
 0x567   : > { %v2322_v31 = vadd.f32 1.0, %v2314_v26  ;;  %v2324_v40 = vadd.f32 1.0, %v2316_v17  ;;  %v2326_v2 = vadd.f32 1.0, %v2318_v20  ;;  %v2328_v43 = vmul.f32 15.5, %v2320_v28 }
 0x568   : > { %v6433_v39 = vrot.slane %v2327_v32, %v5616_v38  ;;  %v6436_v45 = vrot.slane %v2329_v35, %v5616_v38  ;;  %v6458_v61 = vrot.slane %v2331_v41, %v5616_v38  ;;  %v6461_v62 = vrot.slane %v2333_v42, %v5616_v38 }
 0x569   : > { %v2330_v44 = vmul.f32 15.5, %v2322_v31  ;;  %v6453_v59 = vmul.f32 15.5, %v2324_v40  ;;  %v6455_v60 = vmul.f32 15.5, %v2326_v2  ;;  %v6464_v63 = vrot.slane %v2328_v43, %v5616_v38  ;;  %v2398_v40 = vld [vmem:[%s7723_s12 + $0x18] sm:$0xff] }
 0x56a   : > { %v2483_v12 = vsub.f32 %v6433_v39, %v2419_v33  ;;  %v2485_v10 = vsub.f32 %v6436_v45, %v2421_v36  ;;  %v2475_v5 = vsub.f32 %v6433_v39, %v2411_v37  ;;  %v2477_v6 = vsub.f32 %v6436_v45, %v2413_v46  ;;  %v2396_v37 = vld [vmem:[%s7723_s12 + $0x8] sm:$0xff]  ;;  %v2397_v46 = vld [vmem:[%s7723_s12 + $0x10] sm:$0xff] }
 0x56b   : > { %v6467_v0 = vrot.slane %v2330_v44, %v5616_v38  ;;  %v2467_v7 = vsub.f32 %v6433_v39, %v2403_v47  ;;  %v2469_v8 = vsub.f32 %v6436_v45, %v2405_v48  ;;  %v2484_v9 = vsub.f32 %v6464_v63, %v2420_v57  ;;  %v2395_v44 = vld [vmem:[%s7723_s12] sm:$0xff] }
 0x56c   : > { %v2515_v29 = vand.u32 2147483647, %v2483_v12  ;;  %v2517_v30 = vand.u32 2147483647, %v2485_v10  ;;  %v2476_v22 = vsub.f32 %v6464_v63, %v2412_v3  ;;  %v2507_v25 = vand.u32 2147483647, %v2475_v5 }
 0x56d   : > { %v2486_v14 = vsub.f32 %v6467_v0, %v2422_v58  ;;  %v2478_v23 = vsub.f32 %v6467_v0, %v2414_v4  ;;  %v2509_v11 = vand.u32 2147483647, %v2477_v6  ;;  %v2516_v18 = vand.u32 2147483647, %v2484_v9 }
 0x56e   : > { %v2547_v24 = vsub.f32 1.0, %v2515_v29  ;;  %v2549_v26 = vsub.f32 1.0, %v2517_v30  ;;  %v2508_v13 = vand.u32 2147483647, %v2476_v22  ;;  %v2539_v17 = vsub.f32 1.0, %v2507_v25 }
 0x56f   : > { %v2518_v34 = vand.u32 2147483647, %v2486_v14  ;;  %v2510_v19 = vand.u32 2147483647, %v2478_v23  ;;  %v2541_v20 = vsub.f32 1.0, %v2509_v11  ;;  %v2548_v21 = vsub.f32 1.0, %v2516_v18 }
 0x570   : > { %v2579_v28 = vmax.f32 %v2547_v24, 0.0  ;;  %v2581_v31 = vmax.f32 %v2549_v26, 0.0  ;;  %v2540_v32 = vsub.f32 1.0, %v2508_v13  ;;  %v2571_v35 = vmax.f32 %v2539_v17, 0.0  ;;  %v2424_v18 = vld [vmem:[%s7723_s12 + $0xe8] sm:$0xff] }
 0x571   : > { %v2550_v27 = vsub.f32 1.0, %v2518_v34  ;;  %v2542_v33 = vsub.f32 1.0, %v2510_v19  ;;  %v2573_v36 = vmax.f32 %v2541_v20, 0.0  ;;  %v2580_v2 = vmax.f32 %v2548_v21, 0.0  ;;  %v2426_v34 = vld [vmem:[%s7723_s12 + $0xf8] sm:$0xff]  ;;  %v2416_v17 = vld [vmem:[%s7723_s12 + $0xa8] sm:$0xff] }
 0x572   : > { %v2468_v42 = vsub.f32 %v6464_v63, %v2404_v15  ;;  %v2470_v43 = vsub.f32 %v6467_v0, %v2406_v16  ;;  %v2572_v47 = vmax.f32 %v2540_v32, 0.0  ;;  %v2499_v57 = vand.u32 2147483647, %v2467_v7  ;;  %v2423_v7 = vld [vmem:[%s7723_s12 + $0xe0] sm:$0xff]  ;;  %v2418_v20 = vld [vmem:[%s7723_s12 + $0xb8] sm:$0xff] }
 0x573   : > { %v2582_v41 = vmax.f32 %v2550_v27, 0.0  ;;  %v2574_v48 = vmax.f32 %v2542_v33, 0.0  ;;  %v2501_v58 = vand.u32 2147483647, %v2469_v8  ;;  %3171 = vmatprep.subr.mxu0 %v2580_v2  ;;  %v2460_v3 = vsub.f32 %v6464_v63, %v2396_v37  ;;  %v2425_v8 = vld [vmem:[%s7723_s12 + $0xf0] sm:$0xff] }
 0x574   : > { %v2500_v12 = vand.u32 2147483647, %v2468_v42  ;;  %v2502_v10 = vand.u32 2147483647, %v2470_v43  ;;  %v2462_v4 = vsub.f32 %v6467_v0, %v2398_v40  ;;  %3172 = vmatpush1.msra.mxu0 %v2579_v28  ;;  %v2531_v5 = vsub.f32 1.0, %v2499_v57  ;;  %v2408_v57 = vld [vmem:[%s7723_s12 + $0x68] sm:$0xff] }
 0x575   : > { %3308 = vmatprep.subr.mxu1 %v2582_v41  ;;  %v2533_v6 = vsub.f32 1.0, %v2501_v58  ;;  %v2459_v9 = vsub.f32 %v6433_v39, %v2395_v44  ;;  %v2461_v14 = vsub.f32 %v6436_v45, %v2397_v46  ;;  %3173 = vmatprep.subr.mxu0 %v2572_v47  ;;  %v2492_v29 = vand.u32 2147483647, %v2460_v3  ;;  %v2410_v58 = vld [vmem:[%s7723_s12 + $0x78] sm:$0xff] }
 0x576   : > { %3309 = vmatpush1.msra.mxu1 %v2581_v31  ;;  %v2532_v63 = vsub.f32 1.0, %v2500_v12  ;;  %v2534_v0 = vsub.f32 1.0, %v2502_v10  ;;  %v2494_v30 = vand.u32 2147483647, %v2462_v4  ;;  %3174 = vmatpush1.msra.mxu0 %v2571_v35  ;;  %v2563_v22 = vmax.f32 %v2531_v5, 0.0  ;;  %v2417_v31 = vld [vmem:[%s7723_s12 + $0xb0] sm:$0xff] }
 0x577   : > { %3310 = vmatprep.subr.mxu1 %v2574_v48  ;;  %v2565_v39 = vmax.f32 %v2533_v6, 0.0  ;;  %v2491_v23 = vand.u32 2147483647, %v2459_v9  ;;  %v2493_v45 = vand.u32 2147483647, %v2461_v14  ;;  %v2524_v15 = vsub.f32 1.0, %v2492_v29 }
 0x578   : > { %3311 = vmatpush1.msra.mxu1 %v2573_v36  ;;  %v2564_v25 = vmax.f32 %v2532_v63, 0.0  ;;  %v2566_v11 = vmax.f32 %v2534_v0, 0.0  ;;  %v2526_v16 = vsub.f32 1.0, %v2494_v30  ;;  %v6535_v13 = vrot.slane %v6453_v59, %v5616_v38  ;;  %v6556_v35 = vld [vmem:[%s6525_s22] sm:$0xff]  ;;  %v6565_v48 = vld [vmem:[%s6525_s22 + $0x8] sm:$0xff]  ;;  %v2409_v30 = vld [vmem:[%s7723_s12 + $0x70] sm:$0xff] }
 0x579   : > { %v2523_v24 = vsub.f32 1.0, %v2491_v23  ;;  %v2525_v26 = vsub.f32 1.0, %v2493_v45  ;;  %v6539_v19 = vrot.slane %v6455_v60, %v5616_v38  ;;  %v2556_v21 = vmax.f32 %v2524_v15, 0.0  ;;  %v2415_v60 = vld [vmem:[%s7723_s12 + $0xa0] sm:$0xff] }
 0x57a   : > { %3175 = vmatprep.subr.mxu0 %v2564_v25  ;;  %3312 = vmatprep.subr.mxu1 %v2566_v11  ;;  %v2558_v27 = vmax.f32 %v2526_v16, 0.0  ;;  %v2487_v59 = vsub.f32 %v6458_v61, %v2423_v7  ;;  %v2489_v28 = vsub.f32 %v6461_v62, %v2425_v8  ;;  %v2488_v36 = vsub.f32 %v6535_v13, %v2424_v18  ;;  %v2407_v29 = vld [vmem:[%s7723_s12 + $0x60] sm:$0xff]  ;;  %v2400_v25 = vld [vmem:[%s7723_s12 + $0x28] sm:$0xff]  ;;  %v2402_v11 = vld [vmem:[%s7723_s12 + $0x38] sm:$0xff] }
 0x57b   : > { %3176 = vmatpush1.msra.mxu0 %v2563_v22  ;;  %3313 = vmatpush1.msra.mxu1 %v2565_v39  ;;  %v2555_v32 = vmax.f32 %v2523_v24, 0.0  ;;  %v2557_v33 = vmax.f32 %v2525_v26, 0.0  ;;  %v2490_v37 = vsub.f32 %v6539_v19, %v2426_v34  ;;  %v2480_v41 = vsub.f32 %v6535_v13, %v2416_v17  ;;  %v2399_v24 = vld [vmem:[%s7723_s12 + $0x20] sm:$0xff]  ;;  %v2401_v26 = vld [vmem:[%s7723_s12 + $0x30] sm:$0xff] }
 0x57c   : > { %3177 = vmatprep.subr.mxu0 %v2556_v21  ;;  %3314 = vmatprep.subr.mxu1 %v2558_v27  ;;  %v2519_v40 = vand.u32 2147483647, %v2487_v59  ;;  %v2521_v2 = vand.u32 2147483647, %v2489_v28  ;;  %v2482_v42 = vsub.f32 %v6539_v19, %v2418_v20  ;;  %v2520_v43 = vand.u32 2147483647, %v2488_v36 }
 0x57d   : > { %3178 = vmatpush1.msra.mxu0 %v2555_v32  ;;  %3315 = vmatpush1.msra.mxu1 %v2557_v33  ;;  %v2522_v44 = vand.u32 2147483647, %v2490_v37  ;;  %v2479_v46 = vsub.f32 %v6458_v61, %v2415_v60  ;;  %v2481_v47 = vsub.f32 %v6461_v62, %v2417_v31  ;;  %v2512_v3 = vand.u32 2147483647, %v2480_v41 }
 0x57e   : > { %4526 = vmatmul.mubr.msk.f32.vlgmr.msra.gmra.mxu0 %vm724_vm0, %v6556_v35  ;;  %4538 = vmatmul.mubr.msk.f32.vlgmr.msra.gmra.mxu1 %vm724_vm0, %v6556_v35  ;;  %v2551_v12 = vsub.f32 1.0, %v2519_v40  ;;  %v2553_v10 = vsub.f32 1.0, %v2521_v2  ;;  %v2514_v4 = vand.u32 2147483647, %v2482_v42  ;;  %v2552_v5 = vsub.f32 1.0, %v2520_v43  ;;  %v6610_v40 = vld [vmem:[%s6525_s22 + $0x10] sm:$0xff] }
 0x57f   : > { %v2554_v6 = vsub.f32 1.0, %v2522_v44  ;;  %3217 = vmatprep.mubr.f32.mxu0 %v7727_v1  ;;  %3354 = vmatprep.mubr.f32.mxu1 %v7727_v1  ;;  %v2511_v9 = vand.u32 2147483647, %v2479_v46  ;;  %v2513_v14 = vand.u32 2147483647, %v2481_v47  ;;  %v2544_v63 = vsub.f32 1.0, %v2512_v3 }
 0x580   : > { %v2583_v7 = vmax.f32 %v2551_v12, 0.0  ;;  %v2585_v8 = vmax.f32 %v2553_v10, 0.0  ;;  %v2546_v0 = vsub.f32 1.0, %v2514_v4  ;;  %v2584_v22 = vmax.f32 %v2552_v5, 0.0 }
 0x581   : > { %v2586_v39 = vmax.f32 %v2554_v6, 0.0  ;;  %v2543_v23 = vsub.f32 1.0, %v2511_v9  ;;  %v2545_v45 = vsub.f32 1.0, %v2513_v14  ;;  %v2576_v15 = vmax.f32 %v2544_v63, 0.0  ;;  %v3102_v14 = vld [vmem:[%s6525_s22 + $0x18] sm:$0xff]  ;;  %v3105_v63 = vld [vmem:[%s6525_s22 + $0x30] sm:$0xff] }
 0x582   : > { %v2578_v16 = vmax.f32 %v2546_v0, 0.0  ;;  %4527 = vmatmul.mubr.msk.f32.gmra.mxu0 %vm724_vm0, %v6565_v48  ;;  %4539 = vmatmul.mubr.msk.f32.gmra.mxu1 %vm724_vm0, %v6565_v48  ;;  %v2472_v18 = vsub.f32 %v6535_v13, %v2408_v57  ;;  %v2474_v34 = vsub.f32 %v6539_v19, %v2410_v58  ;;  %v2471_v21 = vsub.f32 %v6458_v61, %v2407_v29  ;;  %v3106_v0 = vld [vmem:[%s6525_s22 + $0x38] sm:$0xff]  ;;  %v3107_v29 = vld [vmem:[%s6525_s22 + $0x40] sm:$0xff] }
 0x583   : > { %3445 = vmatprep.subr.mxu0 %v2584_v22  ;;  %3582 = vmatprep.subr.mxu1 %v2586_v39  ;;  %v2575_v17 = vmax.f32 %v2543_v23, 0.0  ;;  %v2577_v20 = vmax.f32 %v2545_v45, 0.0  ;;  %v2473_v27 = vsub.f32 %v6461_v62, %v2409_v30  ;;  %v2464_v60 = vsub.f32 %v6535_v13, %v2400_v25  ;;  %v3108_v30 = vld [vmem:[%s6525_s22 + $0x48] sm:$0xff]  ;;  %v3109_v22 = vld [vmem:[%s6525_s22 + $0x50] sm:$0xff]  ;;  %v3110_v39 = vld [vmem:[%s6525_s22 + $0x58] sm:$0xff] }
 0x584   : > { %3446 = vmatpush1.msra.mxu0 %v2583_v7  ;;  %3583 = vmatpush1.msra.mxu1 %v2585_v8  ;;  %v2504_v59 = vand.u32 2147483647, %v2472_v18  ;;  %v2506_v28 = vand.u32 2147483647, %v2474_v34  ;;  %v2466_v31 = vsub.f32 %v6539_v19, %v2402_v11  ;;  %v2503_v32 = vand.u32 2147483647, %v2471_v21 }
 0x585   : > { %3447 = vmatprep.subr.mxu0 %v2576_v15  ;;  %3584 = vmatprep.subr.mxu1 %v2578_v16  ;;  %v2505_v33 = vand.u32 2147483647, %v2473_v27  ;;  %v2463_v36 = vsub.f32 %v6458_v61, %v2399_v24  ;;  %v2465_v37 = vsub.f32 %v6461_v62, %v2401_v26  ;;  %v2496_v42 = vand.u32 2147483647, %v2464_v60  ;;  %v3103_v7 = vld [vmem:[%s6525_s22 + $0x20] sm:$0xff]  ;;  %v3104_v8 = vld [vmem:[%s6525_s22 + $0x28] sm:$0xff] }
 0x586   : > { %3448 = vmatpush1.msra.mxu0 %v2575_v17  ;;  %3585 = vmatpush1.msra.mxu1 %v2577_v20  ;;  %v2536_v2 = vsub.f32 1.0, %v2504_v59  ;;  %v2538_v41 = vsub.f32 1.0, %v2506_v28  ;;  %v2498_v43 = vand.u32 2147483647, %v2466_v31  ;;  %v2535_v44 = vsub.f32 1.0, %v2503_v32  ;;  %v2588_v27 = vld [vmem:[%s7724_s13 + $0x8] sm:$0xff] }
 0x587   : > { %v2537_v13 = vsub.f32 1.0, %v2505_v33  ;;  %3223 = vmatprep.mubr.f32.mxu0 %v7727_v1  ;;  %3360 = vmatprep.mubr.f32.mxu1 %v7727_v1  ;;  %v2495_v19 = vand.u32 2147483647, %v2463_v36  ;;  %v2497_v46 = vand.u32 2147483647, %v2465_v37  ;;  %v2528_v57 = vsub.f32 1.0, %v2496_v42 }
 0x588   : > { %v2568_v47 = vmax.f32 %v2536_v2, 0.0  ;;  %v2570_v61 = vmax.f32 %v2538_v41, 0.0  ;;  %v2530_v62 = vsub.f32 1.0, %v2498_v43  ;;  %4528 = vmatmul.mubr.msk.f32.gmra.mxu0 %vm724_vm0, %v6610_v40  ;;  %4540 = vmatmul.mubr.msk.f32.gmra.mxu1 %vm724_vm0, %v6610_v40  ;;  %v2567_v58 = vmax.f32 %v2535_v44, 0.0  ;;  %v2590_v59 = vld [vmem:[%s7724_s13 + $0x18] sm:$0xff]  ;;  %v2595_v44 = vld [vmem:[%s7724_s13 + $0x40] sm:$0xff] }
 0x589   : > { %v2569_v12 = vmax.f32 %v2537_v13, 0.0  ;;  %v2527_v10 = vsub.f32 1.0, %v2495_v19  ;;  %v2529_v3 = vsub.f32 1.0, %v2497_v46  ;;  %3229 = vmatprep.mubr.f32.mxu0 %v7727_v1  ;;  %3366 = vmatprep.mubr.f32.mxu1 %v7727_v1  ;;  %v2560_v4 = vmax.f32 %v2528_v57, 0.0  ;;  %v2597_v13 = vld [vmem:[%s7724_s13 + $0x50] sm:$0xff] }
 0x58a   : > { %3449 = vmatprep.subr.mxu0 %v2568_v47  ;;  %3586 = vmatprep.subr.mxu1 %v2570_v61  ;;  %v2562_v5 = vmax.f32 %v2530_v62, 0.0 }
 0x58b   : > { %3450 = vmatpush1.msra.mxu0 %v2567_v58  ;;  %3587 = vmatpush1.msra.mxu1 %v2569_v12  ;;  %v2559_v6 = vmax.f32 %v2527_v10, 0.0  ;;  %v2561_v9 = vmax.f32 %v2529_v3, 0.0  ;;  %v2596_v10 = vld [vmem:[%s7724_s13 + $0x48] sm:$0xff] }
 0x58c   : > { %3451 = vmatprep.subr.mxu0 %v2560_v4  ;;  %3588 = vmatprep.subr.mxu1 %v2562_v5 }
 0x58d   : > { %3452 = vmatpush1.msra.mxu0 %v2559_v6  ;;  %3589 = vmatpush1.msra.mxu1 %v2561_v9 }
 0x58e   : > { %4529 = vmatmul.mubr.msk.f32.gmra.mxu0 %vm724_vm0, %v3102_v14  ;;  %4541 = vmatmul.mubr.msk.f32.gmra.mxu1 %vm724_vm0, %v3102_v14 }
 0x58f   : > { %3235 = vmatprep.mubr.f32.mxu0 %v7727_v1  ;;  %3372 = vmatprep.mubr.f32.mxu1 %v7727_v1 }
 0x592   : > { %4530 = vmatmul.mubr.msk.f32.gmra.mxu0 %vm724_vm0, %v3103_v7  ;;  %4542 = vmatmul.mubr.msk.f32.gmra.mxu1 %vm724_vm0, %v3103_v7 }
 0x593   : > { %3241 = vmatprep.mubr.f32.mxu0 %v7727_v1  ;;  %3378 = vmatprep.mubr.f32.mxu1 %v7727_v1 }
 0x596   : > { %4531 = vmatmul.mubr.msk.f32.gmra.mxu0 %vm724_vm0, %v3104_v8  ;;  %4543 = vmatmul.mubr.msk.f32.gmra.mxu1 %vm724_vm0, %v3104_v8 }
 0x597   : > { %3247 = vmatprep.mubr.f32.mxu0 %v7727_v1  ;;  %3384 = vmatprep.mubr.f32.mxu1 %v7727_v1 }
 0x59a   : > { %4532 = vmatmul.mubr.msk.f32.gmra.mxu0 %vm724_vm0, %v3105_v63  ;;  %4544 = vmatmul.mubr.msk.f32.gmra.mxu1 %vm724_vm0, %v3105_v63 }
 0x59b   : > { %3253 = vmatprep.mubr.f32.mxu0 %v7727_v1  ;;  %3390 = vmatprep.mubr.f32.mxu1 %v7727_v1 }
 0x59e   : > { %4533 = vmatmul.mubr.msk.f32.gmra.mxu0 %vm724_vm0, %v3106_v0  ;;  %4545 = vmatmul.mubr.msk.f32.gmra.mxu1 %vm724_vm0, %v3106_v0 }
 0x59f   : > { %3259 = vmatprep.mubr.f32.mxu0 %v7727_v1  ;;  %3396 = vmatprep.mubr.f32.mxu1 %v7727_v1 }
 0x5a2   : > { %4534 = vmatmul.mubr.msk.f32.gmra.mxu0 %vm724_vm0, %v3107_v29  ;;  %4546 = vmatmul.mubr.msk.f32.gmra.mxu1 %vm724_vm0, %v3107_v29 }
 0x5a3   : > { %3265 = vmatprep.mubr.f32.mxu0 %v7727_v1  ;;  %3402 = vmatprep.mubr.f32.mxu1 %v7727_v1 }
 0x5a6   : > { %4535 = vmatmul.mubr.msk.f32.gmra.mxu0 %vm724_vm0, %v3108_v30  ;;  %4547 = vmatmul.mubr.msk.f32.gmra.mxu1 %vm724_vm0, %v3108_v30 }
 0x5a7   : > { %3271 = vmatprep.mubr.f32.mxu0 %v7727_v1  ;;  %3408 = vmatprep.mubr.f32.mxu1 %v7727_v1 }
 0x5aa   : > { %4536 = vmatmul.mubr.msk.f32.gmra.mxu0 %vm724_vm0, %v3109_v22  ;;  %4548 = vmatmul.mubr.msk.f32.gmra.mxu1 %vm724_vm0, %v3109_v22 }
 0x5ab   : > { %3277 = vmatprep.mubr.f32.mxu0 %v7727_v1  ;;  %3414 = vmatprep.mubr.f32.mxu1 %v7727_v1 }
 0x5ae   : > { %4537 = vmatmul.mubr.msk.f32.gmra.mxu0 %vm724_vm0, %v3110_v39  ;;  %4549 = vmatmul.mubr.msk.f32.gmra.mxu1 %vm724_vm0, %v3110_v39 }
 0x5af   : > { %3485 = vmatprep.mubr.f32.mxu0 %v7727_v1  ;;  %3622 = vmatprep.mubr.f32.mxu1 %v7727_v1 }
 0x5b2   : > { %4550 = vmatmul.mubr.msk.f32.vlgmr.msra.gmra.mxu0 %vm724_vm0, %v6556_v35  ;;  %4562 = vmatmul.mubr.msk.f32.vlgmr.msra.gmra.mxu1 %vm724_vm0, %v6556_v35  ;;  %v2369_v35 = vpop.permute.xlu0 %2368 }
 0x5b3   : > { %3491 = vmatprep.mubr.f32.mxu0 %v7727_v1  ;;  %3628 = vmatprep.mubr.f32.mxu1 %v7727_v1  ;;  %v2373_v23 = vadd.f32 %v2369_v35, %v6403_v51  ;;  %v2372_v45 = vadd.f32 %v2369_v35, %v6401_v50  ;;  %v2374_v25 = vadd.f32 %v2369_v35, %v6405_v52  ;;  %v2589_v50 = vld [vmem:[%s7724_s13 + $0x10] sm:$0xff] }
 0x5b4   : > { %v2375_v37 = vadd.f32 %v2369_v35, %v6407_v53  ;;  %v2377_v19 = vadd.f32 %v2369_v35, %v6411_v55  ;;  %v2378_v46 = vadd.f32 %v2369_v35, %v6413_v56  ;;  %v2598_v55 = vld [vmem:[%s7724_s13 + $0x58] sm:$0xff] }
 0x5b5   : > { %v2381_v15 = vadd.f32 1.0, %v2373_v23  ;;  %v2380_v16 = vadd.f32 1.0, %v2372_v45  ;;  %v2382_v18 = vadd.f32 1.0, %v2374_v25 }
 0x5b6   : > { %4551 = vmatmul.mubr.msk.f32.gmra.mxu0 %vm724_vm0, %v6565_v48  ;;  %4563 = vmatmul.mubr.msk.f32.gmra.mxu1 %vm724_vm0, %v6565_v48  ;;  %v2371_v48 = vadd.f32 %v2369_v35, %v6399_v49  ;;  %v2587_v49 = vld [vmem:[%s7724_s13] sm:$0xff]  ;;  %v2383_v47 = vadd.f32 1.0, %v2375_v37  ;;  %v2385_v3 = vadd.f32 1.0, %v2377_v19  ;;  %v2386_v56 = vadd.f32 1.0, %v2378_v46 }
 0x5b7   : > { %3497 = vmatprep.mubr.f32.mxu0 %v7727_v1  ;;  %3634 = vmatprep.mubr.f32.mxu1 %v7727_v1  ;;  %v2389_v24 = vmul.f32 15.5, %v2381_v15  ;;  %v2388_v26 = vmul.f32 15.5, %v2380_v16  ;;  %v2390_v17 = vmul.f32 15.5, %v2382_v18  ;;  %v2613_v15 = vld [vmem:[%s7724_s13 + $0xd0] sm:$0xff] }
 0x5b8   : > { %v2379_v11 = vadd.f32 1.0, %v2371_v48  ;;  %v2391_v4 = vmul.f32 15.5, %v2383_v47 }
 0x5b9   : > { %v6727_v21 = vrot.slane %v2389_v24, %v5616_v38  ;;  %v6736_v51 = vrot.slane %v2388_v26, %v5616_v38  ;;  %v6739_v52 = vrot.slane %v2390_v17, %v5616_v38  ;;  %v2393_v26 = vmul.f32 15.5, %v2385_v3 }
 0x5ba   : > { %4552 = vmatmul.mubr.msk.f32.gmra.mxu0 %vm724_vm0, %v6610_v40  ;;  %4564 = vmatmul.mubr.msk.f32.gmra.mxu1 %vm724_vm0, %v6610_v40  ;;  %v2387_v34 = vmul.f32 15.5, %v2379_v11  ;;  %v2376_v40 = vadd.f32 %v2369_v35, %v6409_v54  ;;  %v2611_v11 = vld [vmem:[%s7724_s13 + $0xc0] sm:$0xff] }
 0x5bb   : > { %3503 = vmatprep.mubr.f32.mxu0 %v7727_v1  ;;  %3640 = vmatprep.mubr.f32.mxu1 %v7727_v1  ;;  %v2717_v60 = vsub.f32 %v6727_v21, %v2589_v50  ;;  %v2716_v31 = vsub.f32 %v6736_v51, %v2588_v27  ;;  %v2718_v32 = vsub.f32 %v6739_v52, %v2590_v59  ;;  %v2394_v59 = vmul.f32 15.5, %v2386_v56 }
 0x5bc   : > { %v6724_v20 = vrot.slane %v2387_v34, %v5616_v38  ;;  %v2384_v53 = vadd.f32 1.0, %v2376_v40  ;;  %v2725_v62 = vsub.f32 %v6727_v21, %v2597_v13  ;;  %v2724_v45 = vsub.f32 %v6736_v51, %v2596_v10  ;;  %v2620_v10 = vld [vmem:[%s7724_s13 + $0x108] sm:$0xff] }
 0x5bd   : > { %v2813_v36 = vand.u32 2147483647, %v2717_v60  ;;  %v2812_v2 = vand.u32 2147483647, %v2716_v31  ;;  %v2814_v41 = vand.u32 2147483647, %v2718_v32  ;;  %v2726_v25 = vsub.f32 %v6739_v52, %v2598_v55 }
 0x5be   : > { %4553 = vmatmul.mubr.msk.f32.gmra.mxu0 %vm724_vm0, %v3102_v14  ;;  %4565 = vmatmul.mubr.msk.f32.gmra.mxu1 %vm724_vm0, %v3102_v14  ;;  %v2715_v28 = vsub.f32 %v6724_v20, %v2587_v49  ;;  %v2723_v57 = vsub.f32 %v6724_v20, %v2595_v44  ;;  %v2392_v5 = vmul.f32 15.5, %v2384_v53  ;;  %v2603_v14 = vld [vmem:[%s7724_s13 + $0x80] sm:$0xff]  ;;  %v2821_v23 = vand.u32 2147483647, %v2725_v62  ;;  %v2612_v31 = vld [vmem:[%s7724_s13 + $0xc8] sm:$0xff]  ;;  %v2614_v32 = vld [vmem:[%s7724_s13 + $0xd8] sm:$0xff] }
 0x5bf   : > { %3509 = vmatprep.mubr.f32.mxu0 %v7727_v1  ;;  %3646 = vmatprep.mubr.f32.mxu1 %v7727_v1  ;;  %v2909_v43 = vsub.f32 1.0, %v2813_v36  ;;  %v2908_v61 = vsub.f32 1.0, %v2812_v2  ;;  %v2910_v54 = vsub.f32 1.0, %v2814_v41  ;;  %v2731_v34 = vsub.f32 %v6724_v20, %v2603_v14 }
 0x5c0   : > { %v2811_v33 = vand.u32 2147483647, %v2715_v28  ;;  %v2819_v48 = vand.u32 2147483647, %v2723_v57  ;;  %v2739_v28 = vsub.f32 %v6724_v20, %v2611_v11  ;;  %v2741_v60 = vsub.f32 %v6727_v21, %v2613_v15 }
 0x5c1   : > { %v3005_v12 = vmax.f32 %v2909_v43, 0.0  ;;  %v6817_v36 = vrot.slane %v2392_v5, %v5616_v38  ;;  %v2820_v37 = vand.u32 2147483647, %v2724_v45  ;;  %v2822_v2 = vand.u32 2147483647, %v2726_v25  ;;  %v2621_v43 = vld [vmem:[%s7724_s13 + $0x110] sm:$0xff] }
 0x5c2   : > { %4554 = vmatmul.mubr.msk.f32.gmra.mxu0 %vm724_vm0, %v3103_v7  ;;  %4566 = vmatmul.mubr.msk.f32.gmra.mxu1 %vm724_vm0, %v3103_v7  ;;  %v2907_v42 = vsub.f32 1.0, %v2811_v33  ;;  %v2605_v7 = vld [vmem:[%s7724_s13 + $0x90] sm:$0xff]  ;;  %v6814_v33 = vrot.slane %v2391_v4, %v5616_v38  ;;  %v2915_v44 = vsub.f32 1.0, %v2819_v48  ;;  %v2917_v13 = vsub.f32 1.0, %v2821_v23  ;;  %v2627_v23 = vld [vmem:[%s7724_s13 + $0x140] sm:$0xff] }
 0x5c3   : > { %3515 = vmatprep.mubr.f32.mxu0 %v7727_v1  ;;  %3652 = vmatprep.mubr.f32.mxu1 %v7727_v1  ;;  %v2733_v24 = vsub.f32 %v6727_v21, %v2605_v7  ;;  %v2827_v19 = vand.u32 2147483647, %v2731_v34  ;;  %v6830_v47 = vrot.slane %v2393_v26, %v5616_v38  ;;  %v6834_v57 = vrot.slane %v2394_v59, %v5616_v38  ;;  %v2622_v38 = vld [vmem:[%s7724_s13 + $0x118] sm:$0xff]  ;;  %v2629_v45 = vld [vmem:[%s7724_s13 + $0x150] sm:$0xff] }
 0x5c4   : > { %v3003_v58 = vmax.f32 %v2907_v42, 0.0  ;;  %v2619_v42 = vld [vmem:[%s7724_s13 + $0x100] sm:$0xff]  ;;  %v2835_v62 = vand.u32 2147483647, %v2739_v28  ;;  %v2916_v55 = vsub.f32 1.0, %v2820_v37  ;;  %v2918_v3 = vsub.f32 1.0, %v2822_v2 }
 0x5c5   : > { %v2829_v46 = vand.u32 2147483647, %v2733_v24  ;;  %v2747_v5 = vsub.f32 %v6724_v20, %v2619_v42  ;;  %v6851_v14 = vmax.f32 %v2917_v13, 0.0  ;;  %v2923_v7 = vsub.f32 1.0, %v2827_v19  ;;  %v2628_v24 = vld [vmem:[%s7724_s13 + $0x148] sm:$0xff]  ;;  %v2630_v37 = vld [vmem:[%s7724_s13 + $0x158] sm:$0xff] }
 0x5c6   : > { %4555 = vmatmul.mubr.msk.f32.gmra.mxu0 %vm724_vm0, %v3104_v8  ;;  %4567 = vmatmul.mubr.msk.f32.gmra.mxu1 %vm724_vm0, %v3104_v8  ;;  %v2748_v48 = vsub.f32 %v6736_v51, %v2620_v10  ;;  %v2931_v25 = vsub.f32 1.0, %v2835_v62  ;;  %v2750_v34 = vsub.f32 %v6739_v52, %v2622_v38  ;;  %v6868_v26 = vmax.f32 %v2916_v55, 0.0  ;;  %v2635_v2 = vld [vmem:[%s7724_s13 + $0x180] sm:$0xff]  ;;  %v2637_v42 = vld [vmem:[%s7724_s13 + $0x190] sm:$0xff]  ;;  %v2638_v10 = vld [vmem:[%s7724_s13 + $0x198] sm:$0xff] }
 0x5c7   : > { %3521 = vmatprep.mubr.f32.mxu0 %v7727_v1  ;;  %3658 = vmatprep.mubr.f32.mxu1 %v7727_v1  ;;  %7761 = vst [vmem:[#allocation13_spill] sm:$0xff] %v6851_v14  ;;  %v6872_v28 = vmax.f32 %v2923_v7, 0.0  ;;  %v2756_v38 = vsub.f32 %v6736_v51, %v2628_v24  ;;  %v2758_v7 = vsub.f32 %v6739_v52, %v2630_v37 }
 0x5c8   : > { %7764 = vst [vmem:[#allocation16_spill] sm:$0xff] %v6868_v26  ;;  %v2766_v24 = vsub.f32 %v6739_v52, %v2638_v10 }
 0x5c9   : > { %7766 = vst [vmem:[#allocation18_spill] sm:$0xff] %v6872_v28  ;;  %v2852_v10 = vand.u32 2147483647, %v2756_v38 }
 0x5ca   : > { %4556 = vmatmul.mubr.msk.f32.gmra.mxu0 %vm724_vm0, %v3105_v63  ;;  %4568 = vmatmul.mubr.msk.f32.gmra.mxu1 %vm724_vm0, %v3105_v63  ;;  %v2862_v14 = vand.u32 2147483647, %v2766_v24  ;;  %v2654_v24 = vld [vmem:[%s7724_s13 + $0x218] sm:$0xff] }
 0x5cb   : > { %3527 = vmatprep.mubr.f32.mxu0 %v7727_v1  ;;  %3664 = vmatprep.mubr.f32.mxu1 %v7727_v1  ;;  %v2782_v26 = vsub.f32 %v6739_v52, %v2654_v24 }
 0x5ce   : > { %4557 = vmatmul.mubr.msk.f32.gmra.mxu0 %vm724_vm0, %v3106_v0  ;;  %4569 = vmatmul.mubr.msk.f32.gmra.mxu1 %vm724_vm0, %v3106_v0  ;;  %v3004_v0 = vmax.f32 %v2908_v61, 0.0 }
 0x5cf   : > { %3533 = vmatprep.mubr.f32.mxu0 %v7727_v1  ;;  %3670 = vmatprep.mubr.f32.mxu1 %v7727_v1 }
 0x5d2   : > { %4558 = vmatmul.mubr.msk.f32.gmra.mxu0 %vm724_vm0, %v3107_v29  ;;  %4570 = vmatmul.mubr.msk.f32.gmra.mxu1 %vm724_vm0, %v3107_v29  ;;  %v3006_v29 = vmax.f32 %v2910_v54, 0.0  ;;  %v2740_v54 = vsub.f32 %v6736_v51, %v2612_v31  ;;  %v2755_v31 = vsub.f32 %v6724_v20, %v2627_v23  ;;  %v2765_v23 = vsub.f32 %v6727_v21, %v2637_v42  ;;  %v2651_v42 = vld [vmem:[%s7724_s13 + $0x200] sm:$0xff] }
 0x5d3   : > { %3539 = vmatprep.mubr.f32.mxu0 %v7727_v1  ;;  %3676 = vmatprep.mubr.f32.mxu1 %v7727_v1 }
 0x5d6   : > { %4559 = vmatmul.mubr.msk.f32.gmra.mxu0 %vm724_vm0, %v3108_v30  ;;  %4571 = vmatmul.mubr.msk.f32.gmra.mxu1 %vm724_vm0, %v3108_v30  ;;  %v2604_v30 = vld [vmem:[%s7724_s13 + $0x88] sm:$0xff] }
 0x5d7   : > { %3545 = vmatprep.mubr.f32.mxu0 %v7727_v1  ;;  %3682 = vmatprep.mubr.f32.mxu1 %v7727_v1  ;;  %v2732_v50 = vsub.f32 %v6736_v51, %v2604_v30 }
 0x5d9   : > { %v2828_v53 = vand.u32 2147483647, %v2732_v50  ;;  %v6870_v50 = vmax.f32 %v2918_v3, 0.0 }
 0x5da   : > { %4560 = vmatmul.mubr.msk.f32.gmra.mxu0 %vm724_vm0, %v3109_v22  ;;  %4572 = vmatmul.mubr.msk.f32.gmra.mxu1 %vm724_vm0, %v3109_v22  ;;  %v2606_v22 = vld [vmem:[%s7724_s13 + $0x98] sm:$0xff] }
 0x5db   : > { %3551 = vmatprep.mubr.f32.mxu0 %v7727_v1  ;;  %3688 = vmatprep.mubr.f32.mxu1 %v7727_v1  ;;  %v2734_v27 = vsub.f32 %v6739_v52, %v2606_v22  ;;  %7765 = vst [vmem:[#allocation17_spill] sm:$0xff] %v6870_v50  ;;  %v2958_v50 = vsub.f32 1.0, %v2862_v14  ;;  %v2660_v14 = vld [vmem:[%s7724_s13 + $0x248] sm:$0xff] }
 0x5dd   : > { %v2830_v61 = vand.u32 2147483647, %v2734_v27  ;;  %v2843_v27 = vand.u32 2147483647, %v2747_v5 }
 0x5de   : > { %4561 = vmatmul.mubr.msk.f32.gmra.mxu0 %vm724_vm0, %v3110_v39  ;;  %4573 = vmatmul.mubr.msk.f32.gmra.mxu1 %vm724_vm0, %v3110_v39 }
 0x5df   : > { %3860 = vmatprep.mubr.f32.mxu0 %v7727_v1  ;;  %3931 = vmatprep.mubr.f32.mxu1 %v7727_v1  ;;  %v2926_v22 = vsub.f32 1.0, %v2830_v61  ;;  %v2636_v61 = vld [vmem:[%s7724_s13 + $0x188] sm:$0xff]  ;;  %v2939_v5 = vsub.f32 1.0, %v2843_v27  ;;  %v2645_v27 = vld [vmem:[%s7724_s13 + $0x1d0] sm:$0xff] }
 0x63e   : > { %v3213_v6 = vpop.f32.mrf.mxu0  ;;  %v3350_v9 = vpop.f32.mrf.mxu1 }
 0x63f   : > { %v6775_v8 = vmul.f32 %v3213_v6, %v3003_v58  ;;  %v6777_v63 = vmul.f32 %v3350_v9, %v3005_v12  ;;  %v2837_v58 = vand.u32 2147483647, %v2741_v60  ;;  %v2742_v12 = vsub.f32 %v6739_v52, %v2614_v32 }
 0x640   : > { %v3215_v39 = vpop.f32.mrf.mxu0  ;;  %v3352_v35 = vpop.f32.mrf.mxu1  ;;  %v2749_v6 = vsub.f32 %v6727_v21, %v2621_v43  ;;  %v6849_v9 = vmax.f32 %v2915_v44, 0.0  ;;  %v2757_v32 = vsub.f32 %v6727_v21, %v2629_v45  ;;  %v6889_v44 = vmax.f32 %v2926_v22, 0.0 }
 0x641   : > { %7750 = vst [vmem:[#allocation2_spill] sm:$0xff] %v6775_v8  ;;  %7751 = vst [vmem:[#allocation3_spill] sm:$0xff] %v6777_v63  ;;  %v6793_v16 = vmul.f32 %v3215_v39, %v3004_v0  ;;  %v6795_v18 = vmul.f32 %v3352_v35, %v3006_v29  ;;  %v2925_v0 = vsub.f32 1.0, %v2829_v46  ;;  %v2924_v29 = vsub.f32 1.0, %v2828_v53 }
 0x642   : > { %v6799_v17 = vpop.f32.mrf.mxu0  ;;  %v6801_v49 = vpop.f32.mrf.mxu1  ;;  %7760 = vst [vmem:[#allocation12_spill] sm:$0xff] %v6849_v9  ;;  %v2836_v35 = vand.u32 2147483647, %v2740_v54  ;;  %v2933_v11 = vsub.f32 1.0, %v2837_v58  ;;  %v2838_v15 = vand.u32 2147483647, %v2742_v12 }
 0x643   : > { %7752 = vst [vmem:[#allocation4_spill] sm:$0xff] %v6793_v16  ;;  %7753 = vst [vmem:[#allocation5_spill] sm:$0xff] %v6795_v18  ;;  %v2845_v59 = vand.u32 2147483647, %v2749_v6  ;;  %v6874_v60 = vmax.f32 %v2925_v0, 0.0  ;;  %v6887_v43 = vmax.f32 %v2924_v29, 0.0 }
 0x644   : > { %7754 = vst [vmem:[#allocation6_spill] sm:$0xff] %v6799_v17  ;;  %7755 = vst [vmem:[#allocation7_spill] sm:$0xff] %v6801_v49  ;;  %v6819_v40 = vpop.f32.mrf.mxu0  ;;  %v6821_v41 = vpop.f32.mrf.mxu1  ;;  %v2932_v46 = vsub.f32 1.0, %v2836_v35  ;;  %v2844_v53 = vand.u32 2147483647, %v2748_v48  ;;  %v6898_v54 = vmax.f32 %v2931_v25, 0.0  ;;  %v2763_v48 = vsub.f32 %v6724_v20, %v2635_v2 }
 0x645   : > { %7756 = vst [vmem:[#allocation8_spill] sm:$0xff] %v6819_v40  ;;  %7757 = vst [vmem:[#allocation9_spill] sm:$0xff] %v6821_v41  ;;  %v6900_v62 = vmax.f32 %v2933_v11, 0.0  ;;  %v2934_v58 = vsub.f32 1.0, %v2838_v15  ;;  %v2846_v12 = vand.u32 2147483647, %v2750_v34  ;;  %v2764_v34 = vsub.f32 %v6736_v51, %v2636_v61 }
 0x646   : > { %7767 = vst [vmem:[#allocation19_spill] sm:$0xff] %v6874_v60  ;;  %7768 = vst [vmem:[#allocation20_spill] sm:$0xff] %v6887_v43  ;;  %v2941_v6 = vsub.f32 1.0, %v2845_v59  ;;  %v2643_v0 = vld [vmem:[%s7724_s13 + $0x1c0] sm:$0xff]  ;;  %v2644_v29 = vld [vmem:[%s7724_s13 + $0x1c8] sm:$0xff]  ;;  %v6919_v45 = vmax.f32 %v2932_v46, 0.0 }
 0x647   : > { %7769 = vst [vmem:[#allocation21_spill] sm:$0xff] %v6889_v44  ;;  %7772 = vst [vmem:[#allocation24_spill] sm:$0xff] %v6898_v54  ;;  %v2851_v22 = vand.u32 2147483647, %v2755_v31  ;;  %v2853_v35 = vand.u32 2147483647, %v2757_v32  ;;  %v2771_v32 = vsub.f32 %v6724_v20, %v2643_v0  ;;  %v2772_v37 = vsub.f32 %v6736_v51, %v2644_v29 }
 0x648   : > { %v6840_v56 = vpop.f32.mrf.mxu0  ;;  %v6842_v4 = vpop.f32.mrf.mxu1  ;;  %7773 = vst [vmem:[#allocation25_spill] sm:$0xff] %v6900_v62  ;;  %7776 = vst [vmem:[#allocation28_spill] sm:$0xff] %v6919_v45  ;;  %v2940_v15 = vsub.f32 1.0, %v2844_v53  ;;  %v6930_v59 = vmax.f32 %v2934_v58, 0.0  ;;  %v2942_v31 = vsub.f32 1.0, %v2846_v12  ;;  %v2646_v2 = vld [vmem:[%s7724_s13 + $0x1d8] sm:$0xff]  ;;  %v2788_v54 = vsub.f32 %v6736_v51, %v2660_v14 }
 0x649   : > { %7758 = vst [vmem:[#allocation10_spill] sm:$0xff] %v6840_v56  ;;  %7759 = vst [vmem:[#allocation11_spill] sm:$0xff] %v6842_v4  ;;  %v2653_v46 = vld [vmem:[%s7724_s13 + $0x210] sm:$0xff]  ;;  %v6943_v53 = vmax.f32 %v2939_v5, 0.0  ;;  %v6945_v61 = vmax.f32 %v2941_v6, 0.0  ;;  %v2947_v29 = vsub.f32 1.0, %v2851_v22  ;;  %v2773_v6 = vsub.f32 %v6727_v21, %v2645_v27 }
 0x64a   : > { %v6853_v30 = vpop.f32.mrf.mxu0  ;;  %v6855_v39 = vpop.f32.mrf.mxu1  ;;  %7779 = vst [vmem:[#allocation31_spill] sm:$0xff] %v6930_v59  ;;  %v2854_v0 = vand.u32 2147483647, %v2758_v7  ;;  %v2949_v1 = vsub.f32 1.0, %v2853_v35  ;;  %v2859_v63 = vand.u32 2147483647, %v2763_v48  ;;  %v2774_v38 = vsub.f32 %v6739_v52, %v2646_v2 }
 0x64b   : > { %7762 = vst [vmem:[#allocation14_spill] sm:$0xff] %v6853_v30  ;;  %7763 = vst [vmem:[#allocation15_spill] sm:$0xff] %v6855_v39  ;;  %v2861_v8 = vand.u32 2147483647, %v2765_v23  ;;  %v6951_v18 = vmax.f32 %v2940_v15, 0.0  ;;  %v6958_v17 = vmax.f32 %v2942_v31, 0.0  ;;  %v2779_v15 = vsub.f32 %v6724_v20, %v2651_v42 }
 0x64c   : > { %7780 = vst [vmem:[#allocation32_spill] sm:$0xff] %v6943_v53  ;;  %7781 = vst [vmem:[#allocation33_spill] sm:$0xff] %v6945_v61  ;;  %v2860_v5 = vand.u32 2147483647, %v2764_v34  ;;  %v2867_v9 = vand.u32 2147483647, %v2771_v32  ;;  %v2781_v34 = vsub.f32 %v6727_v21, %v2653_v46 }
 0x64d   : > { %7784 = vst [vmem:[#allocation36_spill] sm:$0xff] %v6951_v18  ;;  %7787 = vst [vmem:[#allocation39_spill] sm:$0xff] %v6958_v17  ;;  %v2868_v41 = vand.u32 2147483647, %v2772_v37  ;;  %v2652_v7 = vld [vmem:[%s7724_s13 + $0x208] sm:$0xff]  ;;  %v2948_v22 = vsub.f32 1.0, %v2852_v10 }
 0x64e   : > { %v6891_v13 = vpop.f32.mrf.mxu0  ;;  %v6893_v19 = vpop.f32.mrf.mxu1  ;;  %v2950_v48 = vsub.f32 1.0, %v2854_v0  ;;  %v6973_v27 = vmax.f32 %v2947_v29, 0.0  ;;  %v6975_v31 = vmax.f32 %v2949_v1, 0.0  ;;  %v2955_v32 = vsub.f32 1.0, %v2859_v63  ;;  %v2659_v46 = vld [vmem:[%s7724_s13 + $0x240] sm:$0xff]  ;;  %v2661_v1 = vld [vmem:[%s7724_s13 + $0x250] sm:$0xff] }
 0x64f   : > { %7770 = vst [vmem:[#allocation22_spill] sm:$0xff] %v6891_v13  ;;  %7771 = vst [vmem:[#allocation23_spill] sm:$0xff] %v6893_v19  ;;  %v2957_v37 = vsub.f32 1.0, %v2861_v8  ;;  %v2956_v0 = vsub.f32 1.0, %v2860_v5  ;;  %v6981_v40 = vand.u32 2147483647, %v2773_v6  ;;  %v2780_v42 = vsub.f32 %v6736_v51, %v2652_v7 }
 0x650   : > { %v6905_v55 = vpop.f32.mrf.mxu0  ;;  %v6907_v3 = vpop.f32.mrf.mxu1  ;;  %7790 = vst [vmem:[#allocation42_spill] sm:$0xff] %v6973_v27  ;;  %7791 = vst [vmem:[#allocation43_spill] sm:$0xff] %v6975_v31  ;;  %v2963_v63 = vsub.f32 1.0, %v2867_v9  ;;  %v2964_v8 = vsub.f32 1.0, %v2868_v41  ;;  %v6990_v29 = vand.u32 2147483647, %v2774_v38  ;;  %v2787_v56 = vsub.f32 %v6724_v20, %v2659_v46 }
 0x651   : > { %7774 = vst [vmem:[#allocation26_spill] sm:$0xff] %v6905_v55  ;;  %7775 = vst [vmem:[#allocation27_spill] sm:$0xff] %v6907_v3  ;;  %v2662_v5 = vld [vmem:[%s7724_s13 + $0x258] sm:$0xff]  ;;  %v6999_v6 = vmax.f32 %v2948_v22, 0.0  ;;  %v7001_v7 = vmax.f32 %v2950_v48, 0.0  ;;  %v7007_v60 = vmax.f32 %v2955_v32, 0.0  ;;  %v2789_v28 = vsub.f32 %v6727_v21, %v2661_v1 }
 0x652   : > { %v6921_v25 = vpop.f32.mrf.mxu0  ;;  %v6923_v11 = vpop.f32.mrf.mxu1  ;;  %v2875_v41 = vand.u32 2147483647, %v2779_v15  ;;  %v2877_v38 = vand.u32 2147483647, %v2781_v34  ;;  %v7009_v24 = vmax.f32 %v2957_v37, 0.0  ;;  %v2667_v22 = vld [vmem:[%s7724_s13 + $0x280] sm:$0xff] }
 0x653   : > { %7777 = vst [vmem:[#allocation29_spill] sm:$0xff] %v6921_v25  ;;  %7778 = vst [vmem:[#allocation30_spill] sm:$0xff] %v6923_v11  ;;  %v2669_v48 = vld [vmem:[%s7724_s13 + $0x290] sm:$0xff]  ;;  %v2668_v15 = vld [vmem:[%s7724_s13 + $0x288] sm:$0xff]  ;;  %v7022_v34 = vmax.f32 %v2956_v0, 0.0  ;;  %v7024_v32 = vmax.f32 %v2958_v50, 0.0 }
 0x654   : > { %v6947_v58 = vpop.f32.mrf.mxu0  ;;  %v6949_v12 = vpop.f32.mrf.mxu1  ;;  %7794 = vst [vmem:[#allocation46_spill] sm:$0xff] %v6999_v6  ;;  %7795 = vst [vmem:[#allocation47_spill] sm:$0xff] %v7001_v7  ;;  %v7031_v39 = vand.u32 2147483647, %v2780_v42  ;;  %v2670_v44 = vld [vmem:[%s7724_s13 + $0x298] sm:$0xff]  ;;  %v7036_v30 = vmax.f32 %v2963_v63, 0.0  ;;  %v2790_v63 = vsub.f32 %v6739_v52, %v2662_v5  ;;  %v2797_v14 = vsub.f32 %v6727_v21, %v2669_v48 }
 0x655   : > { %7782 = vst [vmem:[#allocation34_spill] sm:$0xff] %v6947_v58  ;;  %7783 = vst [vmem:[#allocation35_spill] sm:$0xff] %v6949_v12  ;;  %v7038_v43 = vmax.f32 %v2964_v8, 0.0  ;;  %v7041_v50 = vand.u32 2147483647, %v2782_v26  ;;  %v2675_v46 = vld [vmem:[%s7724_s13 + $0x2c0] sm:$0xff]  ;;  %v2796_v45 = vsub.f32 %v6736_v51, %v2668_v15  ;;  %v2798_v11 = vsub.f32 %v6739_v52, %v2670_v44 }
 0x656   : > { %v6953_v16 = vpop.f32.mrf.mxu0  ;;  %v6955_v49 = vpop.f32.mrf.mxu1  ;;  %7798 = vst [vmem:[#allocation50_spill] sm:$0xff] %v7007_v60  ;;  %7799 = vst [vmem:[#allocation51_spill] sm:$0xff] %v7009_v24  ;;  %v2971_v62 = vsub.f32 1.0, %v2875_v41  ;;  %v2973_v13 = vsub.f32 1.0, %v2877_v38  ;;  %v2677_v8 = vld [vmem:[%s7724_s13 + $0x2d0] sm:$0xff]  ;;  %v2676_v26 = vld [vmem:[%s7724_s13 + $0x2c8] sm:$0xff]  ;;  %v2795_v41 = vsub.f32 %v6724_v20, %v2667_v22  ;;  %v2803_v61 = vsub.f32 %v6724_v20, %v2675_v46 }
 0x657   : > { %7785 = vst [vmem:[#allocation37_spill] sm:$0xff] %v6953_v16  ;;  %7786 = vst [vmem:[#allocation38_spill] sm:$0xff] %v6955_v49  ;;  %v2678_v0 = vld [vmem:[%s7724_s13 + $0x2d8] sm:$0xff]  ;;  %v2883_v3 = vand.u32 2147483647, %v2787_v56  ;;  %v2972_v55 = vsub.f32 1.0, %v7031_v39  ;;  %v2805_v48 = vsub.f32 %v6727_v21, %v2677_v8  ;;  %v2804_v39 = vsub.f32 %v6736_v51, %v2676_v26 }
 0x658   : > { %v6964_v35 = vpop.f32.mrf.mxu0  ;;  %v6966_v23 = vpop.f32.mrf.mxu1  ;;  %7800 = vst [vmem:[#allocation52_spill] sm:$0xff] %v7022_v34  ;;  %7801 = vst [vmem:[#allocation53_spill] sm:$0xff] %v7024_v32  ;;  %v7061_v59 = vand.u32 2147483647, %v2789_v28  ;;  %v2591_v56 = vld [vmem:[%s7724_s13 + $0x20] sm:$0xff]  ;;  %v2593_v28 = vld [vmem:[%s7724_s13 + $0x30] sm:$0xff]  ;;  %v2806_v15 = vsub.f32 %v6739_v52, %v2678_v0 }
 0x659   : > { %7788 = vst [vmem:[#allocation40_spill] sm:$0xff] %v6964_v35  ;;  %7789 = vst [vmem:[#allocation41_spill] sm:$0xff] %v6966_v23  ;;  %v2592_v20 = vld [vmem:[%s7724_s13 + $0x28] sm:$0xff]  ;;  %v2594_v44 = vld [vmem:[%s7724_s13 + $0x38] sm:$0xff]  ;;  %v7089_v46 = vmax.f32 %v2971_v62, 0.0  ;;  %v7091_v25 = vmax.f32 %v2973_v13, 0.0  ;;  %v2719_v0 = vsub.f32 %v6814_v33, %v2591_v56  ;;  %v2721_v26 = vsub.f32 %v6830_v47, %v2593_v28 }
 0x65a   : > { %v6977_v2 = vpop.f32.mrf.mxu0  ;;  %v6979_v10 = vpop.f32.mrf.mxu1  ;;  %7804 = vst [vmem:[#allocation56_spill] sm:$0xff] %v7036_v30  ;;  %v2884_v21 = vand.u32 2147483647, %v2788_v54  ;;  %v2886_v51 = vand.u32 2147483647, %v2790_v63  ;;  %v2720_v18 = vsub.f32 %v6817_v36, %v2592_v20  ;;  %v2722_v54 = vsub.f32 %v6834_v57, %v2594_v44 }
 0x65b   : > { %7792 = vst [vmem:[#allocation44_spill] sm:$0xff] %v6977_v2  ;;  %7793 = vst [vmem:[#allocation45_spill] sm:$0xff] %v6979_v10  ;;  %v2891_v8 = vand.u32 2147483647, %v2795_v41  ;;  %v2893_v52 = vand.u32 2147483647, %v2797_v14 }
 0x65c   : > { %v7003_v4 = vpop.f32.mrf.mxu0  ;;  %v7005_v9 = vpop.f32.mrf.mxu1  ;;  %v2892_v62 = vand.u32 2147483647, %v2796_v45  ;;  %v2894_v58 = vand.u32 2147483647, %v2798_v11  ;;  %v2899_v13 = vand.u32 2147483647, %v2803_v61 }
 0x65d   : > { %7796 = vst [vmem:[#allocation48_spill] sm:$0xff] %v7003_v4  ;;  %7797 = vst [vmem:[#allocation49_spill] sm:$0xff] %v7005_v9  ;;  %v2901_v49 = vand.u32 2147483647, %v2805_v48  ;;  %v2900_v31 = vand.u32 2147483647, %v2804_v39 }
 0x65e   : > { %v7026_v37 = vpop.f32.mrf.mxu0  ;;  %v7029_v1 = vpop.f32.mrf.mxu1  ;;  %v2902_v16 = vand.u32 2147483647, %v2806_v15  ;;  %v2979_v63 = vsub.f32 1.0, %v2883_v3  ;;  %v2980_v14 = vsub.f32 1.0, %v2884_v21  ;;  %v2982_v28 = vsub.f32 1.0, %v2886_v51 }
 0x65f   : > { %7802 = vst [vmem:[#allocation54_spill] sm:$0xff] %v7026_v37  ;;  %7803 = vst [vmem:[#allocation55_spill] sm:$0xff] %v7029_v1  ;;  %v2987_v23 = vsub.f32 1.0, %v2891_v8  ;;  %v2989_v45 = vsub.f32 1.0, %v2893_v52  ;;  %v2815_v11 = vand.u32 2147483647, %v2719_v0 }
 0x660   : > { %v7046_v19 = vpop.f32.mrf.mxu0  ;;  %v7048_v42 = vpop.f32.mrf.mxu1  ;;  %v2817_v61 = vand.u32 2147483647, %v2721_v26  ;;  %v2988_v48 = vsub.f32 1.0, %v2892_v62  ;;  %v2990_v39 = vsub.f32 1.0, %v2894_v58  ;;  %v2995_v15 = vsub.f32 1.0, %v2899_v13  ;;  %v2599_v52 = vld [vmem:[%s7724_s13 + $0x60] sm:$0xff] }
 0x661   : > { %v2816_v35 = vand.u32 2147483647, %v2720_v18  ;;  %v2997_v44 = vsub.f32 1.0, %v2901_v49  ;;  %v2996_v3 = vsub.f32 1.0, %v2900_v31  ;;  %v2998_v6 = vsub.f32 1.0, %v2902_v16  ;;  %v2601_v58 = vld [vmem:[%s7724_s13 + $0x70] sm:$0xff] }
 0x662   : > { %v7065_v5 = vpop.f32.mrf.mxu0  ;;  %v7067_v38 = vpop.f32.mrf.mxu1  ;;  %v2818_v41 = vand.u32 2147483647, %v2722_v54  ;;  %v7110_v21 = vmax.f32 %v2972_v55, 0.0  ;;  %v3075_v10 = vmax.f32 %v2979_v63, 0.0  ;;  %v3076_v51 = vmax.f32 %v2980_v14, 0.0  ;;  %v7121_v55 = vld [vmem:[%s7724_s13 + $0x68] sm:$0xff] }
 0x663   : > { %v3078_v24 = vmax.f32 %v2982_v28, 0.0  ;;  %v3083_v18 = vmax.f32 %v2987_v23, 0.0  ;;  %v3085_v49 = vmax.f32 %v2989_v45, 0.0  ;;  %v2911_v31 = vsub.f32 1.0, %v2815_v11  ;;  %v7126_v0 = vld [vmem:[%s7724_s13 + $0x78] sm:$0xff] }
 0x664   : > { %v7093_v53 = vpop.f32.mrf.mxu0  ;;  %v7095_v22 = vpop.f32.mrf.mxu1  ;;  %v2913_v16 = vsub.f32 1.0, %v2817_v61  ;;  %v3084_v26 = vmax.f32 %v2988_v48, 0.0  ;;  %v3086_v62 = vmax.f32 %v2990_v39, 0.0  ;;  %v3091_v13 = vmax.f32 %v2995_v15, 0.0 }
 0x665   : > { %v2912_v14 = vsub.f32 1.0, %v2816_v35  ;;  %v3093_v23 = vmax.f32 %v2997_v44, 0.0  ;;  %v3092_v28 = vmax.f32 %v2996_v3, 0.0  ;;  %v3094_v45 = vmax.f32 %v2998_v6, 0.0 }
 0x666   : > { %v7099_v12 = vpop.f32.mrf.mxu0  ;;  %v7101_v17 = vpop.f32.mrf.mxu1  ;;  %v2914_v11 = vsub.f32 1.0, %v2818_v41  ;;  %v2727_v9 = vsub.f32 %v6814_v33, %v2599_v52  ;;  %v2729_v32 = vsub.f32 %v6830_v47, %v2601_v58  ;;  %v2728_v4 = vsub.f32 %v6817_v36, %v7121_v55 }
 0x667   : > { %v2730_v48 = vsub.f32 %v6834_v57, %v7126_v0  ;;  %v3007_v34 = vmax.f32 %v2911_v31, 0.0  ;;  %v3009_v35 = vmax.f32 %v2913_v16, 0.0  ;;  %v3008_v37 = vmax.f32 %v2912_v14, 0.0  ;;  %v7823_v14 = vld [vmem:[#allocation55_spill] sm:$0xff] }
 0x668   : > { %v7106_v56 = vpop.f32.mrf.mxu0  ;;  %v7108_v27 = vpop.f32.mrf.mxu1  ;;  %v3010_v55 = vmax.f32 %v2914_v11, 0.0  ;;  %v7807_v0 = vsub.f32 1.0, %v7061_v59  ;;  %v2607_v59 = vld [vmem:[%s7724_s13 + $0xa0] sm:$0xff] }
 0x669   : > { %v2615_v11 = vld [vmem:[%s7724_s13 + $0xe0] sm:$0xff] }
 0x66a   : > { %v3273_v7 = vpop.f32.mrf.mxu0  ;;  %v3410_v20 = vpop.f32.mrf.mxu1 }
 0x66b   : > { %v3776_v31 = vmul.f32 %v3273_v7, %v3083_v18  ;;  %v3768_v7 = vmul.f32 %v7099_v12, %v3075_v10  ;;  %v7169_v10 = vand.u32 2147483647, %v2728_v4  ;;  %v3760_v18 = vmul.f32 %v7065_v5, %v7089_v46  ;;  %v2608_v4 = vld [vmem:[%s7724_s13 + $0xa8] sm:$0xff]  ;;  %v7821_v46 = vld [vmem:[#allocation56_spill] sm:$0xff] }
 0x66c   : > { %v3275_v2 = vpop.f32.mrf.mxu0  ;;  %v3412_v8 = vpop.f32.mrf.mxu1 }
 0x66d   : > { %v3777_v44 = vmul.f32 %v3275_v2, %v3084_v26  ;;  %v3779_v30 = vmul.f32 %v3412_v8, %v3086_v62  ;;  %v3778_v2 = vmul.f32 %v3410_v20, %v3085_v49  ;;  %v7808_v8 = vsub.f32 1.0, %v7041_v50  ;;  %7816 = vst [vmem:[#allocation65_spill] sm:$0xff] %v7169_v10  ;;  %v2673_v10 = vld [vmem:[%s7724_s13 + $0x2b0] sm:$0xff] }
 0x66e   : > { %v3279_v54 = vpop.f32.mrf.mxu0  ;;  %v3416_v63 = vpop.f32.mrf.mxu1  ;;  %v7153_v20 = vand.u32 2147483647, %v2727_v9  ;;  %v7817_v9 = vsub.f32 1.0, %v6981_v40  ;;  %v3762_v49 = vmul.f32 %v7067_v38, %v7091_v25  ;;  %v3753_v40 = vmul.f32 %v7046_v19, %v7038_v43  ;;  %v2610_v38 = vld [vmem:[%s7724_s13 + $0xb8] sm:$0xff]  ;;  %v2648_v43 = vld [vmem:[%s7724_s13 + $0x1e8] sm:$0xff] }
 0x66f   : > { %v3784_v3 = vmul.f32 %v3279_v54, %v3091_v13  ;;  %v3786_v6 = vmul.f32 %v3416_v63, %v3093_v23 }
 0x670   : > { %v3281_v61 = vpop.f32.mrf.mxu0  ;;  %v3418_v60 = vpop.f32.mrf.mxu1  ;;  %7811 = vst [vmem:[#allocation61_spill] sm:$0xff] %v7153_v20 }
 0x671   : > { %v3785_v39 = vmul.f32 %v3281_v61, %v3092_v28  ;;  %v3787_v15 = vmul.f32 %v3418_v60, %v3094_v45  ;;  %v3077_v28 = vmax.f32 %v7807_v0, 0.0  ;;  %v3769_v60 = vmul.f32 %v7106_v56, %v3076_v51  ;;  %v7826_v61 = vld [vmem:[#allocation52_spill] sm:$0xff]  ;;  %v2634_v45 = vld [vmem:[%s7724_s13 + $0x178] sm:$0xff] }
 0x672   : > { %v3487_v41 = vpop.f32.mrf.mxu0  ;;  %v3624_v1 = vpop.f32.mrf.mxu1  ;;  %v7157_v51 = vand.u32 2147483647, %v2729_v32  ;;  %v3061_v32 = vmax.f32 %v7817_v9, 0.0  ;;  %v7831_v0 = vld [vmem:[#allocation44_spill] sm:$0xff]  ;;  %v2618_v9 = vld [vmem:[%s7724_s13 + $0xf8] sm:$0xff] }
 0x673   : > { %v7134_v52 = vmul.f32 %v3487_v41, %v3007_v34  ;;  %v7136_v58 = vmul.f32 %v3624_v1, %v3009_v35  ;;  %3804 = vmatprep.subr.mxu0 %v3785_v39  ;;  %3875 = vmatprep.subr.mxu1 %v3787_v15  ;;  %v3070_v34 = vmax.f32 %v7808_v8, 0.0  ;;  %v3771_v1 = vmul.f32 %v7108_v27, %v3078_v24  ;;  %v7828_v15 = vld [vmem:[#allocation53_spill] sm:$0xff]  ;;  %v2617_v41 = vld [vmem:[%s7724_s13 + $0xf0] sm:$0xff] }
 0x674   : > { %v3489_v16 = vpop.f32.mrf.mxu0  ;;  %v3626_v26 = vpop.f32.mrf.mxu1  ;;  %3805 = vmatpush1.msra.mxu0 %v3784_v3  ;;  %3876 = vmatpush1.msra.mxu1 %v3786_v6  ;;  %v3770_v56 = vmul.f32 %v7101_v17, %v3077_v28  ;;  %7813 = vst [vmem:[#allocation63_spill] sm:$0xff] %v7157_v51  ;;  %v7815_v24 = vsub.f32 1.0, %v6990_v29  ;;  %v3761_v17 = vmul.f32 %v7093_v53, %v7110_v21  ;;  %v7822_v21 = vld [vmem:[#allocation54_spill] sm:$0xff]  ;;  %v7829_v35 = vld [vmem:[#allocation49_spill] sm:$0xff] }
 0x675   : > { %7805 = vst [vmem:[#allocation57_spill] sm:$0xff] %v7134_v52  ;;  %7806 = vst [vmem:[#allocation58_spill] sm:$0xff] %v7136_v58  ;;  %v7144_v62 = vmul.f32 %v3489_v16, %v3008_v37  ;;  %v7146_v13 = vmul.f32 %v3626_v26, %v3010_v55  ;;  %3806 = vmatprep.subr.mxu0 %v3777_v44  ;;  %3877 = vmatprep.subr.mxu1 %v3779_v30  ;;  %v2609_v30 = vld [vmem:[%s7724_s13 + $0xb0] sm:$0xff]  ;;  %v7830_v55 = vld [vmem:[#allocation50_spill] sm:$0xff] }
 0x676   : > { %v7155_v50 = vpop.f32.mrf.mxu0  ;;  %v7159_v27 = vpop.f32.mrf.mxu1  ;;  %3807 = vmatpush1.msra.mxu0 %v3776_v31  ;;  %3878 = vmatpush1.msra.mxu1 %v3778_v2  ;;  %v3062_v37 = vmax.f32 %v7815_v24, 0.0  ;;  %v3763_v12 = vmul.f32 %v7095_v22, %v3070_v34  ;;  %v2735_v53 = vsub.f32 %v6814_v33, %v2607_v59  ;;  %v7188_v22 = vand.u32 2147483647, %v2730_v48  ;;  %v7827_v48 = vld [vmem:[#allocation48_spill] sm:$0xff]  ;;  %v7833_v31 = vld [vmem:[#allocation45_spill] sm:$0xff]  ;;  %v7837_v59 = vld [vmem:[#allocation46_spill] sm:$0xff] }
 0x677   : > { %7809 = vst [vmem:[#allocation59_spill] sm:$0xff] %v7144_v62  ;;  %7810 = vst [vmem:[#allocation60_spill] sm:$0xff] %v7146_v13  ;;  %3808 = vmatprep.subr.mxu0 %v3769_v60  ;;  %3879 = vmatprep.subr.mxu1 %v3771_v1  ;;  %v2737_v25 = vsub.f32 %v6830_v47, %v2609_v30  ;;  %v3752_v63 = vmul.f32 %v7822_v21, %v7821_v46  ;;  %v7832_v60 = vld [vmem:[#allocation51_spill] sm:$0xff]  ;;  %v7840_v24 = vld [vmem:[#allocation41_spill] sm:$0xff]  ;;  %v7911_v62 = vmov 0.0  }
 0x678   : > { %7812 = vst [vmem:[#allocation62_spill] sm:$0xff] %v7155_v50  ;;  %7814 = vst [vmem:[#allocation64_spill] sm:$0xff] %v7159_v27  ;;  %v7177_v29 = vpop.f32.mrf.mxu0  ;;  %v7179_v54 = vpop.f32.mrf.mxu1  ;;  %3809 = vmatpush1.msra.mxu0 %v3768_v7  ;;  %3880 = vmatpush1.msra.mxu1 %v3770_v56  ;;  %v3755_v5 = vmul.f32 %v7048_v42, %v3062_v37  ;;  %v3754_v23 = vmul.f32 %v7823_v14, %v3061_v32  ;;  %v7219_v16 = vand.u32 2147483647, %v2735_v53  ;;  %v2616_v1 = vld [vmem:[%s7724_s13 + $0xe8] sm:$0xff]  ;;  %v7838_v7 = vld [vmem:[#allocation40_spill] sm:$0xff] }
 0x679   : > { %7818 = vst [vmem:[#allocation66_spill] sm:$0xff] %v7177_v29  ;;  %7819 = vst [vmem:[#allocation67_spill] sm:$0xff] %v7179_v54  ;;  %3810 = vmatprep.subr.mxu0 %v3761_v17  ;;  %3881 = vmatprep.subr.mxu1 %v3763_v12  ;;  %v3745_v39 = vmul.f32 %v7827_v48, %v7826_v61  ;;  %v3747_v44 = vmul.f32 %v7829_v35, %v7828_v15  ;;  %v7839_v30 = vld [vmem:[#allocation47_spill] sm:$0xff]  ;;  %v7233_v17 = vand.u32 2147483647, %v2737_v25  ;;  %v7842_v32 = vld [vmem:[#allocation42_spill] sm:$0xff] }
 0x67a   : > { %7820 = vst [vmem:[#allocation68_spill] sm:$0xff] %v7188_v22  ;;  %v7199_v19 = vpop.f32.mrf.mxu0  ;;  %v7201_v42 = vpop.f32.mrf.mxu1  ;;  %3811 = vmatpush1.msra.mxu0 %v3760_v18  ;;  %3882 = vmatpush1.msra.mxu1 %v3762_v49  ;;  %v2736_v6 = vsub.f32 %v6817_v36, %v2608_v4  ;;  %v3744_v28 = vmul.f32 %v7831_v0, %v7830_v55  ;;  %7834 = vst [vmem:[#allocation55_spill] sm:$0xff] %v7219_v16  ;;  %v7843_v18 = vld [vmem:[#allocation37_spill] sm:$0xff]  ;;  %v7844_v53 = vld [vmem:[#allocation43_spill] sm:$0xff] }
 0x67b   : > { %7824 = vst [vmem:[#allocation56_spill] sm:$0xff] %v7199_v19  ;;  %7825 = vst [vmem:[#allocation54_spill] sm:$0xff] %v7201_v42  ;;  %3812 = vmatprep.subr.mxu0 %v3753_v40  ;;  %3883 = vmatprep.subr.mxu1 %v3755_v5  ;;  %v3746_v2 = vmul.f32 %v7833_v31, %v7832_v60  ;;  %v2738_v8 = vsub.f32 %v6834_v57, %v2610_v38  ;;  %v7845_v4 = vld [vmem:[#allocation38_spill] sm:$0xff]  ;;  %v7848_v21 = vld [vmem:[#allocation36_spill] sm:$0xff] }
 0x67c   : > { %v7221_v26 = vpop.f32.mrf.mxu0  ;;  %v7224_v34 = vpop.f32.mrf.mxu1  ;;  %3813 = vmatpush1.msra.mxu0 %v3752_v63  ;;  %3884 = vmatpush1.msra.mxu1 %v3754_v23  ;;  %v3737_v56 = vmul.f32 %v7838_v7, %v7837_v59  ;;  %v3739_v37 = vmul.f32 %v7840_v24, %v7839_v30  ;;  %7841 = vst [vmem:[#allocation53_spill] sm:$0xff] %v7233_v17  ;;  %v7849_v63 = vld [vmem:[#allocation34_spill] sm:$0xff]  ;;  %v7850_v23 = vld [vmem:[#allocation39_spill] sm:$0xff]  ;;  %v7253_v48 = vand.u32 2147483647, %v2736_v6  ;;  %v7853_v15 = vld [vmem:[#allocation32_spill] sm:$0xff] }
 0x67d   : > { %7835 = vst [vmem:[#allocation52_spill] sm:$0xff] %v7221_v26  ;;  %7836 = vst [vmem:[#allocation48_spill] sm:$0xff] %v7224_v34  ;;  %3814 = vmatprep.subr.mxu0 %v3745_v39  ;;  %3885 = vmatprep.subr.mxu1 %v3747_v44  ;;  %v2743_v12 = vsub.f32 %v6814_v33, %v2615_v11  ;;  %v3736_v49 = vmul.f32 %v7843_v18, %v7842_v32  ;;  %v7851_v11 = vld [vmem:[#allocation35_spill] sm:$0xff]  ;;  %v7854_v35 = vld [vmem:[#allocation29_spill] sm:$0xff] }
 0x67e   : > { %v3738_v40 = vmul.f32 %v7845_v4, %v7844_v53  ;;  %v7244_v38 = vpop.f32.mrf.mxu0  ;;  %v2745_v25 = vsub.f32 %v6830_v47, %v2617_v41  ;;  %v7247_v46 = vpop.f32.mrf.mxu1  ;;  %3815 = vmatpush1.msra.mxu0 %v3744_v28  ;;  %3886 = vmatpush1.msra.mxu1 %v3746_v2  ;;  %v3729_v14 = vmul.f32 %v7849_v63, %v7848_v21  ;;  %v7855_v41 = vld [vmem:[#allocation33_spill] sm:$0xff]  ;;  %v7856_v55 = vld [vmem:[#allocation30_spill] sm:$0xff]  ;;  %v7260_v28 = vand.u32 2147483647, %v2738_v8  ;;  %v7860_v6 = vld [vmem:[#allocation28_spill] sm:$0xff] }
 0x67f   : > { %7846 = vst [vmem:[#allocation49_spill] sm:$0xff] %v7244_v38  ;;  %7847 = vst [vmem:[#allocation50_spill] sm:$0xff] %v7247_v46  ;;  %v3731_v61 = vmul.f32 %v7851_v11, %v7850_v23  ;;  %3816 = vmatprep.subr.mxu0 %v3737_v56  ;;  %3887 = vmatprep.subr.mxu1 %v3739_v37  ;;  %v2744_v39 = vsub.f32 %v6817_v36, %v2616_v1  ;;  %v7861_v59 = vld [vmem:[#allocation26_spill] sm:$0xff]  ;;  %v7862_v1 = vld [vmem:[#allocation31_spill] sm:$0xff] }
 0x680   : > { %7852 = vst [vmem:[#allocation44_spill] sm:$0xff] %v7253_v48  ;;  %v3728_v44 = vmul.f32 %v7854_v35, %v7853_v15  ;;  %v3730_v0 = vmul.f32 %v7856_v55, %v7855_v41  ;;  %7857 = vst [vmem:[#allocation51_spill] sm:$0xff] %v7260_v28  ;;  %v7262_v60 = vpop.f32.mrf.mxu0  ;;  %v2746_v31 = vsub.f32 %v6834_v57, %v2618_v9  ;;  %v7265_v2 = vpop.f32.mrf.mxu1  ;;  %3817 = vmatpush1.msra.mxu0 %v3736_v49  ;;  %v7863_v56 = vld [vmem:[#allocation27_spill] sm:$0xff]  ;;  %v7276_v8 = vld [vmem:[%s7724_s13 + $0x120] sm:$0xff] }
 0x681   : > { %7858 = vst [vmem:[#allocation45_spill] sm:$0xff] %v7262_v60  ;;  %7859 = vst [vmem:[#allocation46_spill] sm:$0xff] %v7265_v2  ;;  %3888 = vmatpush1.msra.mxu1 %v3738_v40  ;;  %v3721_v7 = vmul.f32 %v7861_v59, %v7860_v6  ;;  %v3723_v30 = vmul.f32 %v7863_v56, %v7862_v1  ;;  %3818 = vmatprep.subr.mxu0 %v3729_v14  ;;  %v7864_v9 = vld [vmem:[#allocation24_spill] sm:$0xff]  ;;  %v7865_v32 = vld [vmem:[#allocation22_spill] sm:$0xff]  ;;  %v7282_v40 = vand.u32 2147483647, %v2743_v12 }
 0x682   : > { %3889 = vmatprep.subr.mxu1 %v3731_v61  ;;  %v3720_v18 = vmul.f32 %v7865_v32, %v7864_v9  ;;  %v7866_v49 = vld [vmem:[#allocation25_spill] sm:$0xff]  ;;  %v7867_v53 = vld [vmem:[#allocation23_spill] sm:$0xff]  ;;  %v7284_v21 = vand.u32 2147483647, %v2745_v25  ;;  %v7286_v63 = vpop.f32.mrf.mxu0  ;;  %v7291_v14 = vld [vmem:[%s7724_s13 + $0x130] sm:$0xff]  ;;  %v7293_v23 = vpop.f32.mrf.mxu1  ;;  %3819 = vmatpush1.msra.mxu0 %v3728_v44 }
 0x683   : > { %v3722_v4 = vmul.f32 %v7867_v53, %v7866_v49  ;;  %7868 = vst [vmem:[#allocation40_spill] sm:$0xff] %v7282_v40  ;;  %7870 = vst [vmem:[#allocation41_spill] sm:$0xff] %v7286_v63  ;;  %3890 = vmatpush1.msra.mxu1 %v3730_v0  ;;  %v7872_v11 = vld [vmem:[#allocation20_spill] sm:$0xff]  ;;  %v7873_v61 = vld [vmem:[#allocation14_spill] sm:$0xff]  ;;  %v7300_v55 = vand.u32 2147483647, %v2744_v39  ;;  %3820 = vmatprep.subr.mxu0 %v3721_v7  ;;  %v2751_v49 = vsub.f32 %v6814_v33, %v7276_v8 }
 0x684   : > { %7869 = vst [vmem:[#allocation47_spill] sm:$0xff] %v7284_v21  ;;  %7871 = vst [vmem:[#allocation42_spill] sm:$0xff] %v7293_v23  ;;  %v3713_v15 = vmul.f32 %v7873_v61, %v7872_v11  ;;  %v7874_v35 = vld [vmem:[#allocation21_spill] sm:$0xff]  ;;  %v7875_v41 = vld [vmem:[#allocation15_spill] sm:$0xff]  ;;  %3891 = vmatprep.subr.mxu1 %v3723_v30  ;;  %v7309_v32 = vand.u32 2147483647, %v2746_v31  ;;  %v7313_v53 = vpop.f32.mrf.mxu0  ;;  %v7318_v7 = vpop.f32.mrf.mxu1  ;;  %3821 = vmatpush1.msra.mxu0 %v3720_v18  ;;  %v2801_v40 = vsub.f32 %v6830_v47, %v2673_v10 }
 0x685   : > { %v3715_v12 = vmul.f32 %v7875_v41, %v7874_v35  ;;  %7876 = vst [vmem:[#allocation37_spill] sm:$0xff] %v7300_v55  ;;  %v2624_v6 = vld [vmem:[%s7724_s13 + $0x128] sm:$0xff]  ;;  %v7877_v59 = vld [vmem:[#allocation18_spill] sm:$0xff]  ;;  %7882 = vst [vmem:[#allocation38_spill] sm:$0xff] %v7313_v53  ;;  %3892 = vmatpush1.msra.mxu1 %v3722_v4 }
 0x686   : > { %v7878_v1 = vld [vmem:[#allocation10_spill] sm:$0xff]  ;;  %v7879_v0 = vld [vmem:[#allocation19_spill] sm:$0xff]  ;;  %7881 = vst [vmem:[#allocation43_spill] sm:$0xff] %v7309_v32  ;;  %v2626_v39 = vld [vmem:[%s7724_s13 + $0x138] sm:$0xff]  ;;  %3822 = vmatprep.subr.mxu0 %v3713_v15  ;;  %v7342_v15 = vpop.f32.mrf.mxu0 }
 0x687   : > { %v3712_v44 = vmul.f32 %v7878_v1, %v7877_v59  ;;  %v7880_v56 = vld [vmem:[#allocation11_spill] sm:$0xff]  ;;  %7883 = vst [vmem:[#allocation36_spill] sm:$0xff] %v7318_v7  ;;  %v2631_v30 = vld [vmem:[%s7724_s13 + $0x160] sm:$0xff]  ;;  %v7884_v11 = vld [vmem:[#allocation16_spill] sm:$0xff]  ;;  %v2753_v1 = vsub.f32 %v6830_v47, %v7291_v14  ;;  %3893 = vmatprep.subr.mxu1 %v3715_v12  ;;  %v2752_v14 = vsub.f32 %v6817_v36, %v2624_v6  ;;  %v7344_v12 = vpop.f32.mrf.mxu1 }
 0x688   : > { %v3714_v9 = vmul.f32 %v7880_v56, %v7879_v0  ;;  %v7885_v31 = vld [vmem:[#allocation8_spill] sm:$0xff]  ;;  %v7886_v35 = vld [vmem:[#allocation17_spill] sm:$0xff]  ;;  %v2632_v4 = vld [vmem:[%s7724_s13 + $0x168] sm:$0xff]  ;;  %7892 = vst [vmem:[#allocation34_spill] sm:$0xff] %v7342_v15  ;;  %v7368_v59 = vpop.f32.mrf.mxu0 }
 0x689   : > { %v3705_v61 = vmul.f32 %v7885_v31, %v7884_v11  ;;  %v7887_v41 = vld [vmem:[#allocation9_spill] sm:$0xff]  ;;  %v2633_v18 = vld [vmem:[%s7724_s13 + $0x170] sm:$0xff]  ;;  %v7889_v56 = vld [vmem:[#allocation6_spill] sm:$0xff]  ;;  %7893 = vst [vmem:[#allocation39_spill] sm:$0xff] %v7344_v12  ;;  %3823 = vmatpush1.msra.mxu0 %v3712_v44  ;;  %v2759_v44 = vsub.f32 %v6814_v33, %v2631_v30  ;;  %v2760_v24 = vsub.f32 %v6817_v36, %v2632_v4 }
 0x68a   : > { %v3707_v8 = vmul.f32 %v7887_v41, %v7886_v35  ;;  %v7888_v0 = vld [vmem:[#allocation12_spill] sm:$0xff]  ;;  %v7890_v31 = vld [vmem:[#allocation13_spill] sm:$0xff]  ;;  %v7891_v35 = vld [vmem:[#allocation7_spill] sm:$0xff]  ;;  %3894 = vmatpush1.msra.mxu1 %v3714_v9  ;;  %v2761_v37 = vsub.f32 %v6830_v47, %v2633_v18  ;;  %7894 = vst [vmem:[#allocation35_spill] sm:$0xff] %v7368_v59  ;;  %v7383_v18 = vand.u32 2147483647, %v2751_v49  ;;  %v2762_v4 = vsub.f32 %v6834_v57, %v2634_v45  ;;  %v7400_v45 = vpop.f32.mrf.mxu0 }
 0x68b   : > { %v3704_v11 = vmul.f32 %v7889_v56, %v7888_v0  ;;  %v3706_v41 = vmul.f32 %v7891_v35, %v7890_v31  ;;  %v2639_v0 = vld [vmem:[%s7724_s13 + $0x1a0] sm:$0xff]  ;;  %v2641_v56 = vld [vmem:[%s7724_s13 + $0x1b0] sm:$0xff]  ;;  %v2754_v35 = vsub.f32 %v6834_v57, %v2626_v39  ;;  %3824 = vmatprep.subr.mxu0 %v3705_v61  ;;  %v2640_v9 = vld [vmem:[%s7724_s13 + $0x1a8] sm:$0xff]  ;;  %v7370_v39 = vpop.f32.mrf.mxu1  ;;  %v7396_v49 = vand.u32 2147483647, %v2753_v1  ;;  %7902 = vst [vmem:[#allocation26_spill] sm:$0xff] %v7400_v45 }
 0x68c   : > { %3895 = vmatprep.subr.mxu1 %v3707_v8  ;;  %v2642_v5 = vld [vmem:[%s7724_s13 + $0x1b8] sm:$0xff]  ;;  %7895 = vst [vmem:[#allocation32_spill] sm:$0xff] %v7370_v39  ;;  %v7375_v30 = vld [vmem:[%s7725_s14] sm:$0x7]  ;;  %v2649_v8 = vld [vmem:[%s7724_s13 + $0x1f0] sm:$0xff]  ;;  %v2767_v25 = vsub.f32 %v6814_v33, %v2639_v0  ;;  %v2769_v6 = vsub.f32 %v6830_v47, %v2641_v56  ;;  %v2768_v56 = vsub.f32 %v6817_v36, %v2640_v9  ;;  %v7422_v9 = vpop.f32.mrf.mxu0 }
 0x68d   : > { %3825 = vmatpush1.msra.mxu0 %v3704_v11  ;;  %3896 = vmatpush1.msra.mxu1 %v3706_v41  ;;  %7896 = vst [vmem:[#allocation29_spill] sm:$0xff] %v7375_v30  ;;  %v2647_v61 = vld [vmem:[%s7724_s13 + $0x1e0] sm:$0xff]  ;;  %7897 = vst [vmem:[#allocation33_spill] sm:$0xff] %v7383_v18  ;;  %v7898_v11 = vld [vmem:[#allocation4_spill] sm:$0xff]  ;;  %v7398_v31 = vand.u32 2147483647, %v2752_v14  ;;  %v2770_v58 = vsub.f32 %v6834_v57, %v2642_v5  ;;  %v2777_v14 = vsub.f32 %v6830_v47, %v2649_v8 }
 0x68e   : > { %3826 = vmatprep.subr.mxu0 %v7898_v11  ;;  %v7899_v41 = vld [vmem:[#allocation5_spill] sm:$0xff]  ;;  %7900 = vst [vmem:[#allocation30_spill] sm:$0xff] %v7396_v49  ;;  %v7402_v11 = vpop.f32.mrf.mxu1  ;;  %v7905_v0 = vld [vmem:[#allocation3_spill] sm:$0xff]  ;;  %v7408_v52 = vand.u32 2147483647, %v2754_v35  ;;  %v2775_v1 = vsub.f32 %v6814_v33, %v2647_v61  ;;  %7909 = vst [vmem:[#allocation25_spill] sm:$0xff] %v7422_v9  ;;  %v2776_v35 = vsub.f32 %v6817_v36, %v2648_v43 }
 0x68f   : > { %3897 = vmatprep.subr.mxu1 %v7899_v41  ;;  %v2650_v3 = vld [vmem:[%s7724_s13 + $0x1f8] sm:$0xff]  ;;  %7901 = vst [vmem:[#allocation28_spill] sm:$0xff] %v7398_v31  ;;  %7903 = vst [vmem:[#allocation31_spill] sm:$0xff] %v7402_v11  ;;  %v7904_v41 = vld [vmem:[#allocation2_spill] sm:$0xff]  ;;  %v7410_v13 = vand.u32 2147483647, %v2759_v44 }
 0x690   : > { %3827 = vmatpush1.msra.mxu0 %v7904_v41  ;;  %3898 = vmatpush1.msra.mxu1 %v7905_v0  ;;  %7906 = vst [vmem:[#allocation27_spill] sm:$0xff] %v7408_v52  ;;  %v7418_v41 = vand.u32 2147483647, %v2761_v37  ;;  %v7420_v0 = vand.u32 2147483647, %v2760_v24  ;;  %v7424_v5 = vpop.f32.mrf.mxu1  ;;  %v2778_v44 = vsub.f32 %v6834_v57, %v2650_v3  ;;  %v2655_v24 = vld [vmem:[%s7724_s13 + $0x220] sm:$0xff] }
 0x691   : > { %7907 = vst [vmem:[#allocation24_spill] sm:$0xff] %v7410_v13  ;;  %4574 = vmatmul.mubr.msk.f32.vlgmr.msra.gmra.mxu0 %vm3792_vm6, %v7375_v30  ;;  %4575 = vmatmul.mubr.msk.f32.vlgmr.msra.gmra.mxu1 %vm3792_vm6, %v7375_v30  ;;  %7910 = vst [vmem:[#allocation23_spill] sm:$0xff] %v7424_v5  ;;  %v7430_v30 = vand.u32 2147483647, %v2762_v4  ;;  %v7432_v61 = vand.u32 2147483647, %v2767_v25  ;;  %v7448_v25 = vpop.f32.mrf.mxu0 }
 0x692   : > { %7908 = vst [vmem:[#allocation22_spill] sm:$0xff] %v7418_v41  ;;  %4002 = vmatprep.mubr.f32.mxu0 %v7911_v62  ;;  %4073 = vmatprep.mubr.f32.mxu1 %v7911_v62  ;;  %v7434_v37 = vand.u32 2147483647, %v2769_v6  ;;  %v2657_v43 = vld [vmem:[%s7724_s13 + $0x230] sm:$0xff]  ;;  %v7444_v27 = vand.u32 2147483647, %v2768_v56  ;;  %v7450_v6 = vpop.f32.mrf.mxu1 }
 0x693   : > { %v7446_v62 = vand.u32 2147483647, %v2770_v58  ;;  %v2680_v4 = vld [vmem:[%s7724_s13 + $0x2e8] sm:$0xff]  ;;  %v2682_v50 = vld [vmem:[%s7724_s13 + $0x2f8] sm:$0xff]  ;;  %v7460_v56 = vand.u32 2147483647, %v2775_v1  ;;  %v7468_v19 = vpop.f32.mrf.mxu0  ;;  %v2783_v1 = vsub.f32 %v6814_v33, %v2655_v24 }
 0x694   : > { %v7462_v58 = vand.u32 2147483647, %v2777_v14  ;;  %v7466_v42 = vand.u32 2147483647, %v2776_v35  ;;  %v7470_v51 = vand.u32 2147483647, %v2778_v44  ;;  %v7472_v20 = vpop.f32.mrf.mxu1  ;;  %v2785_v14 = vsub.f32 %v6830_v47, %v2657_v43 }
 0x695   : > { %v2656_v8 = vld [vmem:[%s7724_s13 + $0x228] sm:$0xff]  ;;  %v2679_v35 = vld [vmem:[%s7724_s13 + $0x2e0] sm:$0xff]  ;;  %v2681_v44 = vld [vmem:[%s7724_s13 + $0x2f0] sm:$0xff]  ;;  %v7490_v26 = vpop.f32.mrf.mxu0  ;;  %v2808_v46 = vsub.f32 %v6817_v36, %v2680_v4  ;;  %v2810_v38 = vsub.f32 %v6834_v57, %v2682_v50  ;;  %v7538_v21 = vand.u32 2147483647, %v2783_v1 }
 0x696   : > { %v7493_v3 = vpop.f32.mrf.mxu1  ;;  %v2658_v29 = vld [vmem:[%s7724_s13 + $0x238] sm:$0xff]  ;;  %v2672_v22 = vld [vmem:[%s7724_s13 + $0x2a8] sm:$0xff]  ;;  %v2671_v43 = vld [vmem:[%s7724_s13 + $0x2a0] sm:$0xff]  ;;  %v2807_v4 = vsub.f32 %v6814_v33, %v2679_v35  ;;  %v2809_v50 = vsub.f32 %v6830_v47, %v2681_v44  ;;  %v2784_v17 = vsub.f32 %v6817_v36, %v2656_v8  ;;  %v7540_v35 = vand.u32 2147483647, %v2785_v14 }
 0x697   : > { %v2674_v34 = vld [vmem:[%s7724_s13 + $0x2b8] sm:$0xff]  ;;  %v7516_v2 = vpop.f32.mrf.mxu0  ;;  %v2664_v54 = vld [vmem:[%s7724_s13 + $0x268] sm:$0xff]  ;;  %v2786_v16 = vsub.f32 %v6834_v57, %v2658_v29  ;;  %v2663_v28 = vld [vmem:[%s7724_s13 + $0x260] sm:$0xff]  ;;  %v2800_v23 = vsub.f32 %v6817_v36, %v2672_v22  ;;  %v2799_v29 = vsub.f32 %v6814_v33, %v2671_v43  ;;  %v2904_v32 = vand.u32 2147483647, %v2808_v46 }
 0x698   : > { %v7518_v24 = vpop.f32.mrf.mxu1  ;;  %v2666_v60 = vld [vmem:[%s7724_s13 + $0x278] sm:$0xff]  ;;  %v2665_v48 = vld [vmem:[%s7724_s13 + $0x270] sm:$0xff]  ;;  %v2802_v63 = vsub.f32 %v6834_v57, %v2674_v34  ;;  %v2792_v7 = vsub.f32 %v6817_v36, %v2664_v54  ;;  %v2906_v22 = vand.u32 2147483647, %v2810_v38  ;;  %v2791_v34 = vsub.f32 %v6814_v33, %v2663_v28 }
 0x699   : > { %v7542_v44 = vpop.f32.mrf.mxu0  ;;  %v2794_v53 = vsub.f32 %v6834_v57, %v2666_v60  ;;  %v2793_v1 = vsub.f32 %v6830_v47, %v2665_v48  ;;  %v2903_v12 = vand.u32 2147483647, %v2807_v4  ;;  %v2905_v15 = vand.u32 2147483647, %v2809_v50 }
 0x69a   : > { %v7544_v8 = vpop.f32.mrf.mxu1  ;;  %v2880_v49 = vand.u32 2147483647, %v2784_v17  ;;  %v2896_v43 = vand.u32 2147483647, %v2800_v23  ;;  %v2898_v18 = vand.u32 2147483647, %v2802_v63 }
 0x69b   : > { %v7552_v14 = vpop.f32.mrf.mxu0  ;;  %v2882_v10 = vand.u32 2147483647, %v2786_v16  ;;  %v2895_v39 = vand.u32 2147483647, %v2799_v29  ;;  %v2897_v54 = vand.u32 2147483647, %v2801_v40 }
 0x69c   : > { %v7554_v55 = vpop.f32.mrf.mxu1  ;;  %v2888_v46 = vand.u32 2147483647, %v2792_v7  ;;  %v2890_v38 = vand.u32 2147483647, %v2794_v53  ;;  %v3000_v60 = vsub.f32 1.0, %v2904_v32  ;;  %v3002_v33 = vsub.f32 1.0, %v2906_v22 }
 0x69d   : > { %v3547_v36 = vpop.f32.mrf.mxu0  ;;  %v2887_v28 = vand.u32 2147483647, %v2791_v34  ;;  %v2889_v47 = vand.u32 2147483647, %v2793_v1  ;;  %v2999_v52 = vsub.f32 1.0, %v2903_v12  ;;  %v3001_v31 = vsub.f32 1.0, %v2905_v15 }
 0x69e   : > { %v3684_v57 = vpop.f32.mrf.mxu1  ;;  %v2975_v4 = vsub.f32 1.0, %v7538_v21  ;;  %v2977_v17 = vsub.f32 1.0, %v7540_v35  ;;  %v2992_v63 = vsub.f32 1.0, %v2896_v43  ;;  %v2994_v16 = vsub.f32 1.0, %v2898_v18 }
 0x69f   : > { %v3549_v48 = vpop.f32.mrf.mxu0  ;;  %v2976_v23 = vsub.f32 1.0, %v2880_v49  ;;  %v2978_v50 = vsub.f32 1.0, %v2882_v10  ;;  %v2991_v40 = vsub.f32 1.0, %v2895_v39  ;;  %v2993_v29 = vsub.f32 1.0, %v2897_v54 }
 0x6a0   : > { %v3686_v59 = vpop.f32.mrf.mxu1  ;;  %v2984_v32 = vsub.f32 1.0, %v2888_v46  ;;  %v2986_v22 = vsub.f32 1.0, %v2890_v38  ;;  %v3096_v34 = vmax.f32 %v3000_v60, 0.0  ;;  %v3098_v1 = vmax.f32 %v3002_v33, 0.0 }
 0x6a1   : > { %v3553_v7 = vpop.f32.mrf.mxu0  ;;  %v2983_v11 = vsub.f32 1.0, %v2887_v28  ;;  %v2985_v45 = vsub.f32 1.0, %v2889_v47  ;;  %v3095_v12 = vmax.f32 %v2999_v52, 0.0  ;;  %v3097_v15 = vmax.f32 %v3001_v31, 0.0 }
 0x6a2   : > { %v3690_v53 = vpop.f32.mrf.mxu1  ;;  %v3088_v13 = vmax.f32 %v2992_v63, 0.0  ;;  %v3090_v35 = vmax.f32 %v2994_v16, 0.0  ;;  %v3087_v49 = vmax.f32 %v2991_v40, 0.0  ;;  %v3089_v10 = vmax.f32 %v2993_v29, 0.0 }
 0x6a3   : > { %v3555_v41 = vpop.f32.mrf.mxu0  ;;  %v3788_v39 = vmul.f32 %v3553_v7, %v3095_v12  ;;  %v3790_v54 = vmul.f32 %v3690_v53, %v3097_v15  ;;  %v3080_v5 = vmax.f32 %v2984_v32, 0.0  ;;  %v3082_v9 = vmax.f32 %v2986_v22, 0.0  ;;  %v7922_v7 = vld [vmem:[#allocation25_spill] sm:$0xff]  ;;  %v7923_v32 = vld [vmem:[#allocation23_spill] sm:$0xff]  ;;  %v7928_v12 = vld [vmem:[#allocation26_spill] sm:$0xff] }
 0x6a4   : > { %v3692_v21 = vpop.f32.mrf.mxu1  ;;  %v3789_v43 = vmul.f32 %v3555_v41, %v3096_v34  ;;  %v3781_v46 = vmul.f32 %v3549_v48, %v3088_v13  ;;  %v3783_v38 = vmul.f32 %v3686_v59, %v3090_v35  ;;  %v3079_v60 = vmax.f32 %v2983_v11, 0.0 }
 0x6a5   : > { %v3791_v18 = vmul.f32 %v3692_v21, %v3098_v1  ;;  %v3081_v33 = vmax.f32 %v2985_v45, 0.0  ;;  %v3780_v52 = vmul.f32 %v3547_v36, %v3087_v49  ;;  %v3782_v31 = vmul.f32 %v3684_v57, %v3089_v10  ;;  %v7929_v21 = vld [vmem:[#allocation31_spill] sm:$0xff] }
 0x6a6   : > { %3946 = vmatprep.subr.mxu0 %v3789_v43  ;;  %v3072_v28 = vmax.f32 %v2976_v23, 0.0  ;;  %v3074_v47 = vmax.f32 %v2978_v50, 0.0  ;;  %v3773_v41 = vmul.f32 %v7552_v14, %v3080_v5  ;;  %v3775_v63 = vmul.f32 %v7554_v55, %v3082_v9 }
 0x6a7   : > { %4017 = vmatprep.subr.mxu1 %v3791_v18  ;;  %3947 = vmatpush1.msra.mxu0 %v3788_v39  ;;  %v3071_v16 = vmax.f32 %v2975_v4, 0.0  ;;  %v3073_v40 = vmax.f32 %v2977_v17, 0.0  ;;  %v3772_v13 = vmul.f32 %v7542_v44, %v3079_v60  ;;  %v3774_v59 = vmul.f32 %v7544_v8, %v3081_v33  ;;  %v7932_v18 = vld [vmem:[#allocation27_spill] sm:$0xff]  ;;  %v7936_v60 = vld [vmem:[#allocation33_spill] sm:$0xff] }
 0x6a8   : > { %4018 = vmatpush1.msra.mxu1 %v3790_v54  ;;  %3948 = vmatprep.subr.mxu0 %v3781_v46  ;;  %v7912_v45 = vsub.f32 1.0, %v7466_v42  ;;  %v7913_v36 = vsub.f32 1.0, %v7470_v51  ;;  %v3765_v5 = vmul.f32 %v7516_v2, %v3072_v28  ;;  %v3767_v55 = vmul.f32 %v7518_v24, %v3074_v47  ;;  %v7934_v39 = vld [vmem:[#allocation35_spill] sm:$0xff]  ;;  %v7935_v46 = vld [vmem:[#allocation32_spill] sm:$0xff] }
 0x6a9   : > { %4019 = vmatprep.subr.mxu1 %v3783_v38  ;;  %3949 = vmatpush1.msra.mxu0 %v3780_v52  ;;  %v7914_v9 = vsub.f32 1.0, %v7460_v56  ;;  %v7915_v44 = vsub.f32 1.0, %v7462_v58  ;;  %v3764_v48 = vmul.f32 %v7490_v26, %v3071_v16  ;;  %v3766_v42 = vmul.f32 %v7493_v3, %v3073_v40  ;;  %v7941_v16 = vld [vmem:[#allocation39_spill] sm:$0xff] }
 0x6aa   : > { %4020 = vmatpush1.msra.mxu1 %v3782_v31  ;;  %v3064_v11 = vmax.f32 %v7912_v45, 0.0  ;;  %v3066_v57 = vmax.f32 %v7913_v36, 0.0  ;;  %3950 = vmatprep.subr.mxu0 %v3773_v41  ;;  %v7916_v51 = vsub.f32 1.0, %v7444_v27  ;;  %v7917_v2 = vsub.f32 1.0, %v7446_v62  ;;  %v7938_v31 = vld [vmem:[#allocation30_spill] sm:$0xff] }
 0x6ab   : > { %4021 = vmatprep.subr.mxu1 %v3775_v63  ;;  %v3063_v14 = vmax.f32 %v7914_v9, 0.0  ;;  %v3065_v8 = vmax.f32 %v7915_v44, 0.0  ;;  %3951 = vmatpush1.msra.mxu0 %v3772_v13  ;;  %v7918_v58 = vsub.f32 1.0, %v7432_v61  ;;  %v7919_v26 = vsub.f32 1.0, %v7434_v37  ;;  %v7924_v37 = vld [vmem:[#allocation24_spill] sm:$0xff]  ;;  %v7940_v41 = vld [vmem:[#allocation34_spill] sm:$0xff] }
 0x6ac   : > { %4022 = vmatpush1.msra.mxu1 %v3774_v59  ;;  %v3056_v4 = vmax.f32 %v7916_v51, 0.0  ;;  %v3058_v24 = vmax.f32 %v7917_v2, 0.0  ;;  %v3757_v17 = vmul.f32 %v7468_v19, %v3064_v11  ;;  %v3759_v56 = vmul.f32 %v7472_v20, %v3066_v57  ;;  %3952 = vmatprep.subr.mxu0 %v3765_v5  ;;  %v7942_v13 = vld [vmem:[#allocation37_spill] sm:$0xff]  ;;  %v7944_v11 = vld [vmem:[#allocation43_spill] sm:$0xff]  ;;  %v7946_v5 = vld [vmem:[#allocation38_spill] sm:$0xff] }
 0x6ad   : > { %4023 = vmatprep.subr.mxu1 %v3767_v55  ;;  %v3055_v23 = vmax.f32 %v7918_v58, 0.0  ;;  %v3057_v3 = vmax.f32 %v7919_v26, 0.0  ;;  %v3756_v50 = vmul.f32 %v7448_v25, %v3063_v14  ;;  %v3758_v27 = vmul.f32 %v7450_v6, %v3065_v8  ;;  %3953 = vmatpush1.msra.mxu0 %v3764_v48  ;;  %v7926_v25 = vld [vmem:[#allocation22_spill] sm:$0xff]  ;;  %v7947_v9 = vld [vmem:[#allocation36_spill] sm:$0xff]  ;;  %v7952_v2 = vld [vmem:[#allocation41_spill] sm:$0xff] }
 0x6ae   : > { %4024 = vmatpush1.msra.mxu1 %v3766_v42  ;;  %v7920_v62 = vsub.f32 1.0, %v7420_v0  ;;  %v7921_v19 = vsub.f32 1.0, %v7430_v30  ;;  %v3749_v53 = vmul.f32 %v7922_v7, %v3056_v4  ;;  %v3751_v61 = vmul.f32 %v7923_v32, %v3058_v24  ;;  %3954 = vmatprep.subr.mxu0 %v3757_v17  ;;  %v7930_v30 = vld [vmem:[#allocation28_spill] sm:$0xff]  ;;  %v7950_v42 = vld [vmem:[#allocation47_spill] sm:$0xff]  ;;  %v7953_v17 = vld [vmem:[#allocation42_spill] sm:$0xff] }
 0x6af   : > { %4025 = vmatprep.subr.mxu1 %v3759_v56  ;;  %v7925_v22 = vsub.f32 1.0, %v7924_v37  ;;  %v7927_v1 = vsub.f32 1.0, %v7926_v25  ;;  %v3748_v15 = vmul.f32 %v7928_v12, %v3055_v23  ;;  %v3750_v0 = vmul.f32 %v7929_v21, %v3057_v3  ;;  %3955 = vmatpush1.msra.mxu0 %v3756_v50  ;;  %v7948_v44 = vld [vmem:[#allocation40_spill] sm:$0xff]  ;;  %v7956_v3 = vld [vmem:[#allocation51_spill] sm:$0xff]  ;;  %v7966_v12 = vld [vmem:[#allocation65_spill] sm:$0xff] }
 0x6b0   : > { %v3048_v29 = vmax.f32 %v7920_v62, 0.0  ;;  %v3050_v20 = vmax.f32 %v7921_v19, 0.0  ;;  %4026 = vmatpush1.msra.mxu1 %v3758_v27  ;;  %v7931_v35 = vsub.f32 1.0, %v7930_v30  ;;  %v7933_v49 = vsub.f32 1.0, %v7932_v18  ;;  %3956 = vmatprep.subr.mxu0 %v3749_v53  ;;  %v7954_v58 = vld [vmem:[#allocation44_spill] sm:$0xff]  ;;  %v7958_v62 = vld [vmem:[#allocation45_spill] sm:$0xff] }
 0x6b1   : > { %v3047_v34 = vmax.f32 %v7925_v22, 0.0  ;;  %v3049_v6 = vmax.f32 %v7927_v1, 0.0  ;;  %4027 = vmatprep.subr.mxu1 %v3751_v61  ;;  %v7937_v33 = vsub.f32 1.0, %v7936_v60  ;;  %v7939_v28 = vsub.f32 1.0, %v7938_v31  ;;  %3957 = vmatpush1.msra.mxu0 %v3748_v15  ;;  %v7959_v19 = vld [vmem:[#allocation46_spill] sm:$0xff]  ;;  %v7960_v7 = vld [vmem:[#allocation55_spill] sm:$0xff] }
 0x6b2   : > { %v3040_v43 = vmax.f32 %v7931_v35, 0.0  ;;  %v3042_v10 = vmax.f32 %v7933_v49, 0.0  ;;  %v3741_v54 = vmul.f32 %v7934_v39, %v3048_v29  ;;  %v3743_v38 = vmul.f32 %v7935_v46, %v3050_v20  ;;  %4028 = vmatpush1.msra.mxu1 %v3750_v0  ;;  %v7962_v61 = vld [vmem:[#allocation53_spill] sm:$0xff]  ;;  %v7965_v1 = vld [vmem:[#allocation50_spill] sm:$0xff]  ;;  %v7968_v0 = vld [vmem:[#allocation68_spill] sm:$0xff] }
 0x6b3   : > { %v3039_v52 = vmax.f32 %v7937_v33, 0.0  ;;  %v3041_v47 = vmax.f32 %v7939_v28, 0.0  ;;  %v3740_v63 = vmul.f32 %v7940_v41, %v3047_v34  ;;  %v3742_v40 = vmul.f32 %v7941_v16, %v3049_v6  ;;  %v7964_v34 = vld [vmem:[#allocation49_spill] sm:$0xff]  ;;  %v7971_v49 = vld [vmem:[#allocation48_spill] sm:$0xff]  ;;  %v7977_v28 = vld [vmem:[#allocation54_spill] sm:$0xff] }
 0x6b4   : > { %v7943_v59 = vsub.f32 1.0, %v7942_v13  ;;  %v7945_v36 = vsub.f32 1.0, %v7944_v11  ;;  %v3733_v55 = vmul.f32 %v7946_v5, %v3040_v43  ;;  %v3735_v14 = vmul.f32 %v7947_v9, %v3042_v10  ;;  %3958 = vmatprep.subr.mxu0 %v3741_v54  ;;  %4029 = vmatprep.subr.mxu1 %v3743_v38  ;;  %v7970_v43 = vld [vmem:[#allocation52_spill] sm:$0xff]  ;;  %v7972_v39 = vld [vmem:[#allocation61_spill] sm:$0xff]  ;;  %v7974_v38 = vld [vmem:[#allocation63_spill] sm:$0xff] }
 0x6b5   : > { %v7949_v8 = vsub.f32 1.0, %v7948_v44  ;;  %v7951_v51 = vsub.f32 1.0, %v7950_v42  ;;  %v3732_v24 = vmul.f32 %v7952_v2, %v3039_v52  ;;  %v3734_v56 = vmul.f32 %v7953_v17, %v3041_v47  ;;  %3959 = vmatpush1.msra.mxu0 %v3740_v63  ;;  %4030 = vmatpush1.msra.mxu1 %v3742_v40  ;;  %v7976_v52 = vld [vmem:[#allocation56_spill] sm:$0xff]  ;;  %v7978_v41 = vld [vmem:[#allocation66_spill] sm:$0xff]  ;;  %v7979_v16 = vld [vmem:[#allocation67_spill] sm:$0xff] }
 0x6b6   : > { %v3032_v45 = vmax.f32 %v7943_v59, 0.0  ;;  %v3034_v57 = vmax.f32 %v7945_v36, 0.0  ;;  %v7955_v23 = vsub.f32 1.0, %v7954_v58  ;;  %v7957_v50 = vsub.f32 1.0, %v7956_v3  ;;  %3960 = vmatprep.subr.mxu0 %v3733_v55  ;;  %4031 = vmatprep.subr.mxu1 %v3735_v14  ;;  %v7980_v13 = vld [vmem:[#allocation62_spill] sm:$0xff]  ;;  %v7982_v36 = vld [vmem:[#allocation59_spill] sm:$0xff] }
 0x6b7   : > { %v3031_v48 = vmax.f32 %v7949_v8, 0.0  ;;  %v3033_v4 = vmax.f32 %v7951_v51, 0.0  ;;  %v7961_v53 = vsub.f32 1.0, %v7960_v7  ;;  %v7963_v37 = vsub.f32 1.0, %v7962_v61  ;;  %3961 = vmatpush1.msra.mxu0 %v3732_v24  ;;  %4032 = vmatpush1.msra.mxu1 %v3734_v56  ;;  %v7984_v5 = vld [vmem:[#allocation57_spill] sm:$0xff]  ;;  %v7985_v55 = vld [vmem:[#allocation58_spill] sm:$0xff] }
 0x6b8   : > { %v3024_v26 = vmax.f32 %v7955_v23, 0.0  ;;  %v3026_v27 = vmax.f32 %v7957_v50, 0.0  ;;  %v3725_v29 = vmul.f32 %v7958_v62, %v3032_v45  ;;  %v3727_v20 = vmul.f32 %v7959_v19, %v3034_v57  ;;  %v7981_v45 = vld [vmem:[#allocation64_spill] sm:$0xff]  ;;  %v7986_v9 = vld [vmem:[#allocation29_spill] sm:$0xff] }
 0x6b9   : > { %v3023_v32 = vmax.f32 %v7961_v53, 0.0  ;;  %v3025_v22 = vmax.f32 %v7963_v37, 0.0  ;;  %v3724_v25 = vmul.f32 %v7964_v34, %v3031_v48  ;;  %v3726_v6 = vmul.f32 %v7965_v1, %v3033_v4  ;;  %v7983_v57 = vld [vmem:[#allocation60_spill] sm:$0xff] }
 0x6ba   : > { %v7967_v15 = vsub.f32 1.0, %v7966_v12  ;;  %v7969_v30 = vsub.f32 1.0, %v7968_v0  ;;  %v3717_v18 = vmul.f32 %v7970_v43, %v3024_v26  ;;  %v3719_v10 = vmul.f32 %v7971_v49, %v3026_v27  ;;  %3962 = vmatprep.subr.mxu0 %v3725_v29  ;;  %4033 = vmatprep.subr.mxu1 %v3727_v20 }
 0x6bb   : > { %v7973_v54 = vsub.f32 1.0, %v7972_v39  ;;  %v7975_v60 = vsub.f32 1.0, %v7974_v38  ;;  %v3716_v31 = vmul.f32 %v7976_v52, %v3023_v32  ;;  %v3718_v47 = vmul.f32 %v7977_v28, %v3025_v22  ;;  %3963 = vmatpush1.msra.mxu0 %v3724_v25  ;;  %4034 = vmatpush1.msra.mxu1 %v3726_v6 }
 0x6bc   : > { %v3016_v21 = vmax.f32 %v7967_v15, 0.0  ;;  %v3018_v35 = vmax.f32 %v7969_v30, 0.0  ;;  %3964 = vmatprep.subr.mxu0 %v3717_v18  ;;  %4035 = vmatprep.subr.mxu1 %v3719_v10 }
 0x6bd   : > { %v3015_v46 = vmax.f32 %v7973_v54, 0.0  ;;  %v3017_v33 = vmax.f32 %v7975_v60, 0.0  ;;  %3965 = vmatpush1.msra.mxu0 %v3716_v31  ;;  %4036 = vmatpush1.msra.mxu1 %v3718_v47 }
 0x6be   : > { %v3709_v63 = vmul.f32 %v7978_v41, %v3016_v21  ;;  %v3711_v40 = vmul.f32 %v7979_v16, %v3018_v35 }
 0x6bf   : > { %v3708_v59 = vmul.f32 %v7980_v13, %v3015_v46  ;;  %v3710_v11 = vmul.f32 %v7981_v45, %v3017_v33 }
 0x6c0   : > { %3966 = vmatprep.subr.mxu0 %v3709_v63  ;;  %4037 = vmatprep.subr.mxu1 %v3711_v40 }
 0x6c1   : > { %3967 = vmatpush1.msra.mxu0 %v3708_v59  ;;  %4038 = vmatpush1.msra.mxu1 %v3710_v11 }
 0x6c2   : > { %3968 = vmatprep.subr.mxu0 %v7982_v36  ;;  %4039 = vmatprep.subr.mxu1 %v7983_v57 }
 0x6c3   : > { %3969 = vmatpush1.msra.mxu0 %v7984_v5  ;;  %4040 = vmatpush1.msra.mxu1 %v7985_v55 }
 0x6c4   : > { %4576 = vmatmul.mubr.msk.f32.vlgmr.msra.gmra.mxu0 %vm3792_vm6, %v7986_v9  ;;  %4577 = vmatmul.mubr.msk.f32.vlgmr.msra.gmra.mxu1 %vm3792_vm6, %v7986_v9 }
 0x751   : > { %v3862_v14 = vpop.f32.mrf.mxu0  ;;  %v3933_v44 = vpop.f32.mrf.mxu1 }
 0x752   : > { %v4081_v8 = vsel %vm4080_vm7, %v3862_v14, -inf  ;;  %v4095_v48 = vsel %vm4080_vm7, %v3933_v44, -inf }
 0x753   : > { %v4082_v42 = vrot.slane %v4081_v8, 4  ;;  %v4096_v51 = vrot.slane %v4095_v48, 4  ;;  %v3864_v4 = vpop.f32.mrf.mxu0  ;;  %v3935_v2 = vpop.f32.mrf.mxu1 }
 0x754   : > { %v4088_v24 = vsel %vm4080_vm7, %v3864_v4, -inf  ;;  %v4102_v17 = vsel %vm4080_vm7, %v3935_v2, -inf }
 0x755   : > { %v4083_v56 = vmax.f32 %v4081_v8, %v4082_v42  ;;  %v4097_v58 = vmax.f32 %v4095_v48, %v4096_v51  ;;  %v4089_v23 = vrot.slane %v4088_v24, 4  ;;  %v4103_v26 = vrot.slane %v4102_v17, 4 }
 0x757   : > { %v4084_v3 = vrot.slane %v4083_v56, 2  ;;  %v4098_v50 = vrot.slane %v4097_v58, 2  ;;  %v4090_v27 = vmax.f32 %v4088_v24, %v4089_v23  ;;  %v4104_v62 = vmax.f32 %v4102_v17, %v4103_v26 }
 0x759   : > { %v4085_v29 = vmax.f32 %v4083_v56, %v4084_v3  ;;  %v4099_v19 = vmax.f32 %v4097_v58, %v4098_v50  ;;  %v4091_v20 = vrot.slane %v4090_v27, 2  ;;  %v4105_v7 = vrot.slane %v4104_v62, 2 }
 0x75b   : > { %v4086_v53 = vrot.slane %v4085_v29, 1  ;;  %v4100_v32 = vrot.slane %v4099_v19, 1  ;;  %v4092_v61 = vmax.f32 %v4090_v27, %v4091_v20  ;;  %v4106_v37 = vmax.f32 %v4104_v62, %v4105_v7 }
 0x75d   : > { %v4087_v22 = vmax.f32 %v4085_v29, %v4086_v53  ;;  %v4101_v34 = vmax.f32 %v4099_v19, %v4100_v32  ;;  %v4093_v25 = vrot.slane %v4092_v61, 1  ;;  %v4107_v1 = vrot.slane %v4106_v37, 1 }
 0x75f   : > { %v7662_v6 = vsub.f32 %v3862_v14, %v4087_v22  ;;  %v7664_v12 = vsub.f32 %v3933_v44, %v4101_v34  ;;  %v4094_v15 = vmax.f32 %v4092_v61, %v4093_v25  ;;  %v4108_v21 = vmax.f32 %v4106_v37, %v4107_v1 }
 0x761   : > { %v4145_v0 = vmul.f32 1.442695, %v7662_v6  ;;  %v4149_v30 = vmul.f32 1.442695, %v7664_v12  ;;  %v7668_v35 = vsub.f32 %v3864_v4, %v4094_v15  ;;  %v7670_v43 = vsub.f32 %v3935_v2, %v4108_v21 }
 0x763   : > { %4863 = vpow2.f32 %v4145_v0  ;;  %v4147_v18 = vmul.f32 1.442695, %v7668_v35  ;;  %v4151_v49 = vmul.f32 1.442695, %v7670_v43 }
 0x764   : > { %4865 = vpow2.f32 %v4149_v30 }
 0x765   : > { %4867 = vpow2.f32 %v4147_v18 }
 0x766   : > { %4869 = vpow2.f32 %v4151_v49 }
 0x770   : > { %v4864_v10 = vpop.eup %4863 }
 0x771   : > { %v4866_v39 = vpop.eup %4865  ;;  %v4161_v54 = vsel %vm4080_vm7, %v4864_v10, 0.0 }
 0x772   : > { %v4868_v46 = vpop.eup %4867  ;;  %v4162_v38 = vrot.slane %v4161_v54, 4  ;;  %v4175_v60 = vsel %vm4080_vm7, %v4866_v39, 0.0 }
 0x773   : > { %v4870_v33 = vpop.eup %4869  ;;  %v4176_v52 = vrot.slane %v4175_v60, 4  ;;  %v4168_v31 = vsel %vm4080_vm7, %v4868_v46, 0.0 }
 0x774   : > { %v4163_v28 = vadd.f32 %v4162_v38, %v4161_v54  ;;  %v4169_v47 = vrot.slane %v4168_v31, 4  ;;  %v4182_v41 = vsel %vm4080_vm7, %v4870_v33, 0.0 }
 0x775   : > { %v4177_v63 = vadd.f32 %v4176_v52, %v4175_v60  ;;  %v4183_v16 = vrot.slane %v4182_v41, 4 }
 0x776   : > { %v4164_v40 = vrot.slane %v4163_v28, 2  ;;  %v4170_v13 = vadd.f32 %v4169_v47, %v4168_v31 }
 0x777   : > { %v4178_v59 = vrot.slane %v4177_v63, 2  ;;  %v4184_v45 = vadd.f32 %v4183_v16, %v4182_v41 }
 0x778   : > { %v4165_v11 = vadd.f32 %v4164_v40, %v4163_v28  ;;  %v4171_v36 = vrot.slane %v4170_v13, 2 }
 0x779   : > { %v4179_v57 = vadd.f32 %v4178_v59, %v4177_v63  ;;  %v4185_v5 = vrot.slane %v4184_v45, 2 }
 0x77a   : > { %v4166_v55 = vrot.slane %v4165_v11, 1  ;;  %v4172_v9 = vadd.f32 %v4171_v36, %v4170_v13 }
 0x77b   : > { %v4180_v14 = vrot.slane %v4179_v57, 1  ;;  %v4186_v44 = vadd.f32 %v4185_v5, %v4184_v45 }
 0x77c   : > { %v4167_v8 = vadd.f32 %v4166_v55, %v4165_v11  ;;  %v4173_v48 = vrot.slane %v4172_v9, 1 }
 0x77d   : > { %v4181_v42 = vadd.f32 %v4180_v14, %v4179_v57  ;;  %v4187_v51 = vrot.slane %v4186_v44, 1 }
 0x77e   : > { %4871 = vlog2.f32 %v4167_v8  ;;  %v4174_v4 = vadd.f32 %v4173_v48, %v4172_v9 }
 0x77f   : > { %4873 = vlog2.f32 %v4181_v42  ;;  %v4188_v2 = vadd.f32 %v4187_v51, %v4186_v44 }
 0x780   : > { %4875 = vlog2.f32 %v4174_v4 }
 0x781   : > { %4877 = vlog2.f32 %v4188_v2 }
 0x784   : > { %v4004_v24 = vpop.f32.mrf.mxu0  ;;  %v4075_v17 = vpop.f32.mrf.mxu1 }
 0x785   : > { %v4109_v56 = vsel %vm4080_vm7, %v4004_v24, -inf  ;;  %v4123_v58 = vsel %vm4080_vm7, %v4075_v17, -inf }
 0x786   : > { %v4110_v23 = vrot.slane %v4109_v56, 4  ;;  %v4124_v26 = vrot.slane %v4123_v58, 4  ;;  %v4006_v3 = vpop.f32.mrf.mxu0  ;;  %v4077_v50 = vpop.f32.mrf.mxu1 }
 0x787   : > { %v4116_v27 = vsel %vm4080_vm7, %v4006_v3, -inf  ;;  %v4130_v62 = vsel %vm4080_vm7, %v4077_v50, -inf }
 0x788   : > { %v4111_v29 = vmax.f32 %v4109_v56, %v4110_v23  ;;  %v4125_v19 = vmax.f32 %v4123_v58, %v4124_v26  ;;  %v4117_v20 = vrot.slane %v4116_v27, 4  ;;  %v4131_v7 = vrot.slane %v4130_v62, 4 }
 0x78a   : > { %v4112_v53 = vrot.slane %v4111_v29, 2  ;;  %v4126_v32 = vrot.slane %v4125_v19, 2  ;;  %v4118_v61 = vmax.f32 %v4116_v27, %v4117_v20  ;;  %v4132_v37 = vmax.f32 %v4130_v62, %v4131_v7 }
 0x78b   : > { %v4872_v15 = vpop.eup %4871 }
 0x78c   : > { %v4113_v22 = vmax.f32 %v4111_v29, %v4112_v53  ;;  %v4127_v34 = vmax.f32 %v4125_v19, %v4126_v32  ;;  %v4119_v25 = vrot.slane %v4118_v61, 2  ;;  %v4133_v1 = vrot.slane %v4132_v37, 2  ;;  %v4874_v49 = vpop.eup %4873 }
 0x78d   : > { %v4218_v10 = vmul.f32 0.6931472, %v4872_v15  ;;  %v4876_v39 = vpop.eup %4875  ;;  %v4222_v54 = vmul.f32 0.6931472, %v4874_v49 }
 0x78e   : > { %v4114_v21 = vrot.slane %v4113_v22, 1  ;;  %v4128_v0 = vrot.slane %v4127_v34, 1  ;;  %v4120_v30 = vmax.f32 %v4118_v61, %v4119_v25  ;;  %v4134_v18 = vmax.f32 %v4132_v37, %v4133_v1  ;;  %v4878_v33 = vpop.eup %4877 }
 0x78f   : > { %v4220_v52 = vmul.f32 0.6931472, %v4876_v39  ;;  %v4224_v28 = vmul.f32 0.6931472, %v4878_v33  ;;  %v4233_v63 = vsub.f32 %v7662_v6, %v4218_v10  ;;  %v4235_v59 = vsub.f32 %v7664_v12, %v4222_v54 }
 0x790   : > { %v4115_v46 = vmax.f32 %v4113_v22, %v4114_v21  ;;  %v4129_v38 = vmax.f32 %v4127_v34, %v4128_v0  ;;  %v4121_v60 = vrot.slane %v4120_v30, 1  ;;  %v4135_v31 = vrot.slane %v4134_v18, 1 }
 0x791   : > { %v4234_v16 = vsub.f32 %v7668_v35, %v4220_v52  ;;  %v4236_v45 = vsub.f32 %v7670_v43, %v4224_v28 }
 0x792   : > { %v7683_v47 = vsub.f32 %v4004_v24, %v4115_v46  ;;  %v7685_v41 = vsub.f32 %v4075_v17, %v4129_v38  ;;  %v4122_v40 = vmax.f32 %v4120_v30, %v4121_v60  ;;  %v4136_v13 = vmax.f32 %v4134_v18, %v4135_v31 }
 0x793   : > { %v4249_v6 = vcombine.low %v4233_v63, %v4234_v16  ;;  %v4250_v5 = vcombine.low %v4235_v59, %v4236_v45 }
 0x794   : > { %v4153_v11 = vmul.f32 1.442695, %v7683_v47  ;;  %v4157_v36 = vmul.f32 1.442695, %v7685_v41  ;;  %v4142_v57 = vsub.f32 %v4006_v3, %v4122_v40  ;;  %v4144_v35 = vsub.f32 %v4077_v50, %v4136_v13 }
 0x795   : > { %4257 = vst [vmem:[%s7693_s25] sm:$0x77] %v4249_v6  ;;  %4258 = vst [vmem:[%s7693_s25 + $0x8] sm:$0x77] %v4250_v5 }
 0x796   : > { %4879 = vpow2.f32 %v4153_v11  ;;  %v4155_v12 = vmul.f32 1.442695, %v4142_v57  ;;  %v4159_v55 = vmul.f32 1.442695, %v4144_v35 }
 0x797   : > { %4881 = vpow2.f32 %v4157_v36 }
 0x798   : > { %4883 = vpow2.f32 %v4155_v12 }
 0x799   : > { %4885 = vpow2.f32 %v4159_v55 }
 0x7a3   : > { %v4880_v9 = vpop.eup %4879 }
 0x7a4   : > { %v4882_v14 = vpop.eup %4881  ;;  %v4189_v43 = vsel %vm4080_vm7, %v4880_v9, 0.0 }
 0x7a5   : > { %v4190_v44 = vrot.slane %v4189_v43, 4  ;;  %v4203_v8 = vsel %vm4080_vm7, %v4882_v14, 0.0  ;;  %v4884_v48 = vpop.eup %4883 }
 0x7a6   : > { %v4204_v42 = vrot.slane %v4203_v8, 4  ;;  %v4886_v51 = vpop.eup %4885  ;;  %v4196_v2 = vsel %vm4080_vm7, %v4884_v48, 0.0 }
 0x7a7   : > { %v4191_v4 = vadd.f32 %v4190_v44, %v4189_v43  ;;  %v4197_v17 = vrot.slane %v4196_v2, 4  ;;  %v4210_v56 = vsel %vm4080_vm7, %v4886_v51, 0.0 }
 0x7a8   : > { %v4205_v24 = vadd.f32 %v4204_v42, %v4203_v8  ;;  %v4211_v23 = vrot.slane %v4210_v56, 4 }
 0x7a9   : > { %v4192_v58 = vrot.slane %v4191_v4, 2  ;;  %v4198_v3 = vadd.f32 %v4197_v17, %v4196_v2 }
 0x7aa   : > { %v4206_v26 = vrot.slane %v4205_v24, 2  ;;  %v4212_v27 = vadd.f32 %v4211_v23, %v4210_v56 }
 0x7ab   : > { %v4193_v50 = vadd.f32 %v4192_v58, %v4191_v4  ;;  %v4199_v29 = vrot.slane %v4198_v3, 2 }
 0x7ac   : > { %v4207_v62 = vadd.f32 %v4206_v26, %v4205_v24  ;;  %v4213_v20 = vrot.slane %v4212_v27, 2 }
 0x7ad   : > { %v4194_v19 = vrot.slane %v4193_v50, 1  ;;  %v4200_v53 = vadd.f32 %v4199_v29, %v4198_v3 }
 0x7ae   : > { %v4208_v7 = vrot.slane %v4207_v62, 1  ;;  %v4214_v61 = vadd.f32 %v4213_v20, %v4212_v27 }
 0x7af   : > { %v4195_v32 = vadd.f32 %v4194_v19, %v4193_v50  ;;  %v4201_v22 = vrot.slane %v4200_v53, 1 }
 0x7b0   : > { %v4209_v37 = vadd.f32 %v4208_v7, %v4207_v62  ;;  %v4215_v34 = vrot.slane %v4214_v61, 1 }
 0x7b1   : > { %4887 = vlog2.f32 %v4195_v32  ;;  %v4202_v25 = vadd.f32 %v4201_v22, %v4200_v53 }
 0x7b2   : > { %4889 = vlog2.f32 %v4209_v37  ;;  %v4216_v1 = vadd.f32 %v4215_v34, %v4214_v61 }
 0x7b3   : > { %4891 = vlog2.f32 %v4202_v25 }
 0x7b4   : > { %4893 = vlog2.f32 %v4216_v1 }
 0x7be   : > { %v4888_v15 = vpop.eup %4887 }
 0x7bf   : > { %v4890_v21 = vpop.eup %4889  ;;  %v4226_v0 = vmul.f32 0.6931472, %v4888_v15 }
 0x7c0   : > { %v4892_v30 = vpop.eup %4891  ;;  %v4230_v18 = vmul.f32 0.6931472, %v4890_v21 }
 0x7c1   : > { %v4894_v49 = vpop.eup %4893  ;;  %v4228_v10 = vmul.f32 0.6931472, %v4892_v30  ;;  %v4237_v54 = vsub.f32 %v7683_v47, %v4226_v0 }
 0x7c2   : > { %v4232_v39 = vmul.f32 0.6931472, %v4894_v49  ;;  %v4239_v38 = vsub.f32 %v7685_v41, %v4230_v18 }
 0x7c3   : > { %v4238_v46 = vsub.f32 %v4142_v57, %v4228_v10 }
 0x7c4   : > { %v4240_v60 = vsub.f32 %v4144_v35, %v4232_v39 }
 0x7c5   : > { %v4251_v33 = vcombine.low %v4237_v54, %v4238_v46 }
 0x7c6   : > { %v4252_v52 = vcombine.low %v4239_v38, %v4240_v60 }
 0x7c7   : > { %4259 = vst [vmem:[%s7693_s25 + $0x10] sm:$0x77] %v4251_v33 }
 0x7c8   : > { %4260 = vst [vmem:[%s7693_s25 + $0x18] sm:$0x77] %v4252_v52 }
 0x7c9 PF: > { %s25_s18 = sadd.s32 1, %s4901_s18  }
 0x7ca   : > { %p22_p5 = scmp.ge.s32.totalorder %s25_s18, 4  }
 0x7cc   :  { %24 = sbr.rel (!%p22_p5) target bundleno = 1 (0x1), region = 122 }

</bundles_post_ra>
